<compile_context>
chip_gen: v5e
topology: v5e:2x2
jax: 0.10.0
libtpu: 0.0.40
codegen_flags: <defaults>
</compile_context>

<pallas_src>
import functools

import jax
import jax.numpy as jnp
from jax.experimental import pallas as pl
from jax.experimental.pallas import tpu as pltpu

NUM_CLASSES = 5
POOL_SCALES = (1, 2, 3, 6)
LANE = 128
VMEM_LIMIT = 48 * 1024 * 1024   # leave headroom under v7x's 64 MiB physical VMEM


def _round_up(v, m):
    return ((v + m - 1) // m) * m


# ----------------------------------------------------------------------------
# Pallas kernel 1: fused matmul + bias + optional ReLU (1x1 convs, stem im2col)
# ----------------------------------------------------------------------------
def _matmul_bias_act_kernel(a_ref, w_ref, b_ref, o_ref, *, relu):
    acc = jnp.dot(a_ref[...], w_ref[...], preferred_element_type=jnp.float32)
    acc = acc + b_ref[...]
    if relu:
        acc = jnp.maximum(acc, 0.0)
    o_ref[...] = acc.astype(o_ref.dtype)


def _matmul_bias_act_ktiled_kernel(a_ref, w_ref, b_ref, o_ref, acc_ref, *, relu):
    k = pl.program_id(2)

    @pl.when(k == 0)
    def _():
        acc_ref[...] = jnp.zeros_like(acc_ref)

    acc_ref[...] += jnp.dot(a_ref[...], w_ref[...],
                            preferred_element_type=jnp.float32)

    @pl.when(k == pl.num_programs(2) - 1)
    def _():
        acc = acc_ref[...] + b_ref[...]
        if relu:
            acc = jnp.maximum(acc, 0.0)
        o_ref[...] = acc.astype(o_ref.dtype)


def matmul_bias_act(a, w, b, relu=False, out_dtype=jnp.bfloat16,
                    tm=512, tn=LANE, tk=1024):
    """a: [M, K] bf16, w: [K, Np] bf16 (Np % tn == 0), b: [1, Np] f32 -> [M, Np]."""
    M, K = a.shape
    Np = w.shape[1]
    # tm is a multiple of 8 and never larger than needed; the ragged last M
    # block (M % tm != 0) is handled by Pallas with masked edge stores.
    tm = min(tm, _round_up(M, 8))

    if K <= tk:
        grid = (pl.cdiv(M, tm), Np // tn)
        return pl.pallas_call(
            functools.partial(_matmul_bias_act_kernel, relu=relu),
            out_shape=jax.ShapeDtypeStruct((M, Np), out_dtype),
            grid_spec=pltpu.PrefetchScalarGridSpec(
                num_scalar_prefetch=0,
                grid=grid,
                in_specs=[
                    pl.BlockSpec((tm, K), lambda i, j: (i, 0)),
                    pl.BlockSpec((K, tn), lambda i, j: (0, j)),
                    pl.BlockSpec((1, tn), lambda i, j: (0, j)),
                ],
                out_specs=pl.BlockSpec((tm, tn), lambda i, j: (i, j)),
            ),
            compiler_params=pltpu.CompilerParams(
                dimension_semantics=("parallel", "parallel"),
                vmem_limit_bytes=VMEM_LIMIT),
        )(a, w, b)

    # K-tiled path (production-scale K): bound per-step VMEM to tm*tk + tk*tn,
    # accumulate in a f32 VMEM scratch across the "arbitrary" K axis.
    Kp = _round_up(K, tk)
    if Kp != K:   # zero-pad K so partial K blocks never contain garbage
        a = jnp.pad(a, ((0, 0), (0, Kp - K)))
        w = jnp.pad(w, ((0, Kp - K), (0, 0)))
    grid = (pl.cdiv(M, tm), Np // tn, Kp // tk)
    return pl.pallas_call(
        functools.partial(_matmul_bias_act_ktiled_kernel, relu=relu),
        out_shape=jax.ShapeDtypeStruct((M, Np), out_dtype),
        grid_spec=pltpu.PrefetchScalarGridSpec(
            num_scalar_prefetch=0,
            grid=grid,
            in_specs=[
                pl.BlockSpec((tm, tk), lambda i, j, k: (i, k)),
                pl.BlockSpec((tk, tn), lambda i, j, k: (k, j)),
                pl.BlockSpec((1, tn), lambda i, j, k: (0, j)),
            ],
            out_specs=pl.BlockSpec((tm, tn), lambda i, j, k: (i, j)),
            scratch_shapes=[pltpu.VMEM((tm, tn), jnp.float32)],
        ),
        compiler_params=pltpu.CompilerParams(
            dimension_semantics=("parallel", "parallel", "arbitrary"),
            vmem_limit_bytes=VMEM_LIMIT),
    )(a, w, b)


# ----------------------------------------------------------------------------
# Pallas kernel 2: fused 3x3 stride-1 conv (in-kernel im2col, ONE big dot)
# ----------------------------------------------------------------------------
def _conv3x3_kernel(x_ref, w_ref, b_ref, o_ref, *, relu, ho, wo):
    # x_ref: (1, ho+2, wo+2, cin) bf16 (halo-padded tile)
    # w_ref: (9*cin, tn) bf16, b_ref: (1, tn) f32, o_ref: (1, ho*wo, tn)
    cin = x_ref.shape[3]
    # Build the (ho*wo, 9*cin) tap matrix in VMEM/vregs and do a single MXU dot
    # (K = 9*cin) instead of nine tiny-K dots.
    taps = [x_ref[0, dy:dy + ho, dx:dx + wo, :]
            for dy in range(3) for dx in range(3)]
    cols = jnp.concatenate(taps, axis=-1).reshape(ho * wo, 9 * cin)
    acc = jnp.dot(cols, w_ref[...], preferred_element_type=jnp.float32)
    acc = acc + b_ref[...]
    if relu:
        acc = jnp.maximum(acc, 0.0)
    o_ref[...] = acc.reshape(1, ho * wo, acc.shape[-1]).astype(o_ref.dtype)


def conv3x3_s1(x, p, relu=False, out_dtype=jnp.bfloat16, tn=LANE):
    """3x3 conv, stride 1, padding 1.  x: (n, h, w, cinp) -> (n, h, w, coutp)."""
    n, h, w, cin = x.shape
    coutp = p["w"].shape[-1]
    # TODO(synk): the 1-pixel halo pad is still a host-side copy; a pre-padded
    # producer buffer (offset index_map + input_output_aliases) would remove it.
    xp = jnp.pad(x.astype(jnp.bfloat16), ((0, 0), (1, 1), (1, 1), (0, 0)))
    out = pl.pallas_call(
        functools.partial(_conv3x3_kernel, relu=relu, ho=h, wo=w),
        out_shape=jax.ShapeDtypeStruct((n, h * w, coutp), out_dtype),
        grid_spec=pltpu.PrefetchScalarGridSpec(
            num_scalar_prefetch=0,
            grid=(n, coutp // tn),
            in_specs=[
                pl.BlockSpec((1, h + 2, w + 2, cin), lambda i, j: (i, 0, 0, 0)),
                pl.BlockSpec((9 * cin, tn), lambda i, j: (0, j)),
                pl.BlockSpec((1, tn), lambda i, j: (0, j)),
            ],
            out_specs=pl.BlockSpec((1, h * w, tn), lambda i, j: (i, 0, j)),
        ),
        compiler_params=pltpu.CompilerParams(
            dimension_semantics=("parallel", "parallel"),
            vmem_limit_bytes=VMEM_LIMIT),
    )(xp, p["w"], p["b"])
    return out.reshape(n, h, w, coutp)


# ----------------------------------------------------------------------------
# Stride-2 3x3 conv (stem only, Cin=4): tiny im2col + Pallas matmul
# ----------------------------------------------------------------------------
def _im2col_3x3(x, stride):
    n, h, w, c = x.shape
    xp = jnp.pad(x, ((0, 0), (1, 1), (1, 1), (0, 0)))
    ho = (h + 2 - 3) // stride + 1
    wo = (w + 2 - 3) // stride + 1
    patches = []
    for dy in range(3):
        for dx in range(3):
            patches.append(
                xp[:, dy:dy + stride * (ho - 1) + 1:stride,
                      dx:dx + stride * (wo - 1) + 1:stride, :]
            )
    cols = jnp.concatenate(patches, axis=-1).reshape(n * ho * wo, 9 * c)
    return cols, (n, ho, wo)


def conv3x3_s2(x, p, relu=False, out_dtype=jnp.bfloat16):
    cols, (n, ho, wo) = _im2col_3x3(x.astype(jnp.bfloat16), stride=2)
    y = matmul_bias_act(cols, p["w"], p["b"], relu=relu, out_dtype=out_dtype)
    return y.reshape(n, ho, wo, -1)


def conv1x1(x, p, relu=False, out_dtype=jnp.bfloat16):
    n, h, w, c = x.shape
    y = matmul_bias_act(x.reshape(n * h * w, c).astype(jnp.bfloat16),
                        p["w"], p["b"], relu=relu, out_dtype=out_dtype)
    return y.reshape(n, h, w, -1)


# ----------------------------------------------------------------------------
# Pooling / resize glue (matches torch semantics; runs in XLA)
# ----------------------------------------------------------------------------
def adaptive_avg_pool(x, s):
    """torch.nn.AdaptiveAvgPool2d(s) semantics, NHWC."""
    n, h, w, c = x.shape
    rows = []
    for i in range(s):
        h0, h1 = (i * h) // s, -(-((i + 1) * h) // s)
        cols = []
        for j in range(s):
            w0, w1 = (j * w) // s, -(-((j + 1) * w) // s)
            cols.append(jnp.mean(x[:, h0:h1, w0:w1, :].astype(jnp.float32),
                                 axis=(1, 2)))
        rows.append(jnp.stack(cols, axis=1))
    return jnp.stack(rows, axis=1)


def resize_bilinear_align_corners(x, oh, ow):
    """F.interpolate(mode='bilinear', align_corners=True) semantics, NHWC."""
    n, h, w, c = x.shape

    def coords(inp, out):
        if inp == 1 or out == 1:
            src = jnp.zeros((out,), jnp.float32)
        else:
            src = jnp.arange(out, dtype=jnp.float32) * ((inp - 1) / (out - 1))
        i0 = jnp.clip(jnp.floor(src).astype(jnp.int32), 0, inp - 1)
        i1 = jnp.clip(i0 + 1, 0, inp - 1)
        frac = src - i0.astype(jnp.float32)
        return frac, i0, i1

    fy, y0, y1 = coords(h, oh)
    fx, x0, x1 = coords(w, ow)
    xf = x.astype(jnp.float32)
    r0 = xf[:, y0]            # row gathers hoisted (each computed once)
    r1 = xf[:, y1]
    fx_ = fx[None, None, :, None]
    fy_ = fy[None, :, None, None]
    top = r0[:, :, x0] * (1.0 - fx_) + r0[:, :, x1] * fx_
    bot = r1[:, :, x0] * (1.0 - fx_) + r1[:, :, x1] * fx_
    return top * (1.0 - fy_) + bot * fy_


# ----------------------------------------------------------------------------
# Parameters (deterministic, synthetic; bf16 weights, lane-padded cin/cout).
# Padded OUTPUT columns are zeroed so padded channels stay exactly 0 end-to-end
# (bias is zero, relu(0)=0); padded INPUT rows multiply zero activations, so
# their values are irrelevant.  No Python ints live in the pytree (avoids the
# tracer-slice bug).
# ----------------------------------------------------------------------------
def _matmul_param(key, kin, cout, tn=LANE):
    coutp = _round_up(cout, tn)
    w = jax.random.normal(key, (kin, coutp), jnp.float32) * jnp.sqrt(2.0 / kin)
    w = w * (jnp.arange(coutp) < cout).astype(jnp.float32)[None, :]
    return {"w": w.astype(jnp.bfloat16), "b": jnp.zeros((1, coutp), jnp.float32)}


def _conv3x3_param(key, cin_pad, cin_valid, cout, tn=LANE):
    coutp = _round_up(cout, tn)
    fan = 9 * cin_valid
    w = jax.random.normal(key, (9, cin_pad, coutp), jnp.float32) * jnp.sqrt(2.0 / fan)
    w = w * (jnp.arange(coutp) < cout).astype(jnp.float32)[None, None, :]
    return {"w": w.reshape(9 * cin_pad, coutp).astype(jnp.bfloat16),
            "b": jnp.zeros((1, coutp), jnp.float32)}


def make_params(key):
    ks = jax.random.split(key, 12)
    p = {}
    # TODO(synk): build_backbone config not provided in the reference snippet;
    # a small deterministic 3-conv stand-in backbone is used instead.
    p["stem"] = _matmul_param(ks[0], 9 * 4, 16)                    # stride-2, im2col
    p["l1"] = _conv3x3_param(ks[1], cin_pad=LANE, cin_valid=16, cout=32)
    p["l2"] = _conv3x3_param(ks[2], cin_pad=LANE, cin_valid=32, cout=64)
    # PSPHead: pyramid pooling module (tiny matmuls -> plain XLA, f32)
    for i, s in enumerate(POOL_SCALES):
        kw = jax.random.normal(ks[3 + i], (LANE, 32), jnp.float32) * jnp.sqrt(2.0 / 64)
        p[f"ppm{s}"] = {"w": kw, "b": jnp.zeros((32,), jnp.float32)}
    # bottleneck input = padded feat (128) + 4 * 32 ppm branches = 256 (lane-dense)
    p["bott"] = _conv3x3_param(ks[7], cin_pad=LANE + 4 * 32,
                               cin_valid=64 + 4 * 32, cout=32)
    p["cls"] = _matmul_param(ks[8], LANE, NUM_CLASSES)
    # PSPAuxHead
    p["aux"] = _conv3x3_param(ks[9], cin_pad=LANE, cin_valid=32, cout=16)
    p["auxc"] = _matmul_param(ks[10], LANE, NUM_CLASSES)
    return p


# ----------------------------------------------------------------------------
# Forward (mirrors PSPNet.forward)
# ----------------------------------------------------------------------------
def pspnet_forward(p, x_nchw):
    H, W = x_nchw.shape[2], x_nchw.shape[3]
    x = jnp.transpose(x_nchw, (0, 2, 3, 1))  # -> NHWC

    # backbone -> feats; feat_levels = [aux_level, main_level]
    c1 = conv3x3_s2(x, p["stem"], relu=True)            # (n, 8, 8, 128) bf16
    aux_feat = conv3x3_s1(c1, p["l1"], relu=True)       # feats[level0]
    feat = conv3x3_s1(aux_feat, p["l2"], relu=True)     # feats[level1]

    # PSPHead: pyramid pooling + bottleneck + classifier
    fh, fw = feat.shape[1], feat.shape[2]
    branches = [feat]                                   # padded 128-wide, bf16
    for s in POOL_SCALES:
        pooled = adaptive_avg_pool(feat, s)             # (n, s, s, 128), tiny, f32
        pp = p[f"ppm{s}"]
        y = jnp.maximum(jnp.einsum("nhwc,cd->nhwd", pooled, pp["w"]) + pp["b"], 0.0)
        branches.append(
            resize_bilinear_align_corners(y, fh, fw).astype(jnp.bfloat16))
    cat = jnp.concatenate(branches, axis=-1)            # (n, 8, 8, 256) bf16
    y = conv3x3_s1(cat, p["bott"], relu=True)
    out = conv1x1(y, p["cls"], relu=False, out_dtype=jnp.float32)  # Dropout(eval)=id

    # PSPAuxHead
    a = conv3x3_s1(aux_feat, p["aux"], relu=True)
    aux_out = conv1x1(a, p["auxc"], relu=False, out_dtype=jnp.float32)

    # F.interpolate(..., size=(H, W), mode='bilinear', align_corners=True)
    # Resize the lane-dense padded slabs; slice to NUM_CLASSES only at the end.
    out = resize_bilinear_align_corners(out, H, W)[..., :NUM_CLASSES]
    aux_out = resize_bilinear_align_corners(aux_out, H, W)[..., :NUM_CLASSES]

    # back to NCHW to match the PyTorch module's output convention
    return jnp.transpose(out, (0, 3, 1, 2)), jnp.transpose(aux_out, (0, 3, 1, 2))
    # TODO(synk): loss()/predict() (cross-entropy, softmax) are not part of forward and omitted.


if __name__ == "__main__":
    key = jax.random.PRNGKey(0)
    kx, kp = jax.random.split(key)
    x = jax.random.normal(kx, (2, 4, 16, 16), jnp.float32)  # NCHW, like the torch module
    params = make_params(kp)

    out, aux_out = jax.jit(pspnet_forward)(params, x)
    jax.block_until_ready((out, aux_out))

    assert out.shape == (2, NUM_CLASSES, 16, 16), out.shape
    assert aux_out.shape == (2, NUM_CLASSES, 16, 16), aux_out.shape
    assert jnp.all(jnp.isfinite(out)) and jnp.all(jnp.isfinite(aux_out))
    print("KERNEL_OK")
</pallas_src>

<mosaic_0001>
module attributes {stable_mosaic.version = 11 : i64} {
  func.func @_matmul_bias_act_kernel(%arg0: i32, %arg1: i32, %arg2: memref<128x36xbf16, #tpu.memory_space<vmem>>, %arg3: memref<36x128xbf16, #tpu.memory_space<vmem>>, %arg4: memref<1x128xf32, #tpu.memory_space<vmem>>, %arg5: memref<128x128xbf16, #tpu.memory_space<vmem>>) attributes {dimension_semantics = [#tpu.dimension_semantics<parallel>, #tpu.dimension_semantics<parallel>], iteration_bounds = array<i64: 1, 1>, scalar_prefetch = 0 : i64, scratch_operands = 0 : i64, tpu.core_type = #tpu.core_type<tc>, window_params = [{transform_indices = @transform_0, window_bounds = array<i64: 128, 36>}, {transform_indices = @transform_1, window_bounds = array<i64: 36, 128>}, {transform_indices = @transform_2, window_bounds = array<i64: 1, 128>}, {transform_indices = @transform_3, window_bounds = array<i64: 128, 128>}]} {
    %c0 = arith.constant 0 : index
    %c0_0 = arith.constant 0 : index
    %0 = vector.load %arg2[%c0, %c0_0] : memref<128x36xbf16, #tpu.memory_space<vmem>>, vector<128x36xbf16>
    %c0_1 = arith.constant 0 : index
    %c0_2 = arith.constant 0 : index
    %1 = vector.load %arg3[%c0_1, %c0_2] : memref<36x128xbf16, #tpu.memory_space<vmem>>, vector<36x128xbf16>
    %cst = arith.constant dense<0.000000e+00> : vector<128x128xf32>
    %2 = tpu.matmul %0, %1, %cst {dimension_numbers = #tpu.dot_dimension_numbers<[1], [0], [0], [1], [0, 0, 1, 1], [], []>} : vector<128x36xbf16>, vector<36x128xbf16>, vector<128x128xf32> -> vector<128x128xf32>
    %c0_3 = arith.constant 0 : index
    %c0_4 = arith.constant 0 : index
    %3 = vector.load %arg4[%c0_3, %c0_4] : memref<1x128xf32, #tpu.memory_space<vmem>>, vector<1x128xf32>
    %4 = vector.broadcast %3 : vector<1x128xf32> to vector<128x128xf32>
    %5 = arith.addf %2, %4 : vector<128x128xf32>
    %cst_5 = arith.constant 0.000000e+00 : f32
    %6 = vector.broadcast %cst_5 : f32 to vector<128x128xf32>
    %7 = arith.maximumf %5, %6 : vector<128x128xf32>
    %8 = arith.truncf %7 : vector<128x128xf32> to vector<128x128xbf16>
    %c0_6 = arith.constant 0 : index
    %c0_7 = arith.constant 0 : index
    %9 = vector.load %arg5[%c0_6, %c0_7] : memref<128x128xbf16, #tpu.memory_space<vmem>>, vector<128x128xbf16>
    tpu.vector_store %arg5[%c0_6, %c0_7], %8 {strides = array<i32>} : memref<128x128xbf16, #tpu.memory_space<vmem>>, vector<128x128xbf16>,
    return
  }
  func.func @transform_0(%arg0: i32, %arg1: i32) -> (i32, i32) {
    %c0_i32 = arith.constant 0 : i32
    %c0_i32_0 = arith.constant 0 : i32
    return %arg0, %c0_i32 : i32, i32
  }
  func.func @transform_1(%arg0: i32, %arg1: i32) -> (i32, i32) {
    %c0_i32 = arith.constant 0 : i32
    %c0_i32_0 = arith.constant 0 : i32
    return %c0_i32, %arg1 : i32, i32
  }
  func.func @transform_2(%arg0: i32, %arg1: i32) -> (i32, i32) {
    %c0_i32 = arith.constant 0 : i32
    %c0_i32_0 = arith.constant 0 : i32
    return %c0_i32, %arg1 : i32, i32
  }
  func.func @transform_3(%arg0: i32, %arg1: i32) -> (i32, i32) {
    %c0_i32 = arith.constant 0 : i32
    return %arg0, %arg1 : i32, i32
  }
}

module attributes {stable_mosaic.version = 11 : i64} {
  func.func @_conv3x3_kernel(%arg0: i32, %arg1: i32, %arg2: memref<1x10x10x128xbf16, #tpu.memory_space<vmem>>, %arg3: memref<1152x128xbf16, #tpu.memory_space<vmem>>, %arg4: memref<1x128xf32, #tpu.memory_space<vmem>>, %arg5: memref<1x64x128xbf16, #tpu.memory_space<vmem>>) attributes {dimension_semantics = [#tpu.dimension_semantics<parallel>, #tpu.dimension_semantics<parallel>], iteration_bounds = array<i64: 2, 1>, scalar_prefetch = 0 : i64, scratch_operands = 0 : i64, tpu.core_type = #tpu.core_type<tc>, window_params = [{transform_indices = @transform_0, window_bounds = array<i64: 1, 10, 10, 128>}, {transform_indices = @transform_1, window_bounds = array<i64: 1152, 128>}, {transform_indices = @transform_2, window_bounds = array<i64: 1, 128>}, {transform_indices = @transform_3, window_bounds = array<i64: 1, 64, 128>}]} {
    %c0 = arith.constant 0 : index
    %c0_0 = arith.constant 0 : index
    %c0_1 = arith.constant 0 : index
    %c0_2 = arith.constant 0 : index
    %0 = vector.load %arg2[%c0, %c0_0, %c0_1, %c0_2] : memref<1x10x10x128xbf16, #tpu.memory_space<vmem>>, vector<1x8x8x128xbf16>
    %1 = vector.shape_cast %0 : vector<1x8x8x128xbf16> to vector<8x8x128xbf16>
    %c0_3 = arith.constant 0 : index
    %c0_4 = arith.constant 0 : index
    %c1 = arith.constant 1 : index
    %c0_5 = arith.constant 0 : index
    %2 = vector.load %arg2[%c0_3, %c0_4, %c1, %c0_5] : memref<1x10x10x128xbf16, #tpu.memory_space<vmem>>, vector<1x8x8x128xbf16>
    %3 = vector.shape_cast %2 : vector<1x8x8x128xbf16> to vector<8x8x128xbf16>
    %c0_6 = arith.constant 0 : index
    %c0_7 = arith.constant 0 : index
    %c2 = arith.constant 2 : index
    %c0_8 = arith.constant 0 : index
    %4 = vector.load %arg2[%c0_6, %c0_7, %c2, %c0_8] : memref<1x10x10x128xbf16, #tpu.memory_space<vmem>>, vector<1x8x8x128xbf16>
    %5 = vector.shape_cast %4 : vector<1x8x8x128xbf16> to vector<8x8x128xbf16>
    %c0_9 = arith.constant 0 : index
    %c1_10 = arith.constant 1 : index
    %c0_11 = arith.constant 0 : index
    %c0_12 = arith.constant 0 : index
    %6 = vector.load %arg2[%c0_9, %c1_10, %c0_11, %c0_12] : memref<1x10x10x128xbf16, #tpu.memory_space<vmem>>, vector<1x8x8x128xbf16>
    %7 = vector.shape_cast %6 : vector<1x8x8x128xbf16> to vector<8x8x128xbf16>
    %c0_13 = arith.constant 0 : index
    %c1_14 = arith.constant 1 : index
    %c1_15 = arith.constant 1 : index
    %c0_16 = arith.constant 0 : index
    %8 = vector.load %arg2[%c0_13, %c1_14, %c1_15, %c0_16] : memref<1x10x10x128xbf16, #tpu.memory_space<vmem>>, vector<1x8x8x128xbf16>
    %9 = vector.shape_cast %8 : vector<1x8x8x128xbf16> to vector<8x8x128xbf16>
    %c0_17 = arith.constant 0 : index
    %c1_18 = arith.constant 1 : index
    %c2_19 = arith.constant 2 : index
    %c0_20 = arith.constant 0 : index
    %10 = vector.load %arg2[%c0_17, %c1_18, %c2_19, %c0_20] : memref<1x10x10x128xbf16, #tpu.memory_space<vmem>>, vector<1x8x8x128xbf16>
    %11 = vector.shape_cast %10 : vector<1x8x8x128xbf16> to vector<8x8x128xbf16>
    %c0_21 = arith.constant 0 : index
    %c2_22 = arith.constant 2 : index
    %c0_23 = arith.constant 0 : index
    %c0_24 = arith.constant 0 : index
    %12 = vector.load %arg2[%c0_21, %c2_22, %c0_23, %c0_24] : memref<1x10x10x128xbf16, #tpu.memory_space<vmem>>, vector<1x8x8x128xbf16>
    %13 = vector.shape_cast %12 : vector<1x8x8x128xbf16> to vector<8x8x128xbf16>
    %c0_25 = arith.constant 0 : index
    %c2_26 = arith.constant 2 : index
    %c1_27 = arith.constant 1 : index
    %c0_28 = arith.constant 0 : index
    %14 = vector.load %arg2[%c0_25, %c2_26, %c1_27, %c0_28] : memref<1x10x10x128xbf16, #tpu.memory_space<vmem>>, vector<1x8x8x128xbf16>
    %15 = vector.shape_cast %14 : vector<1x8x8x128xbf16> to vector<8x8x128xbf16>
    %c0_29 = arith.constant 0 : index
    %c2_30 = arith.constant 2 : index
    %c2_31 = arith.constant 2 : index
    %c0_32 = arith.constant 0 : index
    %16 = vector.load %arg2[%c0_29, %c2_30, %c2_31, %c0_32] : memref<1x10x10x128xbf16, #tpu.memory_space<vmem>>, vector<1x8x8x128xbf16>
    %17 = vector.shape_cast %16 : vector<1x8x8x128xbf16> to vector<8x8x128xbf16>
    %18 = tpu.concatenate %1, %3, %5, %7, %9, %11, %13, %15, %17 in 2 : vector<8x8x128xbf16>, vector<8x8x128xbf16>, vector<8x8x128xbf16>, vector<8x8x128xbf16>, vector<8x8x128xbf16>, vector<8x8x128xbf16>, vector<8x8x128xbf16>, vector<8x8x128xbf16>, vector<8x8x128xbf16> -> vector<8x8x1152xbf16>
    %19 = vector.shape_cast %18 : vector<8x8x1152xbf16> to vector<64x1152xbf16>
    %c0_33 = arith.constant 0 : index
    %c0_34 = arith.constant 0 : index
    %20 = vector.load %arg3[%c0_33, %c0_34] : memref<1152x128xbf16, #tpu.memory_space<vmem>>, vector<1152x128xbf16>
    %cst = arith.constant dense<0.000000e+00> : vector<64x128xf32>
    %21 = tpu.matmul %19, %20, %cst {dimension_numbers = #tpu.dot_dimension_numbers<[1], [0], [0], [1], [0, 0, 1, 1], [], []>} : vector<64x1152xbf16>, vector<1152x128xbf16>, vector<64x128xf32> -> vector<64x128xf32>
    %c0_35 = arith.constant 0 : index
    %c0_36 = arith.constant 0 : index
    %22 = vector.load %arg4[%c0_35, %c0_36] : memref<1x128xf32, #tpu.memory_space<vmem>>, vector<1x128xf32>
    %23 = vector.broadcast %22 : vector<1x128xf32> to vector<64x128xf32>
    %24 = arith.addf %21, %23 : vector<64x128xf32>
    %cst_37 = arith.constant 0.000000e+00 : f32
    %25 = vector.broadcast %cst_37 : f32 to vector<64x128xf32>
    %26 = arith.maximumf %24, %25 : vector<64x128xf32>
    %27 = vector.shape_cast %26 : vector<64x128xf32> to vector<1x64x128xf32>
    %28 = arith.truncf %27 : vector<1x64x128xf32> to vector<1x64x128xbf16>
    %c0_38 = arith.constant 0 : index
    %c0_39 = arith.constant 0 : index
    %c0_40 = arith.constant 0 : index
    %29 = vector.load %arg5[%c0_38, %c0_39, %c0_40] : memref<1x64x128xbf16, #tpu.memory_space<vmem>>, vector<1x64x128xbf16>
    tpu.vector_store %arg5[%c0_38, %c0_39, %c0_40], %28 {strides = array<i32>} : memref<1x64x128xbf16, #tpu.memory_space<vmem>>, vector<1x64x128xbf16>,
    return
  }
  func.func @transform_0(%arg0: i32, %arg1: i32) -> (i32, i32, i32, i32) {
    %c0_i32 = arith.constant 0 : i32
    %c0_i32_0 = arith.constant 0 : i32
    %c0_i32_1 = arith.constant 0 : i32
    %c0_i32_2 = arith.constant 0 : i32
    return %arg0, %c0_i32, %c0_i32_0, %c0_i32_1 : i32, i32, i32, i32
  }
  func.func @transform_1(%arg0: i32, %arg1: i32) -> (i32, i32) {
    %c0_i32 = arith.constant 0 : i32
    %c0_i32_0 = arith.constant 0 : i32
    return %c0_i32, %arg1 : i32, i32
  }
  func.func @transform_2(%arg0: i32, %arg1: i32) -> (i32, i32) {
    %c0_i32 = arith.constant 0 : i32
    %c0_i32_0 = arith.constant 0 : i32
    return %c0_i32, %arg1 : i32, i32
  }
  func.func @transform_3(%arg0: i32, %arg1: i32) -> (i32, i32, i32) {
    %c0_i32 = arith.constant 0 : i32
    %c0_i32_0 = arith.constant 0 : i32
    return %arg0, %c0_i32, %arg1 : i32, i32, i32
  }
}

module attributes {stable_mosaic.version = 11 : i64} {
  func.func @_conv3x3_kernel(%arg0: i32, %arg1: i32, %arg2: memref<1x10x10x256xbf16, #tpu.memory_space<vmem>>, %arg3: memref<2304x128xbf16, #tpu.memory_space<vmem>>, %arg4: memref<1x128xf32, #tpu.memory_space<vmem>>, %arg5: memref<1x64x128xbf16, #tpu.memory_space<vmem>>) attributes {dimension_semantics = [#tpu.dimension_semantics<parallel>, #tpu.dimension_semantics<parallel>], iteration_bounds = array<i64: 2, 1>, scalar_prefetch = 0 : i64, scratch_operands = 0 : i64, tpu.core_type = #tpu.core_type<tc>, window_params = [{transform_indices = @transform_0, window_bounds = array<i64: 1, 10, 10, 256>}, {transform_indices = @transform_1, window_bounds = array<i64: 2304, 128>}, {transform_indices = @transform_2, window_bounds = array<i64: 1, 128>}, {transform_indices = @transform_3, window_bounds = array<i64: 1, 64, 128>}]} {
    %c0 = arith.constant 0 : index
    %c0_0 = arith.constant 0 : index
    %c0_1 = arith.constant 0 : index
    %c0_2 = arith.constant 0 : index
    %0 = vector.load %arg2[%c0, %c0_0, %c0_1, %c0_2] : memref<1x10x10x256xbf16, #tpu.memory_space<vmem>>, vector<1x8x8x256xbf16>
    %1 = vector.shape_cast %0 : vector<1x8x8x256xbf16> to vector<8x8x256xbf16>
    %c0_3 = arith.constant 0 : index
    %c0_4 = arith.constant 0 : index
    %c1 = arith.constant 1 : index
    %c0_5 = arith.constant 0 : index
    %2 = vector.load %arg2[%c0_3, %c0_4, %c1, %c0_5] : memref<1x10x10x256xbf16, #tpu.memory_space<vmem>>, vector<1x8x8x256xbf16>
    %3 = vector.shape_cast %2 : vector<1x8x8x256xbf16> to vector<8x8x256xbf16>
    %c0_6 = arith.constant 0 : index
    %c0_7 = arith.constant 0 : index
    %c2 = arith.constant 2 : index
    %c0_8 = arith.constant 0 : index
    %4 = vector.load %arg2[%c0_6, %c0_7, %c2, %c0_8] : memref<1x10x10x256xbf16, #tpu.memory_space<vmem>>, vector<1x8x8x256xbf16>
    %5 = vector.shape_cast %4 : vector<1x8x8x256xbf16> to vector<8x8x256xbf16>
    %c0_9 = arith.constant 0 : index
    %c1_10 = arith.constant 1 : index
    %c0_11 = arith.constant 0 : index
    %c0_12 = arith.constant 0 : index
    %6 = vector.load %arg2[%c0_9, %c1_10, %c0_11, %c0_12] : memref<1x10x10x256xbf16, #tpu.memory_space<vmem>>, vector<1x8x8x256xbf16>
    %7 = vector.shape_cast %6 : vector<1x8x8x256xbf16> to vector<8x8x256xbf16>
    %c0_13 = arith.constant 0 : index
    %c1_14 = arith.constant 1 : index
    %c1_15 = arith.constant 1 : index
    %c0_16 = arith.constant 0 : index
    %8 = vector.load %arg2[%c0_13, %c1_14, %c1_15, %c0_16] : memref<1x10x10x256xbf16, #tpu.memory_space<vmem>>, vector<1x8x8x256xbf16>
    %9 = vector.shape_cast %8 : vector<1x8x8x256xbf16> to vector<8x8x256xbf16>
    %c0_17 = arith.constant 0 : index
    %c1_18 = arith.constant 1 : index
    %c2_19 = arith.constant 2 : index
    %c0_20 = arith.constant 0 : index
    %10 = vector.load %arg2[%c0_17, %c1_18, %c2_19, %c0_20] : memref<1x10x10x256xbf16, #tpu.memory_space<vmem>>, vector<1x8x8x256xbf16>
    %11 = vector.shape_cast %10 : vector<1x8x8x256xbf16> to vector<8x8x256xbf16>
    %c0_21 = arith.constant 0 : index
    %c2_22 = arith.constant 2 : index
    %c0_23 = arith.constant 0 : index
    %c0_24 = arith.constant 0 : index
    %12 = vector.load %arg2[%c0_21, %c2_22, %c0_23, %c0_24] : memref<1x10x10x256xbf16, #tpu.memory_space<vmem>>, vector<1x8x8x256xbf16>
    %13 = vector.shape_cast %12 : vector<1x8x8x256xbf16> to vector<8x8x256xbf16>
    %c0_25 = arith.constant 0 : index
    %c2_26 = arith.constant 2 : index
    %c1_27 = arith.constant 1 : index
    %c0_28 = arith.constant 0 : index
    %14 = vector.load %arg2[%c0_25, %c2_26, %c1_27, %c0_28] : memref<1x10x10x256xbf16, #tpu.memory_space<vmem>>, vector<1x8x8x256xbf16>
    %15 = vector.shape_cast %14 : vector<1x8x8x256xbf16> to vector<8x8x256xbf16>
    %c0_29 = arith.constant 0 : index
    %c2_30 = arith.constant 2 : index
    %c2_31 = arith.constant 2 : index
    %c0_32 = arith.constant 0 : index
    %16 = vector.load %arg2[%c0_29, %c2_30, %c2_31, %c0_32] : memref<1x10x10x256xbf16, #tpu.memory_space<vmem>>, vector<1x8x8x256xbf16>
    %17 = vector.shape_cast %16 : vector<1x8x8x256xbf16> to vector<8x8x256xbf16>
    %18 = tpu.concatenate %1, %3, %5, %7, %9, %11, %13, %15, %17 in 2 : vector<8x8x256xbf16>, vector<8x8x256xbf16>, vector<8x8x256xbf16>, vector<8x8x256xbf16>, vector<8x8x256xbf16>, vector<8x8x256xbf16>, vector<8x8x256xbf16>, vector<8x8x256xbf16>, vector<8x8x256xbf16> -> vector<8x8x2304xbf16>
    %19 = vector.shape_cast %18 : vector<8x8x2304xbf16> to vector<64x2304xbf16>
    %c0_33 = arith.constant 0 : index
    %c0_34 = arith.constant 0 : index
    %20 = vector.load %arg3[%c0_33, %c0_34] : memref<2304x128xbf16, #tpu.memory_space<vmem>>, vector<2304x128xbf16>
    %cst = arith.constant dense<0.000000e+00> : vector<64x128xf32>
    %21 = tpu.matmul %19, %20, %cst {dimension_numbers = #tpu.dot_dimension_numbers<[1], [0], [0], [1], [0, 0, 1, 1], [], []>} : vector<64x2304xbf16>, vector<2304x128xbf16>, vector<64x128xf32> -> vector<64x128xf32>
    %c0_35 = arith.constant 0 : index
    %c0_36 = arith.constant 0 : index
    %22 = vector.load %arg4[%c0_35, %c0_36] : memref<1x128xf32, #tpu.memory_space<vmem>>, vector<1x128xf32>
    %23 = vector.broadcast %22 : vector<1x128xf32> to vector<64x128xf32>
    %24 = arith.addf %21, %23 : vector<64x128xf32>
    %cst_37 = arith.constant 0.000000e+00 : f32
    %25 = vector.broadcast %cst_37 : f32 to vector<64x128xf32>
    %26 = arith.maximumf %24, %25 : vector<64x128xf32>
    %27 = vector.shape_cast %26 : vector<64x128xf32> to vector<1x64x128xf32>
    %28 = arith.truncf %27 : vector<1x64x128xf32> to vector<1x64x128xbf16>
    %c0_38 = arith.constant 0 : index
    %c0_39 = arith.constant 0 : index
    %c0_40 = arith.constant 0 : index
    %29 = vector.load %arg5[%c0_38, %c0_39, %c0_40] : memref<1x64x128xbf16, #tpu.memory_space<vmem>>, vector<1x64x128xbf16>
    tpu.vector_store %arg5[%c0_38, %c0_39, %c0_40], %28 {strides = array<i32>} : memref<1x64x128xbf16, #tpu.memory_space<vmem>>, vector<1x64x128xbf16>,
    return
  }
  func.func @transform_0(%arg0: i32, %arg1: i32) -> (i32, i32, i32, i32) {
    %c0_i32 = arith.constant 0 : i32
    %c0_i32_0 = arith.constant 0 : i32
    %c0_i32_1 = arith.constant 0 : i32
    %c0_i32_2 = arith.constant 0 : i32
    return %arg0, %c0_i32, %c0_i32_0, %c0_i32_1 : i32, i32, i32, i32
  }
  func.func @transform_1(%arg0: i32, %arg1: i32) -> (i32, i32) {
    %c0_i32 = arith.constant 0 : i32
    %c0_i32_0 = arith.constant 0 : i32
    return %c0_i32, %arg1 : i32, i32
  }
  func.func @transform_2(%arg0: i32, %arg1: i32) -> (i32, i32) {
    %c0_i32 = arith.constant 0 : i32
    %c0_i32_0 = arith.constant 0 : i32
    return %c0_i32, %arg1 : i32, i32
  }
  func.func @transform_3(%arg0: i32, %arg1: i32) -> (i32, i32, i32) {
    %c0_i32 = arith.constant 0 : i32
    %c0_i32_0 = arith.constant 0 : i32
    return %arg0, %c0_i32, %arg1 : i32, i32, i32
  }
}

module attributes {stable_mosaic.version = 11 : i64} {
  func.func @_matmul_bias_act_kernel(%arg0: i32, %arg1: i32, %arg2: memref<128x128xbf16, #tpu.memory_space<vmem>>, %arg3: memref<128x128xbf16, #tpu.memory_space<vmem>>, %arg4: memref<1x128xf32, #tpu.memory_space<vmem>>, %arg5: memref<128x128xf32, #tpu.memory_space<vmem>>) attributes {dimension_semantics = [#tpu.dimension_semantics<parallel>, #tpu.dimension_semantics<parallel>], iteration_bounds = array<i64: 1, 1>, scalar_prefetch = 0 : i64, scratch_operands = 0 : i64, tpu.core_type = #tpu.core_type<tc>, window_params = [{transform_indices = @transform_0, window_bounds = array<i64: 128, 128>}, {transform_indices = @transform_1, window_bounds = array<i64: 128, 128>}, {transform_indices = @transform_2, window_bounds = array<i64: 1, 128>}, {transform_indices = @transform_3, window_bounds = array<i64: 128, 128>}]} {
    %c0 = arith.constant 0 : index
    %c0_0 = arith.constant 0 : index
    %0 = vector.load %arg2[%c0, %c0_0] : memref<128x128xbf16, #tpu.memory_space<vmem>>, vector<128x128xbf16>
    %c0_1 = arith.constant 0 : index
    %c0_2 = arith.constant 0 : index
    %1 = vector.load %arg3[%c0_1, %c0_2] : memref<128x128xbf16, #tpu.memory_space<vmem>>, vector<128x128xbf16>
    %cst = arith.constant dense<0.000000e+00> : vector<128x128xf32>
    %2 = tpu.matmul %0, %1, %cst {dimension_numbers = #tpu.dot_dimension_numbers<[1], [0], [0], [1], [0, 0, 1, 1], [], []>} : vector<128x128xbf16>, vector<128x128xbf16>, vector<128x128xf32> -> vector<128x128xf32>
    %c0_3 = arith.constant 0 : index
    %c0_4 = arith.constant 0 : index
    %3 = vector.load %arg4[%c0_3, %c0_4] : memref<1x128xf32, #tpu.memory_space<vmem>>, vector<1x128xf32>
    %4 = vector.broadcast %3 : vector<1x128xf32> to vector<128x128xf32>
    %5 = arith.addf %2, %4 : vector<128x128xf32>
    %c0_5 = arith.constant 0 : index
    %c0_6 = arith.constant 0 : index
    %6 = vector.load %arg5[%c0_5, %c0_6] : memref<128x128xf32, #tpu.memory_space<vmem>>, vector<128x128xf32>
    tpu.vector_store %arg5[%c0_5, %c0_6], %5 {strides = array<i32>} : memref<128x128xf32, #tpu.memory_space<vmem>>, vector<128x128xf32>,
    return
  }
  func.func @transform_0(%arg0: i32, %arg1: i32) -> (i32, i32) {
    %c0_i32 = arith.constant 0 : i32
    %c0_i32_0 = arith.constant 0 : i32
    return %arg0, %c0_i32 : i32, i32
  }
  func.func @transform_1(%arg0: i32, %arg1: i32) -> (i32, i32) {
    %c0_i32 = arith.constant 0 : i32
    %c0_i32_0 = arith.constant 0 : i32
    return %c0_i32, %arg1 : i32, i32
  }
  func.func @transform_2(%arg0: i32, %arg1: i32) -> (i32, i32) {
    %c0_i32 = arith.constant 0 : i32
    %c0_i32_0 = arith.constant 0 : i32
    return %c0_i32, %arg1 : i32, i32
  }
  func.func @transform_3(%arg0: i32, %arg1: i32) -> (i32, i32) {
    %c0_i32 = arith.constant 0 : i32
    return %arg0, %arg1 : i32, i32
  }
}

</mosaic_0001>

<bundles_post_ra>
// kernel: pspnet_forward.7
= control target key start
LH: loop header
LB: loop body
LE: loop exit
PB: predicated region body
PF: predicated region fallthrough
CT: control target
= control target key end

     0   :  { %vm120_vm0 = vcmask 1041408   ;;  %vm95_vm1 = vcmask 293888   ;;  %s428_s1 = inlined_call_operand.vmem [shape: bf16[36,128], index: 1, kind: input, shape index: {}]   ;;  %s429_s2 = inlined_call_operand.vmem [shape: f32[1,128], index: 2, kind: input, shape index: {}]   ;;  %s430_s0 = inlined_call_operand.vmem [shape: bf16[128,36], index: 0, kind: input, shape index: {}]   ;;  %s431_s3 = inlined_call_operand.vmem [shape: bf16[128,128], index: 3, kind: output, shape index: {}]  }
   0x1   :  { %v35_v0 = vld [vmem:[%s428_s1 + $0x10] sm:$0x3]  ;;  %v282_v4 = vld [vmem:[%s428_s1 + $0x8] sm:$0xff]  ;;  %v281_v5 = vld [vmem:[%s428_s1] sm:$0xff] }
   0x2   :  { %v89_v1 = vunpack.c.l.b16 %v35_v0  ;;  %v273_v6 = vld [vmem:[%s430_s0] sm:$0xff]  ;;  %v275_v7 = vld [vmem:[%s430_s0 + $0x10] sm:$0xff]  ;;  %v274_v10 = vld [vmem:[%s430_s0 + $0x8] sm:$0xff] }
   0x3   :  { %v277_v8 = vld [vmem:[%s430_s0 + $0x20] sm:$0xff]  ;;  %v279_v9 = vld [vmem:[%s430_s0 + $0x30] sm:$0xff]  ;;  %v276_v11 = vld [vmem:[%s430_s0 + $0x18] sm:$0xff] }
   0x4   :  { %v92_v2 = vpack.c.b16 %v89_v1, %v89_v1  ;;  %v278_v12 = vld [vmem:[%s430_s0 + $0x28] sm:$0xff]  ;;  %v280_v13 = vld [vmem:[%s430_s0 + $0x38] sm:$0xff]  ;;  %v339_v16 = vld [vmem:[%s429_s2] ss:$0 sm:$0xff] }
   0x6   :  { %v122_v3 = vsel %vm120_vm0, %v92_v2, 0 }
   0x7   :  { %129 = vmatpush.bf16.msra.mxu0 %v122_v3  ;;  %330 = vmatpush.bf16.msra.mxu1 %v122_v3 }
   0x8   :  { %331 = vmatpush.bf16.msra.mxu2 %v122_v3  ;;  %332 = vmatpush.bf16.msra.mxu3 %v122_v3 }
   0xb   :  { %130 = vmatpush.bf16.msra.mxu0 %v282_v4  ;;  %333 = vmatpush.bf16.msra.mxu1 %v282_v4 }
   0xc   :  { %334 = vmatpush.bf16.msra.mxu2 %v282_v4  ;;  %335 = vmatpush.bf16.msra.mxu3 %v282_v4 }
   0xf   :  { %131 = vmatpush.bf16.msra.mxu0 %v281_v5  ;;  %336 = vmatpush.bf16.msra.mxu1 %v281_v5 }
  0x10   :  { %337 = vmatpush.bf16.msra.mxu2 %v281_v5  ;;  %338 = vmatpush.bf16.msra.mxu3 %v281_v5 }
  0x12   :  { %265 = vmatmul.msk.bf16.vlgmr.msra.gmra.mxu0 %vm95_vm1, %v273_v6  ;;  %267 = vmatmul.msk.bf16.vlgmr.msra.gmra.mxu1 %vm95_vm1, %v275_v7 }
  0x13   :  { %269 = vmatmul.msk.bf16.vlgmr.msra.gmra.mxu2 %vm95_vm1, %v277_v8  ;;  %271 = vmatmul.msk.bf16.vlgmr.msra.gmra.mxu3 %vm95_vm1, %v279_v9 }
  0x22   :  { %266 = vmatmul.msk.bf16.gmra.mxu0 %vm95_vm1, %v274_v10  ;;  %268 = vmatmul.msk.bf16.gmra.mxu1 %vm95_vm1, %v276_v11 }
  0x23   :  { %270 = vmatmul.msk.bf16.gmra.mxu2 %vm95_vm1, %v278_v12  ;;  %272 = vmatmul.msk.bf16.gmra.mxu3 %vm95_vm1, %v280_v13 }
  0x8f   :  { %v133_v14 = vpop.f32.mrf.mxu0  ;;  %v143_v15 = vpop.f32.mrf.mxu1 }
  0x90   :  { %v134_v17 = vadd.f32 %v339_v16, %v133_v14  ;;  %v144_v18 = vadd.f32 %v339_v16, %v143_v15 }
  0x92   :  { %v173_v25 = vmax.f32 %v134_v17, 0.0  ;;  %v177_v26 = vmax.f32 %v144_v18, 0.0 }
  0x96   :  { %v153_v19 = vpop.f32.mrf.mxu2  ;;  %v163_v20 = vpop.f32.mrf.mxu3 }
  0x97   :  { %v135_v21 = vpop.f32.mrf.mxu0  ;;  %v145_v22 = vpop.f32.mrf.mxu1  ;;  %v154_v31 = vadd.f32 %v339_v16, %v153_v19  ;;  %v164_v32 = vadd.f32 %v339_v16, %v163_v20 }
  0x98   :  { %v136_v23 = vadd.f32 %v339_v16, %v135_v21  ;;  %v146_v24 = vadd.f32 %v339_v16, %v145_v22 }
  0x99   :  { %v181_v39 = vmax.f32 %v154_v31, 0.0  ;;  %v185_v40 = vmax.f32 %v164_v32, 0.0 }
  0x9a   :  { %v174_v27 = vmax.f32 %v136_v23, 0.0  ;;  %v178_v28 = vmax.f32 %v146_v24, 0.0 }
  0x9c   :  { %v286_v29 = vpack.c.bf16 %v174_v27, %v173_v25  ;;  %v296_v30 = vpack.c.bf16 %v178_v28, %v177_v26 }
  0x9e   :  { %287 = vst [vmem:[%s431_s3] sm:$0xff] %v286_v29   ;;  %v155_v33 = vpop.f32.mrf.mxu2  ;;  %v165_v34 = vpop.f32.mrf.mxu3 }
  0x9f   :  { %324 = vst [vmem:[%s431_s3 + $0x10] sm:$0xff] %v296_v30   ;;  %v156_v35 = vadd.f32 %v339_v16, %v155_v33  ;;  %v166_v36 = vadd.f32 %v339_v16, %v165_v34  ;;  %v138_v37 = vpop.f32.mrf.mxu0  ;;  %v148_v38 = vpop.f32.mrf.mxu1 }
  0xa0   :  { %v139_v45 = vadd.f32 %v339_v16, %v138_v37  ;;  %v149_v46 = vadd.f32 %v339_v16, %v148_v38 }
  0xa1   :  { %v182_v41 = vmax.f32 %v156_v35, 0.0  ;;  %v186_v42 = vmax.f32 %v166_v36, 0.0 }
  0xa2   :  { %v175_v53 = vmax.f32 %v139_v45, 0.0  ;;  %v179_v54 = vmax.f32 %v149_v46, 0.0 }
  0xa3   :  { %v306_v43 = vpack.c.bf16 %v182_v41, %v181_v39  ;;  %v316_v44 = vpack.c.bf16 %v186_v42, %v185_v40 }
  0xa5   :  { %326 = vst [vmem:[%s431_s3 + $0x20] sm:$0xff] %v306_v43  }
  0xa6   :  { %328 = vst [vmem:[%s431_s3 + $0x30] sm:$0xff] %v316_v44   ;;  %v158_v47 = vpop.f32.mrf.mxu2  ;;  %v168_v48 = vpop.f32.mrf.mxu3 }
  0xa7   :  { %v140_v49 = vpop.f32.mrf.mxu0  ;;  %v150_v50 = vpop.f32.mrf.mxu1  ;;  %v159_v59 = vadd.f32 %v339_v16, %v158_v47  ;;  %v169_v60 = vadd.f32 %v339_v16, %v168_v48 }
  0xa8   :  { %v141_v51 = vadd.f32 %v339_v16, %v140_v49  ;;  %v151_v52 = vadd.f32 %v339_v16, %v150_v50 }
  0xa9   :  { %v183_v1 = vmax.f32 %v159_v59, 0.0  ;;  %v187_v2 = vmax.f32 %v169_v60, 0.0 }
  0xaa   :  { %v176_v55 = vmax.f32 %v141_v51, 0.0  ;;  %v180_v56 = vmax.f32 %v151_v52, 0.0 }
  0xac   :  { %v291_v57 = vpack.c.bf16 %v176_v55, %v175_v53  ;;  %v301_v58 = vpack.c.bf16 %v180_v56, %v179_v54 }
  0xae   :  { %323 = vst [vmem:[%s431_s3 + $0x8] sm:$0xff] %v291_v57   ;;  %v160_v61 = vpop.f32.mrf.mxu2  ;;  %v170_v62 = vpop.f32.mrf.mxu3 }
  0xaf   :  { %325 = vst [vmem:[%s431_s3 + $0x18] sm:$0xff] %v301_v58   ;;  %v161_v63 = vadd.f32 %v339_v16, %v160_v61  ;;  %v171_v0 = vadd.f32 %v339_v16, %v170_v62 }
  0xb1   :  { %v184_v3 = vmax.f32 %v161_v63, 0.0  ;;  %v188_v4 = vmax.f32 %v171_v0, 0.0 }
  0xb3   :  { %v311_v5 = vpack.c.bf16 %v184_v3, %v183_v1  ;;  %v321_v6 = vpack.c.bf16 %v188_v4, %v187_v2 }
  0xb5   :  { %327 = vst [vmem:[%s431_s3 + $0x28] sm:$0xff] %v311_v5  }
  0xb6   :  { %329 = vst [vmem:[%s431_s3 + $0x38] sm:$0xff] %v321_v6  }

// kernel: pspnet_forward.8
= control target key start
LH: loop header
LB: loop body
LE: loop exit
PB: predicated region body
PF: predicated region fallthrough
CT: control target
= control target key end

     0   :  { %s2300_s12 = smov 0   ;;  %s2302_s13 = smov 0   ;;  %s3017_s0 = inlined_call_operand.vmem [shape: bf16[2,10,10,128], index: 0, kind: input, shape index: {}]   ;;  %s3018_s1 = inlined_call_operand.vmem [shape: bf16[1152,128], index: 1, kind: input, shape index: {}]   ;;  %s3019_s2 = inlined_call_operand.vmem [shape: f32[1,128], index: 2, kind: input, shape index: {}]   ;;  %s3020_s3 = inlined_call_operand.vmem [shape: bf16[2,64,128], index: 3, kind: output, shape index: {}]  }
   0x1   :  { %s2304_s14 = smov 0  }
   0x2 LB: > { %s25_s15 = sadd.s32 1, %s2274_s13  ;;  %p1776_p0 = scmp.ge.s32.totalorder %s2278_s14, 1  ;;  %s2278_s14 = sphi %s2304_s14, %s13_s14   ;;  %s2274_s13 = sphi %s2302_s13, %s3022_s13   ;;  %s2270_s12 = sphi %s2300_s12, %s3021_s12  }
   0x3   : > { %p27_p1 = scmp.ge.s32.totalorder %s25_s15, 2  ;;  %p168_p2 = scmp.lt.s32.totalorder %s2278_s14, 3 }
   0x5   : > { %s3024_s15 = smov (%p27_p1, %s25_s15), 0  ;;  %p169_p3 = pnand %p1776_p0, %p168_p2 }
   0x6   : > { %p202_p4 = scmp.lt.s32.totalorder (!%p169_p3), %s2270_s12, 1 }
   0x7   : > { %172 = sbr.rel (%p169_p3) target bundleno = 335 (0x14f), region = 32 }
   0xc   : > { %v2126_v0 = vld [vmem:[%s3018_s1 + $0x38] sm:$0xff]  ;;  %v2125_v2 = vld [vmem:[%s3018_s1 + $0x30] sm:$0xff]  ;;  %s3026_s12 = smov (!%p202_p4, %s2270_s12), 1  ;;  %v2124_v6 = vld [vmem:[%s3018_s1 + $0x28] sm:$0xff] }
   0xd   : > { %v2142_v1 = vld [vmem:[%s3018_s1 + $0xb8] sm:$0xff]  ;;  %2214 = vmatpush.bf16.msra.mxu1 %v2126_v0  ;;  %1380 = vmatpush.bf16.msra.mxu0 %v2126_v0  ;;  %v2141_v3 = vld [vmem:[%s3018_s1 + $0xb0] sm:$0xff]  ;;  %s2230_s28 = smul.u32 80, %s3026_s12  ;;  %v2140_v7 = vld [vmem:[%s3018_s1 + $0xa8] sm:$0xff]  ;;  %s2118_s5 = sshll.u32 %s3026_s12, 5 }
   0xe   : > { %1438 = vmatpush.bf16.msra.mxu2 %v2142_v1  ;;  %v2150_v4 = vld [vmem:[%s3018_s1 + $0xf8] sm:$0xff]  ;;  %v2149_v5 = vld [vmem:[%s3018_s1 + $0xf0] sm:$0xff]  ;;  %v2148_v8 = vld [vmem:[%s3018_s1 + $0xe8] sm:$0xff]  ;;  %s2992_s8 = scalar_lea.vmem %s3020_s3, %s2118_s5 }
   0xf   : > { %1467 = vmatpush.bf16.msra.mxu3 %v2150_v4  ;;  %s2351_s10 = scalar_lea.vmem %s3017_s0, %s2230_s28  ;;  %v2123_v9 = vld [vmem:[%s3018_s1 + $0x20] sm:$0xff]  ;;  %v2122_v16 = vld [vmem:[%s3018_s1 + $0x18] sm:$0xff]  ;;  %v2121_v23 = vld [vmem:[%s3018_s1 + $0x10] sm:$0xff] }
  0x10   : > { %v2139_v10 = vld [vmem:[%s3018_s1 + $0xa0] sm:$0xff]  ;;  %v2363_v12 = vld [vmem:[%s2351_s10 + $0xc] sm:$0x1]  ;;  %v239_v14 = vld [vmem:[%s2351_s10 + $0x8] sm:$0xe] }
  0x11   : > { %2215 = vmatpush.bf16.msra.mxu1 %v2125_v2  ;;  %1381 = vmatpush.bf16.msra.mxu0 %v2125_v2  ;;  %v2360_v11 = vld [vmem:[%s2351_s10 + $0x4] sm:$0x1]  ;;  %v238_v13 = vld [vmem:[%s2351_s10] sm:$0xe]  ;;  %v315_v18 = vunpack.c.l.b16 %v2363_v12  ;;  %v401_v20 = vunpack.c.l.b16 %v239_v14  ;;  %v2138_v21 = vld [vmem:[%s3018_s1 + $0x98] sm:$0xff] }
  0x12   : > { %1439 = vmatpush.bf16.msra.mxu2 %v2141_v3  ;;  %v2147_v15 = vld [vmem:[%s3018_s1 + $0xe0] sm:$0xff]  ;;  %v313_v17 = vunpack.c.l.b16 %v2360_v11  ;;  %v400_v19 = vunpack.c.l.b16 %v238_v13  ;;  %v2146_v22 = vld [vmem:[%s3018_s1 + $0xd8] sm:$0xff]  ;;  %v2137_v26 = vld [vmem:[%s3018_s1 + $0x90] sm:$0xff] }
  0x13   : > { %1468 = vmatpush.bf16.msra.mxu3 %v2149_v5  ;;  %v409_v25 = vpack.c.b16 %v315_v18, %v401_v20  ;;  %v2120_v27 = vld [vmem:[%s3018_s1 + $0x8] sm:$0xff]  ;;  %v2395_v28 = vld [vmem:[%s2351_s10 + $0x20] sm:$0xf]  ;;  %v2145_v31 = vld [vmem:[%s3018_s1 + $0xd0] sm:$0xff] }
  0x14   : > { %v408_v24 = vpack.c.b16 %v313_v17, %v400_v19  ;;  %v2398_v29 = vld [vmem:[%s2351_s10 + $0x28] sm:$0xf]  ;;  %v2401_v30 = vld [vmem:[%s2351_s10] sm:$0xf]  ;;  %v320_v37 = vunpack.c.l.b16 %v2395_v28  ;;  %v2134_v39 = vld [vmem:[%s3018_s1 + $0x78] sm:$0xff] }
  0x15   : > { %2216 = vmatpush.bf16.msra.mxu1 %v2124_v6  ;;  %1382 = vmatpush.bf16.msra.mxu0 %v2124_v6  ;;  %v2407_v32 = vld [vmem:[%s2351_s10 + $0x8] sm:$0xf]  ;;  %v417_v34 = vrot.slane %v409_v25, 1  ;;  %v2119_v36 = vld [vmem:[%s3018_s1] sm:$0xff]  ;;  %v322_v38 = vunpack.c.l.b16 %v2398_v29  ;;  %v312_v41 = vunpack.c.l.b16 %v2401_v30  ;;  %v2429_v46 = vld [vmem:[%s2351_s10 + $0x14] sm:$0x1] }
  0x16   : > { %1440 = vmatpush.bf16.msra.mxu2 %v2140_v7  ;;  %v416_v33 = vrot.slane %v408_v24, 1  ;;  %v2136_v35 = vld [vmem:[%s3018_s1 + $0x88] sm:$0xff]  ;;  %v2135_v40 = vld [vmem:[%s3018_s1 + $0x80] sm:$0xff]  ;;  %v314_v42 = vunpack.c.l.b16 %v2407_v32  ;;  %v2435_v48 = vld [vmem:[%s2351_s10 + $0x10] sm:$0xf]  ;;  %v317_v56 = vunpack.c.l.b16 %v2429_v46 }
  0x17   : > { %1469 = vmatpush.bf16.msra.mxu3 %v2148_v8  ;;  %v2144_v43 = vld [vmem:[%s3018_s1 + $0xc8] sm:$0xff]  ;;  %v687_v45 = vunpack.c.l.b16 %v417_v34  ;;  %v2438_v49 = vld [vmem:[%s2351_s10 + $0x1c] sm:$0x1]  ;;  %v240_v50 = vld [vmem:[%s2351_s10 + $0x10] sm:$0xe]  ;;  %v894_v52 = vpack.c.b16 %v322_v38, %v320_v37  ;;  %v442_v58 = vunpack.c.l.b16 %v2435_v48 }
  0x18   : > { %v681_v44 = vunpack.c.l.b16 %v416_v33  ;;  %v2432_v47 = vld [vmem:[%s2351_s10 + $0x8] sm:$0xf]  ;;  %v241_v51 = vld [vmem:[%s2351_s10 + $0x18] sm:$0xe]  ;;  %v876_v55 = vpack.c.b16 %v314_v42, %v312_v41  ;;  %v2143_v60 = vld [vmem:[%s3018_s1 + $0xc0] sm:$0xff]  ;;  %v319_v61 = vunpack.c.l.b16 %v2438_v49  ;;  %v402_v62 = vunpack.c.l.b16 %v240_v50 }
  0x19   : > { %2217 = vmatpush.bf16.msra.mxu1 %v2123_v9  ;;  %1383 = vmatpush.bf16.msra.mxu0 %v2123_v9  ;;  %v2158_v53 = vld [vmem:[%s3018_s1 + $0x138] sm:$0xff]  ;;  %v440_v57 = vunpack.c.l.b16 %v2432_v47  ;;  %v403_v63 = vunpack.c.l.b16 %v241_v51  ;;  %v2133_v0 = vld [vmem:[%s3018_s1 + $0x70] sm:$0xff]  ;;  %v2474_v4 = vld [vmem:[%s2351_s10 + $0xc] sm:$0x1] }
  0x1a   : > { %1441 = vmatpush.bf16.msra.mxu2 %v2139_v10  ;;  %v2174_v54 = vld [vmem:[%s3018_s1 + $0x1b8] sm:$0xff]  ;;  %v878_v59 = vpack.c.b16 %v687_v45, %v681_v44  ;;  %v2157_v2 = vld [vmem:[%s3018_s1 + $0x130] sm:$0xff]  ;;  %v410_v7 = vpack.c.b16 %v317_v56, %v402_v62  ;;  %v2132_v9 = vld [vmem:[%s3018_s1 + $0x68] sm:$0xff]  ;;  %v441_v14 = vunpack.c.l.b16 %v2474_v4 }
  0x1b   : > { %1470 = vmatpush.bf16.msra.mxu3 %v2147_v15  ;;  %v2182_v1 = vld [vmem:[%s3018_s1 + $0x1f8] sm:$0xff]  ;;  %v2173_v3 = vld [vmem:[%s3018_s1 + $0x1b0] sm:$0xff]  ;;  %v879_v6 = vpack.c.b16 %v442_v58, %v440_v57  ;;  %v411_v8 = vpack.c.b16 %v319_v61, %v403_v63  ;;  %v2156_v13 = vld [vmem:[%s3018_s1 + $0x128] sm:$0xff] }
  0x1c   : > { %v2477_v5 = vld [vmem:[%s2351_s10 + $0x14] sm:$0x1]  ;;  %v2498_v19 = vld [vmem:[%s2351_s10 + $0x30] sm:$0xf]  ;;  %v2501_v20 = vld [vmem:[%s2351_s10 + $0x38] sm:$0xf]  ;;  %v2530_v12 = vpack.c.b16 %v441_v14, %v440_v57 }
  0x1d   : > { %2218 = vmatpush.bf16.msra.mxu1 %v2122_v16  ;;  %1384 = vmatpush.bf16.msra.mxu0 %v2122_v16  ;;  %v2181_v10 = vld [vmem:[%s3018_s1 + $0x1f0] sm:$0xff]  ;;  %v443_v15 = vunpack.c.l.b16 %v2477_v5  ;;  %v2172_v16 = vld [vmem:[%s3018_s1 + $0x1a8] sm:$0xff]  ;;  %v418_v24 = vrot.slane %v410_v7, 1  ;;  %v419_v25 = vrot.slane %v411_v8, 1  ;;  %v2131_v11 = vld [vmem:[%s3018_s1 + $0x60] sm:$0xff]  ;;  %v324_v33 = vunpack.c.l.b16 %v2498_v19 }
  0x1e   : > { %1442 = vmatpush.bf16.msra.mxu2 %v2138_v21  ;;  %v2505_v21 = vpack.c.b16 %v313_v17, %v312_v41  ;;  %v2180_v17 = vld [vmem:[%s3018_s1 + $0x1e8] sm:$0xff]  ;;  %v2171_v30 = vld [vmem:[%s3018_s1 + $0x1a0] sm:$0xff]  ;;  %v326_v34 = vunpack.c.l.b16 %v2501_v20  ;;  %v2130_v45 = vld [vmem:[%s3018_s1 + $0x58] sm:$0xff]  ;;  %v467_v51 = vshll.u32 %v2530_v12, 16  ;;  %v465_v7 = vshrl.u32 %v2530_v12, 16 }
  0x1f   : > { %1471 = vmatpush.bf16.msra.mxu3 %v2146_v22  ;;  %v2508_v22 = vld [vmem:[%s2351_s10 + $0x10] sm:$0xf]  ;;  %v2543_v32 = vld [vmem:[%s2351_s10 + $0x2c] sm:$0x1]  ;;  %v699_v41 = vunpack.c.l.b16 %v419_v25  ;;  %v242_v47 = vld [vmem:[%s2351_s10 + $0x20] sm:$0xe] }
  0x20   : > { %v243_v48 = vld [vmem:[%s2351_s10 + $0x28] sm:$0xe]  ;;  %v404_v62 = vunpack.c.l.b16 %v242_v47  ;;  %v469_v8 = vrot.slane %v467_v51, 1  ;;  %v2596_v25 = vld [vmem:[%s2351_s10 + $0x24] sm:$0x1]  ;;  %v2178_v47 = vld [vmem:[%s3018_s1 + $0x1d8] sm:$0xff] }
  0x21   : > { %2219 = vmatpush.bf16.msra.mxu1 %v2121_v23  ;;  %1385 = vmatpush.bf16.msra.mxu0 %v2121_v23  ;;  %v2511_v23 = vld [vmem:[%s2351_s10 + $0x18] sm:$0xf]  ;;  %v405_v63 = vunpack.c.l.b16 %v243_v48  ;;  %v2152_v12 = vld [vmem:[%s3018_s1 + $0x108] sm:$0xff]  ;;  %v2151_v49 = vld [vmem:[%s3018_s1 + $0x100] sm:$0xff] }
  0x22   : > { %1443 = vmatpush.bf16.msra.mxu2 %v2137_v26  ;;  %v2517_v26 = vpack.c.b16 %v315_v18, %v314_v42  ;;  %v2534_v18 = vpack.c.b16 %v443_v15, %v442_v58  ;;  %v2551_v42 = vld [vmem:[%s2351_s10 + $0x18] sm:$0xf]  ;;  %v2747_v29 = vld [vmem:[%s3018_s1 + $0x220] sm:$0xff]  ;;  %v2184_v19 = vld [vmem:[%s3018_s1 + $0x208] sm:$0xff] }
  0x23   : > { %1472 = vmatpush.bf16.msra.mxu3 %v2145_v31  ;;  %v2540_v31 = vld [vmem:[%s2351_s10 + $0x24] sm:$0x1]  ;;  %v444_v57 = vunpack.c.l.b16 %v2551_v42 }
  0x24   : > { %v346_v44 = vshll.u32 %v2517_v26, 16  ;;  %v321_v50 = vunpack.c.l.b16 %v2540_v31  ;;  %v2176_v31 = vld [vmem:[%s3018_s1 + $0x1c8] sm:$0xff] }
  0x25   : > { %2220 = vmatpush.bf16.msra.mxu1 %v2120_v27  ;;  %1386 = vmatpush.bf16.msra.mxu0 %v2120_v27  ;;  %v2155_v27 = vld [vmem:[%s3018_s1 + $0x120] sm:$0xff] }
  0x26   : > { %1444 = vmatpush.bf16.msra.mxu2 %v2136_v35  ;;  %v316_v35 = vunpack.c.l.b16 %v2508_v22 }
  0x27   : > { %1473 = vmatpush.bf16.msra.mxu3 %v2144_v43  ;;  %v2554_v43 = vld [vmem:[%s2351_s10 + $0x20] sm:$0xf] }
  0x28   : > { %v446_v58 = vunpack.c.l.b16 %v2554_v43  ;;  %v447_v43 = vunpack.c.l.b16 %v2596_v25  ;;  %v2623_v48 = vpack.c.b16 %v317_v56, %v316_v35  ;;  %v2166_v56 = vld [vmem:[%s3018_s1 + $0x178] sm:$0xff] }
  0x29   : > { %2221 = vmatpush.bf16.msra.mxu1 %v2119_v36  ;;  %1387 = vmatpush.bf16.msra.mxu0 %v2119_v36  ;;  %v318_v36 = vunpack.c.l.b16 %v2511_v23 }
  0x2a   : > { %1445 = vmatpush.bf16.msra.mxu2 %v2135_v40  ;;  %v693_v40 = vunpack.c.l.b16 %v418_v24  ;;  %v2593_v24 = vld [vmem:[%s2351_s10 + $0x1c] sm:$0x1] }
  0x2b   : > { %1474 = vmatpush.bf16.msra.mxu3 %v2143_v60  ;;  %v445_v42 = vunpack.c.l.b16 %v2593_v24  ;;  %v2629_v51 = vpack.c.b16 %v319_v61, %v318_v36 }
  0x2c   : > { %1398 = vmatmul.bf16.vlgmr.msra.gmra.mxu1 %v894_v52  ;;  %1388 = vmatmul.bf16.vlgmr.msra.gmra.mxu0 %v876_v55  ;;  %v474_v52 = vshll.u32 %v2534_v18, 16  ;;  %v885_v55 = vpack.c.b16 %v318_v36, %v316_v35  ;;  %v887_v60 = vpack.c.b16 %v699_v41, %v693_v40  ;;  %v2169_v41 = vld [vmem:[%s3018_s1 + $0x190] sm:$0xff] }
  0x2d   : > { %1409 = vmatpush.bf16.msrb.mxu1 %v2134_v39  ;;  %1496 = vmatpush.bf16.msrb.mxu0 %v2158_v53  ;;  %v339_v39 = vshll.u32 %v2505_v21, 16  ;;  %v2154_v53 = vld [vmem:[%s3018_s1 + $0x118] sm:$0xff]  ;;  %v2641_v35 = vld [vmem:[%s2351_s10 + $0x34] sm:$0x1]  ;;  %v2645_v36 = vpack.c.b16 %v445_v42, %v444_v57 }
  0x2e   : > { %1554 = vmatpush.bf16.msrb.mxu2 %v2174_v54  ;;  %1475 = vmatmul.bf16.vlgmr.msra.gmra.mxu3 %v879_v6  ;;  %v903_v54 = vpack.c.b16 %v326_v34, %v324_v33  ;;  %v2129_v6 = vld [vmem:[%s3018_s1 + $0x50] sm:$0xff] }
  0x2f   : > { %1446 = vmatmul.bf16.vlgmr.msra.gmra.mxu2 %v878_v59  ;;  %1583 = vmatpush.bf16.msrb.mxu3 %v2182_v1  ;;  %v323_v59 = vunpack.c.l.b16 %v2543_v32  ;;  %v341_v1 = vrot.slane %v339_v39, 1  ;;  %v470_v39 = vor.u32 %v469_v8, %v465_v7  ;;  %v2165_v8 = vld [vmem:[%s3018_s1 + $0x170] sm:$0xff] }
  0x31   : > { %1410 = vmatpush.bf16.msrb.mxu1 %v2133_v0  ;;  %1497 = vmatpush.bf16.msrb.mxu0 %v2157_v2  ;;  %v337_v0 = vshrl.u32 %v2505_v21, 16  ;;  %v344_v2 = vshrl.u32 %v2517_v26, 16  ;;  %v2170_v21 = vld [vmem:[%s3018_s1 + $0x198] sm:$0xff]  ;;  %v412_v26 = vpack.c.b16 %v321_v50, %v404_v62  ;;  %v682_v61 = vunpack.c.l.b16 %v470_v39 }
  0x32   : > { %1555 = vmatpush.bf16.msrb.mxu2 %v2173_v3  ;;  %v348_v3 = vrot.slane %v346_v44, 1 }
  0x33   : > { %1584 = vmatpush.bf16.msrb.mxu3 %v2181_v10  ;;  %v476_v10 = vrot.slane %v474_v52, 1  ;;  %v420_v44 = vrot.slane %v412_v26, 1  ;;  %v2127_v52 = vld [vmem:[%s3018_s1 + $0x40] sm:$0xff] }
  0x35   : > { %1411 = vmatpush.bf16.msrb.mxu1 %v2132_v9  ;;  %1498 = vmatpush.bf16.msrb.mxu0 %v2156_v13  ;;  %v472_v9 = vshrl.u32 %v2534_v18, 16  ;;  %v2153_v13 = vld [vmem:[%s3018_s1 + $0x110] sm:$0xff]  ;;  %v342_v18 = vor.u32 %v341_v1, %v337_v0 }
  0x36   : > { %1556 = vmatpush.bf16.msrb.mxu2 %v2172_v16  ;;  %v888_v16 = vpack.c.b16 %v446_v58, %v444_v57  ;;  %v2663_v0 = vld [vmem:[%s2351_s10 + $0x30] sm:$0xf]  ;;  %v353_v57 = vshll.u32 %v2623_v48, 16 }
  0x37   : > { %1585 = vmatpush.bf16.msrb.mxu3 %v2180_v17  ;;  %v2128_v17 = vld [vmem:[%s3018_s1 + $0x48] sm:$0xff]  ;;  %v477_v40 = vor.u32 %v476_v10, %v472_v9  ;;  %v680_v22 = vunpack.c.l.b16 %v342_v18  ;;  %v244_v1 = vld [vmem:[%s2351_s10 + $0x30] sm:$0xe]  ;;  %v450_v10 = vunpack.c.l.b16 %v2663_v0  ;;  %v2725_v0 = vpack.c.b16 %v321_v50, %v320_v37  ;;  %v2739_v37 = vld [vmem:[%s2351_s10 + $0x1c] sm:$0x1] }
  0x38   : > { %v355_v18 = vrot.slane %v353_v57, 1  ;;  %v1796_v57 = vld [vmem:[%s2351_s10 + $0x8] sm:$0xe]  ;;  %v2758_v50 = vld [vmem:[%s2351_s10 + $0x10] sm:$0xf] }
  0x39   : > { %1412 = vmatpush.bf16.msrb.mxu1 %v2131_v11  ;;  %1499 = vmatpush.bf16.msrb.mxu0 %v2155_v27  ;;  %v413_v11 = vpack.c.b16 %v323_v59, %v405_v63  ;;  %v2179_v27 = vld [vmem:[%s3018_s1 + $0x1e0] sm:$0xff]  ;;  %v688_v23 = vunpack.c.l.b16 %v477_v40  ;;  %v2660_v63 = vld [vmem:[%s2351_s10 + $0x28] sm:$0xf] }
  0x3a   : > { %1557 = vmatpush.bf16.msrb.mxu2 %v2171_v30  ;;  %v349_v30 = vor.u32 %v348_v3, %v344_v2  ;;  %v245_v2 = vld [vmem:[%s2351_s10 + $0x38] sm:$0xe]  ;;  %v325_v3 = vunpack.c.l.b16 %v2641_v35  ;;  %v448_v9 = vunpack.c.l.b16 %v2660_v63  ;;  %v2164_v40 = vld [vmem:[%s3018_s1 + $0x168] sm:$0xff]  ;;  %v2163_v63 = vld [vmem:[%s3018_s1 + $0x160] sm:$0xff] }
  0x3b   : > { %1586 = vmatpush.bf16.msrb.mxu3 %v2179_v27  ;;  %v880_v7 = vpack.c.b16 %v688_v23, %v682_v61  ;;  %v2682_v27 = vld [vmem:[%s3018_s1 + $0x230] sm:$0xff]  ;;  %v2167_v23 = vld [vmem:[%s3018_s1 + $0x180] sm:$0xff] }
  0x3c   : > { %1403 = vmatmul.bf16.gmra.mxu1 %v903_v54  ;;  %1393 = vmatmul.bf16.gmra.mxu0 %v885_v55  ;;  %v686_v46 = vunpack.c.l.b16 %v349_v30  ;;  %v2654_v54 = vld [vmem:[%s3018_s1 + $0x238] sm:$0xff]  ;;  %v358_v30 = vshrl.u32 %v2629_v51, 16 }
  0x3d   : > { %1413 = vmatpush.bf16.msrb.mxu1 %v2130_v45  ;;  %1500 = vmatpush.bf16.msrb.mxu0 %v2154_v53  ;;  %v421_v45 = vrot.slane %v413_v11, 1  ;;  %v2649_v53 = vpack.c.b16 %v447_v43, %v446_v58  ;;  %v2657_v55 = vld [vmem:[%s2351_s10 + $0x3c] sm:$0x1]  ;;  %v360_v58 = vshll.u32 %v2629_v51, 16  ;;  %v406_v11 = vunpack.c.l.b16 %v244_v1 }
  0x3e   : > { %1558 = vmatpush.bf16.msrb.mxu2 %v2170_v21  ;;  %1480 = vmatmul.bf16.gmra.mxu3 %v888_v16  ;;  %v327_v21 = vunpack.c.l.b16 %v2657_v55 }
  0x3f   : > { %1451 = vmatmul.bf16.gmra.mxu2 %v887_v60  ;;  %v705_v60 = vunpack.c.l.b16 %v420_v44  ;;  %v711_v62 = vunpack.c.l.b16 %v421_v45  ;;  %1587 = vmatpush.bf16.msrb.mxu3 %v2178_v47  ;;  %v488_v16 = vshll.u32 %v2649_v53, 16  ;;  %v362_v39 = vrot.slane %v360_v58, 1  ;;  %v2693_v44 = vld [vmem:[%s2351_s10 + $0x34] sm:$0x1]  ;;  %v2168_v47 = vld [vmem:[%s3018_s1 + $0x188] sm:$0xff] }
  0x40   : > { %v479_v45 = vshrl.u32 %v2645_v36, 16  ;;  %v451_v61 = vunpack.c.l.b16 %v2693_v44 }
  0x41   : > { %1414 = vmatpush.bf16.msrb.mxu1 %v2129_v6  ;;  %1501 = vmatpush.bf16.msrb.mxu0 %v2153_v13  ;;  %v877_v6 = vpack.c.b16 %v686_v46, %v680_v22  ;;  %v481_v13 = vshll.u32 %v2645_v36, 16  ;;  %v896_v26 = vpack.c.b16 %v711_v62, %v705_v60  ;;  %v490_v22 = vrot.slane %v488_v16, 1  ;;  %v2177_v36 = vld [vmem:[%s3018_s1 + $0x1d0] sm:$0xff] }
  0x42   : > { %1559 = vmatpush.bf16.msrb.mxu2 %v2169_v41  ;;  %v2690_v41 = vld [vmem:[%s2351_s10 + $0x2c] sm:$0x1]  ;;  %v414_v46 = vpack.c.b16 %v325_v3, %v406_v11  ;;  %v363_v62 = vor.u32 %v362_v39, %v358_v30  ;;  %v2755_v32 = vpack.c.b16 %v451_v61, %v450_v10 }
  0x43   : > { %v483_v51 = vrot.slane %v481_v13, 1  ;;  %1588 = vmatpush.bf16.msrb.mxu3 %v2177_v36  ;;  %v2161_v36 = vld [vmem:[%s3018_s1 + $0x150] sm:$0xff] }
  0x44   : > { %v698_v16 = vunpack.c.l.b16 %v363_v62 }
  0x45   : > { %1415 = vmatpush.bf16.msrb.mxu1 %v2128_v17  ;;  %1502 = vmatpush.bf16.msrb.mxu0 %v2152_v12  ;;  %v407_v17 = vunpack.c.l.b16 %v245_v2  ;;  %v351_v12 = vshrl.u32 %v2623_v48, 16  ;;  %v897_v48 = vpack.c.b16 %v450_v10, %v448_v9  ;;  %v484_v58 = vor.u32 %v483_v51, %v479_v45  ;;  %v2729_v2 = vld [vmem:[%s2351_s10 + $0x14] sm:$0x1]  ;;  %v2773_v45 = vld [vmem:[%s2351_s10 + $0x38] sm:$0xf] }
  0x46   : > { %1560 = vmatpush.bf16.msrb.mxu2 %v2168_v47  ;;  %v569_v11 = vunpack.c.l.b16 %v2729_v2  ;;  %v2776_v47 = vld [vmem:[%s2351_s10 + $0x40] sm:$0xf]  ;;  %v452_v4 = vunpack.c.l.b16 %v2773_v45 }
  0x47   : > { %v356_v60 = vor.u32 %v355_v18, %v351_v12  ;;  %v694_v10 = vunpack.c.l.b16 %v484_v58  ;;  %v367_v12 = vshll.u32 %v2725_v0, 16  ;;  %v571_v18 = vunpack.c.l.b16 %v2739_v37  ;;  %1589 = vmatpush.bf16.msrb.mxu3 %v2176_v31 }
  0x49   : > { %1416 = vmatpush.bf16.msrb.mxu1 %v2127_v52  ;;  %1503 = vmatpush.bf16.msrb.mxu0 %v2151_v49  ;;  %v486_v52 = vshrl.u32 %v2649_v53, 16  ;;  %v449_v49 = vunpack.c.l.b16 %v2690_v41  ;;  %v2716_v53 = vld [vmem:[%s3018_s1 + $0x228] sm:$0xff]  ;;  %v692_v13 = vunpack.c.l.b16 %v356_v60 }
  0x4a   : > { %1561 = vmatpush.bf16.msrb.mxu2 %v2167_v23  ;;  %v365_v23 = vshrl.u32 %v2725_v0, 16 }
  0x4b   : > { %v491_v1 = vor.u32 %v490_v22, %v486_v52  ;;  %v502_v52 = vshll.u32 %v2755_v32, 16 }
  0x4c   : > { %1417 = vmatmul.bf16.vlgmr.msrb.gmra.mxu1 %v877_v6  ;;  %1504 = vmatmul.bf16.vlgmr.msrb.gmra.mxu0 %v880_v7  ;;  %v2735_v6 = vpack.c.b16 %v323_v59, %v322_v38  ;;  %v422_v7 = vrot.slane %v414_v46, 1  ;;  %v2751_v38 = vpack.c.b16 %v449_v49, %v448_v9  ;;  %v1797_v59 = vld [vmem:[%s2351_s10 + $0x10] sm:$0xe]  ;;  %v2765_v9 = vld [vmem:[%s2351_s10 + $0x18] sm:$0xf] }
  0x4d   : > { %1525 = vmatpush.bf16.msra.mxu1 %v2166_v56  ;;  %1612 = vmatpush.bf16.msra.mxu0 %v2654_v54  ;;  %v415_v56 = vpack.c.b16 %v327_v21, %v407_v17  ;;  %v700_v17 = vunpack.c.l.b16 %v491_v1  ;;  %v570_v22 = vunpack.c.l.b16 %v2765_v9  ;;  %v504_v31 = vrot.slane %v502_v52, 1 }
  0x4e   : > { %1485 = vmatmul.bf16.gmra.mxu3 %v897_v48  ;;  %2222 = vmatpush.bf16.msra.mxu2 %v2654_v54  ;;  %v717_v30 = vunpack.c.l.b16 %v422_v7  ;;  %v568_v48 = vunpack.c.l.b16 %v2758_v50  ;;  %v529_v54 = vunpack.c.l.b16 %v1797_v59  ;;  %v495_v51 = vshll.u32 %v2751_v38, 16  ;;  %v2804_v59 = vld [vmem:[%s2351_s10 + $0x3c] sm:$0x1]  ;;  %v2183_v50 = vld [vmem:[%s3018_s1 + $0x200] sm:$0xff] }
  0x4f   : > { %1456 = vmatmul.bf16.gmra.mxu2 %v896_v26  ;;  %v423_v28 = vrot.slane %v415_v56, 1  ;;  %v2162_v26 = vld [vmem:[%s3018_s1 + $0x158] sm:$0xff]  ;;  %v886_v56 = vpack.c.b16 %v698_v16, %v692_v13  ;;  %v889_v62 = vpack.c.b16 %v700_v17, %v694_v10  ;;  %v372_v58 = vshrl.u32 %v2735_v6, 16 }
  0x50   : > { %v584_v60 = vpack.c.b16 %v569_v11, %v568_v48  ;;  %v493_v7 = vshrl.u32 %v2751_v38, 16  ;;  %v537_v16 = vpack.c.b16 %v443_v15, %v529_v54  ;;  %v2160_v38 = vld [vmem:[%s3018_s1 + $0x148] sm:$0xff]  ;;  %v2186_v10 = vld [vmem:[%s3018_s1 + $0x218] sm:$0xff]  ;;  %v2159_v54 = vld [vmem:[%s3018_s1 + $0x140] sm:$0xff] }
  0x51   : > { %1526 = vmatpush.bf16.msra.mxu1 %v2165_v8  ;;  %1613 = vmatpush.bf16.msra.mxu0 %v2682_v27  ;;  %v528_v8 = vunpack.c.l.b16 %v1796_v57  ;;  %v723_v39 = vunpack.c.l.b16 %v423_v28  ;;  %v369_v57 = vrot.slane %v367_v12, 1  ;;  %v497_v28 = vrot.slane %v495_v51, 1 }
  0x52   : > { %2223 = vmatpush.bf16.msra.mxu2 %v2682_v27  ;;  %v500_v27 = vshrl.u32 %v2755_v32, 16  ;;  %v595_v13 = vshll.u32 %v584_v60, 16  ;;  %v2175_v32 = vld [vmem:[%s3018_s1 + $0x1c0] sm:$0xff]  ;;  %v593_v45 = vshrl.u32 %v584_v60, 16 }
  0x53   : > { %v536_v46 = vpack.c.b16 %v441_v14, %v528_v8  ;;  %v454_v14 = vunpack.c.l.b16 %v2776_v47  ;;  %v905_v0 = vpack.c.b16 %v723_v39, %v717_v30  ;;  %v2807_v8 = vld [vmem:[%s2351_s10 + $0x44] sm:$0x1]  ;;  %v498_v17 = vor.u32 %v497_v28, %v493_v7  ;;  %1590 = vmatpush.bf16.msrb.mxu3 %v2175_v32  ;;  %v2185_v30 = vld [vmem:[%s3018_s1 + $0x210] sm:$0xff] }
  0x54   : > { %v505_v12 = vor.u32 %v504_v31, %v500_v27  ;;  %v453_v39 = vunpack.c.l.b16 %v2804_v59  ;;  %v597_v47 = vrot.slane %v595_v13, 1  ;;  %v2841_v60 = vld [vmem:[%s2351_s10 + $0x24] sm:$0x1] }
  0x55   : > { %1527 = vmatpush.bf16.msra.mxu1 %v2164_v40  ;;  %1614 = vmatpush.bf16.msra.mxu0 %v2716_v53  ;;  %v374_v40 = vshll.u32 %v2735_v6, 16  ;;  %v906_v6 = vpack.c.b16 %v454_v14, %v452_v4  ;;  %v544_v5 = vrot.slane %v536_v46, 1  ;;  %v545_v46 = vrot.slane %v537_v16, 1 }
  0x56   : > { %2224 = vmatpush.bf16.msra.mxu2 %v2716_v53  ;;  %v370_v53 = vor.u32 %v369_v57, %v365_v23  ;;  %v334_v23 = vpack.c.b16 %v325_v3, %v324_v33  ;;  %v462_v20 = vpack.c.b16 %v453_v39, %v452_v4  ;;  %v598_v55 = vor.u32 %v597_v47, %v593_v45  ;;  %v2856_v3 = vld [vmem:[%s2351_s10 + $0x20] sm:$0xf] }
  0x57   : > { %v376_v1 = vrot.slane %v374_v40, 1  ;;  %v455_v40 = vunpack.c.l.b16 %v2807_v8  ;;  %v2849_v35 = vunpack.c.l.b16 %v545_v46 }
  0x58   : > { %v381_v4 = vshll.u32 %v334_v23, 16  ;;  %v509_v16 = vshll.u32 %v462_v20, 16 }
  0x59   : > { %1528 = vmatpush.bf16.msra.mxu1 %v2163_v63  ;;  %1615 = vmatpush.bf16.msra.mxu0 %v2747_v29  ;;  %v585_v63 = vpack.c.b16 %v571_v18, %v570_v22  ;;  %v377_v15 = vor.u32 %v376_v1, %v372_v58  ;;  %v463_v33 = vpack.c.b16 %v455_v40, %v454_v14  ;;  %v573_v58 = vunpack.c.l.b16 %v2841_v60 }
  0x5a   : > { %2225 = vmatpush.bf16.msra.mxu2 %v2747_v29  ;;  %v2844_v29 = vld [vmem:[%s2351_s10 + $0x2c] sm:$0x1]  ;;  %v572_v14 = vunpack.c.l.b16 %v2856_v3  ;;  %v511_v45 = vrot.slane %v509_v16, 1  ;;  %v1820_v16 = vld [vmem:[%s2351_s10 + $0x10] sm:$0xe] }
  0x5b   : > { %v600_v51 = vshrl.u32 %v585_v63, 16  ;;  %v575_v1 = vunpack.c.l.b16 %v2844_v29  ;;  %v514_v47 = vshrl.u32 %v463_v33, 16 }
  0x5c   : > { %1422 = vmatmul.bf16.gmra.mxu1 %v886_v56  ;;  %1509 = vmatmul.bf16.gmra.mxu0 %v889_v62  ;;  %v2830_v56 = vunpack.c.l.b16 %v544_v5  ;;  %v704_v62 = vunpack.c.l.b16 %v370_v53  ;;  %v882_v53 = vpack.c.b16 %v570_v22, %v568_v48  ;;  %v379_v5 = vshrl.u32 %v334_v23, 16 }
  0x5d   : > { %1529 = vmatpush.bf16.msra.mxu1 %v2162_v26  ;;  %v602_v26 = vshll.u32 %v585_v63, 16  ;;  %1616 = vmatpush.bf16.msra.mxu0 %v2186_v10  ;;  %v710_v63 = vunpack.c.l.b16 %v377_v15  ;;  %v383_v15 = vrot.slane %v381_v4, 1  ;;  %v1808_v4 = vld [vmem:[%s2351_s10 + $0x30] sm:$0xf] }
  0x5e   : > { %1490 = vmatmul.bf16.gmra.mxu3 %v906_v6  ;;  %2226 = vmatpush.bf16.msra.mxu2 %v2186_v10  ;;  %v881_v7 = vpack.c.b16 %v2849_v35, %v2830_v56  ;;  %v516_v6 = vshll.u32 %v463_v33, 16 }
  0x5f   : > { %1461 = vmatmul.bf16.gmra.mxu2 %v905_v0  ;;  %v604_v52 = vrot.slane %v602_v26, 1  ;;  %v706_v0 = vunpack.c.l.b16 %v498_v17  ;;  %v895_v31 = vpack.c.b16 %v710_v63, %v704_v62  ;;  %v586_v26 = vpack.c.b16 %v573_v58, %v572_v14 }
  0x60   : > { %v384_v22 = vor.u32 %v383_v15, %v379_v5  ;;  %v656_v15 = vunpack.c.l.b16 %v1820_v16 }
  0x61   : > { %1530 = vmatpush.bf16.msra.mxu1 %v2161_v36  ;;  %v335_v36 = vpack.c.b16 %v327_v21, %v326_v34  ;;  %1617 = vmatpush.bf16.msra.mxu0 %v2185_v30  ;;  %v712_v34 = vunpack.c.l.b16 %v505_v12  ;;  %v2859_v21 = vld [vmem:[%s2351_s10 + $0x28] sm:$0xf]  ;;  %v605_v57 = vor.u32 %v604_v52, %v600_v51  ;;  %v609_v9 = vshll.u32 %v586_v26, 16 }
  0x62   : > { %v574_v27 = vunpack.c.l.b16 %v2859_v21  ;;  %2227 = vmatpush.bf16.msra.mxu2 %v2185_v30  ;;  %v507_v30 = vshrl.u32 %v462_v20, 16  ;;  %v2886_v20 = vld [vmem:[%s2351_s10 + $0x3c] sm:$0x1]  ;;  %v716_v33 = vunpack.c.l.b16 %v384_v22 }
  0x63   : > { %v388_v28 = vshll.u32 %v335_v36, 16  ;;  %v898_v13 = vpack.c.b16 %v712_v34, %v706_v0  ;;  %v690_v32 = vunpack.c.l.b16 %v605_v57  ;;  %v386_v17 = vshrl.u32 %v335_v36, 16 }
  0x64   : > { %v587_v10 = vpack.c.b16 %v575_v1, %v574_v27  ;;  %v512_v46 = vor.u32 %v511_v45, %v507_v30  ;;  %v607_v36 = vshrl.u32 %v586_v26, 16  ;;  %v611_v62 = vrot.slane %v609_v9, 1 }
  0x65   : > { %1531 = vmatpush.bf16.msra.mxu1 %v2160_v38  ;;  %1618 = vmatpush.bf16.msra.mxu0 %v2184_v19  ;;  %v684_v38 = vunpack.c.l.b16 %v598_v55  ;;  %v390_v12 = vrot.slane %v388_v28, 1  ;;  %v1809_v28 = vld [vmem:[%s2351_s10 + $0x38] sm:$0xf]  ;;  %v576_v26 = vunpack.c.l.b16 %v1808_v4 }
  0x66   : > { %2228 = vmatpush.bf16.msra.mxu2 %v2184_v19  ;;  %v616_v48 = vshll.u32 %v587_v10, 16  ;;  %v614_v63 = vshrl.u32 %v587_v10, 16  ;;  %v2883_v19 = vld [vmem:[%s2351_s10 + $0x34] sm:$0x1]  ;;  %v718_v55 = vunpack.c.l.b16 %v512_v46  ;;  %v578_v10 = vunpack.c.l.b16 %v1809_v28 }
  0x67   : > { %v883_v51 = vpack.c.b16 %v690_v32, %v684_v38  ;;  %v391_v52 = vor.u32 %v390_v12, %v386_v17  ;;  %v577_v38 = vunpack.c.l.b16 %v2883_v19  ;;  %v579_v32 = vunpack.c.l.b16 %v2886_v20 }
  0x68   : > { %v618_v0 = vrot.slane %v616_v48, 1 }
  0x69   : > { %1532 = vmatpush.bf16.msra.mxu1 %v2159_v54  ;;  %v518_v54 = vrot.slane %v516_v6, 1  ;;  %1619 = vmatpush.bf16.msra.mxu0 %v2183_v50  ;;  %v722_v34 = vunpack.c.l.b16 %v391_v52  ;;  %v1821_v6 = vld [vmem:[%s2351_s10 + $0x18] sm:$0xe]  ;;  %v588_v45 = vpack.c.b16 %v577_v38, %v576_v26 }
  0x6a   : > { %2229 = vmatpush.bf16.msra.mxu2 %v2183_v50  ;;  %v657_v17 = vunpack.c.l.b16 %v1821_v6 }
  0x6b   : > { %v519_v23 = vor.u32 %v518_v54, %v514_v47  ;;  %v589_v47 = vpack.c.b16 %v579_v32, %v578_v10  ;;  %v891_v54 = vpack.c.b16 %v574_v27, %v572_v14  ;;  %v623_v48 = vshll.u32 %v588_v45, 16  ;;  %v2910_v27 = vld [vmem:[%s2351_s10 + $0x4c] sm:$0x1] }
  0x6c   : > { %1427 = vmatmul.bf16.gmra.mxu1 %v895_v31  ;;  %1514 = vmatmul.bf16.gmra.mxu0 %v898_v13  ;;  %v612_v31 = vor.u32 %v611_v62, %v607_v36  ;;  %v619_v13 = vor.u32 %v618_v0, %v614_v63  ;;  %v665_v50 = vpack.c.b16 %v571_v18, %v657_v17  ;;  %v621_v2 = vshrl.u32 %v588_v45, 16  ;;  %v2907_v18 = vld [vmem:[%s2351_s10 + $0x44] sm:$0x1]  ;;  %v2914_v36 = vld [vmem:[%s2351_s10 + $0x40] sm:$0xf] }
  0x6d   : > { %v724_v57 = vunpack.c.l.b16 %v519_v23  ;;  %v630_v22 = vshll.u32 %v589_v47, 16  ;;  %v628_v37 = vshrl.u32 %v589_v47, 16  ;;  %v1798_v23 = vld [vmem:[%s2351_s10 + $0x18] sm:$0xe]  ;;  %v1811_v62 = vld [vmem:[%s2351_s10 + $0x48] sm:$0xf]  ;;  %v583_v4 = vunpack.c.l.b16 %v2910_v27 }
  0x6e   : > { %1591 = vmatmul.bf16.vlgmr.msrb.gmra.mxu3 %v883_v51  ;;  %v696_v12 = vunpack.c.l.b16 %v612_v31  ;;  %v702_v30 = vunpack.c.l.b16 %v619_v13  ;;  %v664_v51 = vpack.c.b16 %v569_v11, %v656_v15  ;;  %v673_v21 = vrot.slane %v665_v50, 1  ;;  %v1799_v63 = vld [vmem:[%s2351_s10 + $0x20] sm:$0xe] }
  0x6f   : > { %1562 = vmatmul.bf16.vlgmr.msrb.gmra.mxu2 %v882_v53  ;;  %v904_v53 = vpack.c.b16 %v722_v34, %v716_v33  ;;  %v907_v5 = vpack.c.b16 %v724_v57, %v718_v55  ;;  %v625_v11 = vrot.slane %v623_v48, 1  ;;  %v632_v14 = vrot.slane %v630_v22, 1  ;;  %v1822_v34 = vld [vmem:[%s2351_s10 + $0x20] sm:$0xe]  ;;  %v1823_v55 = vld [vmem:[%s2351_s10 + $0x28] sm:$0xe] }
  0x70   : > { %v892_v9 = vpack.c.b16 %v702_v30, %v696_v12  ;;  %v672_v3 = vrot.slane %v664_v51, 1  ;;  %v691_v46 = vunpack.c.l.b16 %v673_v21  ;;  %v581_v57 = vunpack.c.l.b16 %v2907_v18  ;;  %v1800_v22 = vld [vmem:[%s2351_s10 + $0x28] sm:$0xe] }
  0x71   : > { %v626_v0 = vor.u32 %v625_v11, %v621_v2  ;;  %v633_v33 = vor.u32 %v632_v14, %v628_v37  ;;  %v530_v28 = vunpack.c.l.b16 %v1798_v23  ;;  %v580_v31 = vunpack.c.l.b16 %v2914_v36  ;;  %v1824_v11 = vld [vmem:[%s2351_s10 + $0x30] sm:$0xe]  ;;  %v1825_v37 = vld [vmem:[%s2351_s10 + $0x38] sm:$0xe]  ;;  %v1826_v14 = vld [vmem:[%s2351_s10 + $0x40] sm:$0xe] }
  0x72   : > { %v685_v52 = vunpack.c.l.b16 %v672_v3  ;;  %v582_v13 = vunpack.c.l.b16 %v1811_v62  ;;  %v531_v6 = vunpack.c.l.b16 %v1799_v63  ;;  %v900_v45 = vpack.c.b16 %v578_v10, %v576_v26  ;;  %v1801_v3 = vld [vmem:[%s2351_s10 + $0x30] sm:$0xe] }
  0x73   : > { %v708_v15 = vunpack.c.l.b16 %v626_v0  ;;  %v714_v17 = vunpack.c.l.b16 %v633_v33  ;;  %v590_v12 = vpack.c.b16 %v581_v57, %v580_v31  ;;  %v538_v47 = vpack.c.b16 %v445_v42, %v530_v28 }
  0x74   : > { %v884_v16 = vpack.c.b16 %v691_v46, %v685_v52  ;;  %v591_v30 = vpack.c.b16 %v583_v4, %v582_v13  ;;  %v1827_v52 = vld [vmem:[%s2351_s10 + $0x48] sm:$0xe]  ;;  %v532_v36 = vunpack.c.l.b16 %v1800_v22  ;;  %v533_v62 = vunpack.c.l.b16 %v1801_v3 }
  0x75   : > { %v637_v48 = vshll.u32 %v590_v12, 16  ;;  %v546_v24 = vrot.slane %v538_v47, 1  ;;  %v635_v60 = vshrl.u32 %v590_v12, 16  ;;  %v660_v33 = vunpack.c.l.b16 %v1824_v11  ;;  %v1803_v47 = vld [vmem:[%s2351_s10 + $0x40] sm:$0xe] }
  0x76   : > { %v644_v26 = vshll.u32 %v591_v30, 16  ;;  %v642_v56 = vshrl.u32 %v591_v30, 16  ;;  %v663_v28 = vunpack.c.l.b16 %v1827_v52 }
  0x77   : > { %v639_v29 = vrot.slane %v637_v48, 1 }
  0x78   : > { %v646_v35 = vrot.slane %v644_v26, 1  ;;  %v671_v41 = vpack.c.b16 %v583_v4, %v663_v28 }
  0x79   : > { %v640_v21 = vor.u32 %v639_v29, %v635_v60 }
  0x7a   : > { %v647_v2 = vor.u32 %v646_v35, %v642_v56  ;;  %v679_v19 = vrot.slane %v671_v41, 1 }
  0x7b   : > { %v720_v63 = vunpack.c.l.b16 %v640_v21  ;;  %v2255_v21 = vld [vmem:[%s3019_s2] ss:$0 sm:$0xff] }
  0x7c   : > { %1432 = vmatmul.bf16.gmra.mxu1 %v904_v53  ;;  %1519 = vmatmul.bf16.gmra.mxu0 %v907_v5  ;;  %v658_v53 = vunpack.c.l.b16 %v1822_v34  ;;  %v659_v5 = vunpack.c.l.b16 %v1823_v55  ;;  %v726_v0 = vunpack.c.l.b16 %v647_v2  ;;  %v661_v34 = vunpack.c.l.b16 %v1825_v37 }
  0x7d   : > { %v662_v55 = vunpack.c.l.b16 %v1826_v14  ;;  %v727_v18 = vunpack.c.l.b16 %v679_v19 }
  0x7e   : > { %1596 = vmatmul.bf16.gmra.mxu3 %v892_v9  ;;  %v666_v51 = vpack.c.b16 %v573_v58, %v658_v53  ;;  %v667_v50 = vpack.c.b16 %v575_v1, %v659_v5  ;;  %v901_v9 = vpack.c.b16 %v714_v17, %v708_v15  ;;  %v695_v58 = vunpack.c.l.b16 %v546_v24 }
  0x7f   : > { %1567 = vmatmul.bf16.gmra.mxu2 %v891_v54  ;;  %v539_v54 = vpack.c.b16 %v447_v43, %v531_v6  ;;  %v540_v6 = vpack.c.b16 %v449_v49, %v532_v36  ;;  %v541_v53 = vpack.c.b16 %v451_v61, %v533_v62  ;;  %v910_v5 = vpack.c.b16 %v726_v0, %v720_v63 }
  0x80   : > { %v674_v42 = vrot.slane %v666_v51, 1  ;;  %v675_v43 = vrot.slane %v667_v50, 1  ;;  %v668_v15 = vpack.c.b16 %v577_v38, %v660_v33  ;;  %v669_v17 = vpack.c.b16 %v579_v32, %v661_v34 }
  0x81   : > { %v547_v25 = vrot.slane %v539_v54, 1  ;;  %v670_v12 = vpack.c.b16 %v581_v57, %v662_v55  ;;  %v548_v44 = vrot.slane %v540_v6, 1  ;;  %v549_v49 = vrot.slane %v541_v53, 1  ;;  %v1802_v57 = vld [vmem:[%s2351_s10 + $0x38] sm:$0xe] }
  0x82   : > { %v703_v10 = vunpack.c.l.b16 %v675_v43  ;;  %v676_v61 = vrot.slane %v668_v15, 1  ;;  %v534_v4 = vunpack.c.l.b16 %v1802_v57  ;;  %v535_v51 = vunpack.c.l.b16 %v1803_v47 }
  0x83   : > { %v701_v1 = vunpack.c.l.b16 %v547_v25  ;;  %v707_v38 = vunpack.c.l.b16 %v548_v44  ;;  %v713_v30 = vunpack.c.l.b16 %v549_v49 }
  0x84   : > { %v709_v20 = vunpack.c.l.b16 %v676_v61  ;;  %v542_v26 = vpack.c.b16 %v453_v39, %v534_v4  ;;  %v543_v24 = vpack.c.b16 %v455_v40, %v535_v51 }
  0x85   : > { %v890_v46 = vpack.c.b16 %v701_v1, %v695_v58  ;;  %v899_v27 = vpack.c.b16 %v713_v30, %v707_v38 }
  0x86   : > { %v551_v43 = vrot.slane %v543_v24, 1 }
  0x88   : > { %v725_v58 = vunpack.c.l.b16 %v551_v43 }
  0x8c   : > { %1533 = vmatmul.bf16.vlgmr.msra.gmra.mxu1 %v881_v7  ;;  %1620 = vmatmul.bf16.vlgmr.msra.gmra.mxu0 %v884_v16  ;;  %v697_v7 = vunpack.c.l.b16 %v674_v42  ;;  %v909_v16 = vpack.c.b16 %v582_v13, %v580_v31  ;;  %v677_v31 = vrot.slane %v669_v17, 1  ;;  %v678_v13 = vrot.slane %v670_v12, 1 }
  0x8d   : > { %v550_v42 = vrot.slane %v542_v26, 1 }
  0x8e   : > { %1601 = vmatmul.bf16.gmra.mxu3 %v901_v9  ;;  %v893_v23 = vpack.c.b16 %v703_v10, %v697_v7  ;;  %v715_v32 = vunpack.c.l.b16 %v677_v31 }
  0x8f   : > { %1572 = vmatmul.bf16.gmra.mxu2 %v900_v45  ;;  %v721_v45 = vunpack.c.l.b16 %v678_v13  ;;  %v719_v35 = vunpack.c.l.b16 %v550_v42 }
  0x90   : > { %v902_v54 = vpack.c.b16 %v715_v32, %v709_v20 }
  0x91   : > { %v911_v48 = vpack.c.b16 %v727_v18, %v721_v45  ;;  %v908_v1 = vpack.c.b16 %v725_v58, %v719_v35 }
  0x9c   : > { %1538 = vmatmul.bf16.gmra.mxu1 %v890_v46  ;;  %1625 = vmatmul.bf16.gmra.mxu0 %v893_v23 }
  0x9e   : > { %1606 = vmatmul.bf16.gmra.mxu3 %v910_v5 }
  0x9f   : > { %1577 = vmatmul.bf16.gmra.mxu2 %v909_v16 }
  0xa9   : > { %v1399_v50 = vpop.f32.mrf.mxu1  ;;  %v1389_v9 = vpop.f32.mrf.mxu0 }
  0xaa   : > { %v1390_v2 = vadd.f32 %v2255_v21, %v1389_v9  ;;  %v1400_v20 = vadd.f32 %v2255_v21, %v1399_v50 }
  0xac   : > { %1543 = vmatmul.bf16.gmra.mxu1 %v899_v27  ;;  %1630 = vmatmul.bf16.gmra.mxu0 %v902_v54 }
  0xaf   : > { %1635 = vmatmul.bf16.vlgmr.msra.gmra.mxu2 %v911_v48 }
  0xb1   : > { %v1401_v60 = vpop.f32.mrf.mxu1  ;;  %v1391_v29 = vpop.f32.mrf.mxu0 }
  0xb2   : > { %v1447_v25 = vpop.f32.mrf.mxu2  ;;  %v1476_v56 = vpop.f32.mrf.mxu3  ;;  %v1392_v62 = vadd.f32 %v2255_v21, %v1391_v29  ;;  %v1402_v4 = vadd.f32 %v2255_v21, %v1401_v60 }
  0xb9   : > { %v1404_v10 = vpop.f32.mrf.mxu1  ;;  %v1394_v22 = vpop.f32.mrf.mxu0 }
  0xba   : > { %v1449_v7 = vpop.f32.mrf.mxu2  ;;  %v2962_v3 = vpop.f32.mrf.mxu3  ;;  %v1395_v6 = vadd.f32 %v2255_v21, %v1394_v22  ;;  %v1405_v50 = vadd.f32 %v2255_v21, %v1404_v10 }
  0xbc   : > { %1548 = vmatmul.bf16.gmra.mxu1 %v908_v1 }
  0xc1   : > { %v1406_v39 = vpop.f32.mrf.mxu1  ;;  %v1396_v8 = vpop.f32.mrf.mxu0 }
  0xc2   : > { %v1452_v59 = vpop.f32.mrf.mxu2  ;;  %v1481_v40 = vpop.f32.mrf.mxu3  ;;  %v1397_v44 = vadd.f32 %v2255_v21, %v1396_v8  ;;  %v1407_v60 = vadd.f32 %v2255_v21, %v1406_v39 }
  0xc9   : > { %v1418_v37 = vpop.f32.mrf.mxu1  ;;  %v1505_v14 = vpop.f32.mrf.mxu0 }
  0xca   : > { %v1454_v11 = vpop.f32.mrf.mxu2  ;;  %v1419_v52 = vadd.f32 %v1418_v37, %v1390_v2  ;;  %v2967_v23 = vpop.f32.mrf.mxu3 }
  0xcc   : > { %v1448_v46 = vadd.f32 %v1447_v25, %v1419_v52 }
  0xce   : > { %v1477_v36 = vadd.f32 %v1476_v56, %v1448_v46 }
  0xd0   : > { %v1506_v63 = vadd.f32 %v1505_v14, %v1477_v36 }
  0xd1   : > { %v1420_v33 = vpop.f32.mrf.mxu1  ;;  %v1507_v34 = vpop.f32.mrf.mxu0 }
  0xd2   : > { %v1457_v0 = vpop.f32.mrf.mxu2  ;;  %v1421_v55 = vadd.f32 %v1420_v33, %v1392_v62  ;;  %v1486_v16 = vpop.f32.mrf.mxu3 }
  0xd4   : > { %v1450_v28 = vadd.f32 %v1449_v7, %v1421_v55 }
  0xd6   : > { %v1479_v36 = vadd.f32 %v2962_v3, %v1450_v28 }
  0xd9   : > { %v1423_v5 = vpop.f32.mrf.mxu1  ;;  %v1510_v15 = vpop.f32.mrf.mxu0 }
  0xda   : > { %v1459_v53 = vpop.f32.mrf.mxu2  ;;  %v1424_v17 = vadd.f32 %v1423_v5, %v1395_v6  ;;  %v2969_v31 = vpop.f32.mrf.mxu3 }
  0xdc   : > { %v1453_v12 = vadd.f32 %v1452_v59, %v1424_v17 }
  0xde   : > { %v1482_v41 = vadd.f32 %v1481_v40, %v1453_v12 }
  0xe0   : > { %v1511_v49 = vadd.f32 %v1510_v15, %v1482_v41 }
  0xe1   : > { %v1425_v13 = vpop.f32.mrf.mxu1  ;;  %v2971_v19 = vpop.f32.mrf.mxu0 }
  0xe2   : > { %v1462_v61 = vpop.f32.mrf.mxu2  ;;  %v1426_v38 = vadd.f32 %v1425_v13, %v1397_v44  ;;  %v1491_v47 = vpop.f32.mrf.mxu3 }
  0xe4   : > { %v1455_v30 = vadd.f32 %v1454_v11, %v1426_v38 }
  0xe6   : > { %v1484_v3 = vadd.f32 %v2967_v23, %v1455_v30 }
  0xe9   : > { %v1428_v45 = vpop.f32.mrf.mxu1  ;;  %v1515_v18 = vpop.f32.mrf.mxu0 }
  0xea   : > { %v1464_v32 = vpop.f32.mrf.mxu2  ;;  %v1429_v57 = vadd.f32 %v1428_v45, %v1400_v20  ;;  %v2979_v42 = vpop.f32.mrf.mxu3  ;;  %v1513_v20 = vadd.f32 %v2971_v19, %v1484_v3 }
  0xec   : > { %v1458_v27 = vadd.f32 %v1457_v0, %v1429_v57  ;;  %v1508_v0 = vadd.f32 %v1507_v34, %v1479_v36 }
  0xee   : > { %v1487_v54 = vadd.f32 %v1486_v16, %v1458_v27 }
  0xf0   : > { %v2973_v51 = vadd.f32 %v1515_v18, %v1487_v54 }
  0xf1   : > { %v1430_v48 = vpop.f32.mrf.mxu1  ;;  %v2975_v26 = vpop.f32.mrf.mxu0 }
  0xf2   : > { %v1563_v9 = vpop.f32.mrf.mxu2  ;;  %v1431_v24 = vadd.f32 %v1430_v48, %v1402_v4  ;;  %v1592_v7 = vpop.f32.mrf.mxu3 }
  0xf4   : > { %v2977_v25 = vadd.f32 %v1459_v53, %v1431_v24 }
  0xf6   : > { %v1489_v19 = vadd.f32 %v2969_v31, %v2977_v25 }
  0xf9   : > { %v1433_v29 = vpop.f32.mrf.mxu1  ;;  %v1520_v56 = vpop.f32.mrf.mxu0 }
  0xfa   : > { %v1565_v43 = vpop.f32.mrf.mxu2  ;;  %v1434_v35 = vadd.f32 %v1433_v29, %v1405_v50  ;;  %v1594_v37 = vpop.f32.mrf.mxu3 }
  0xfc   : > { %v1463_v58 = vadd.f32 %v1462_v61, %v1434_v35 }
  0xfe   : > { %v1492_v1 = vadd.f32 %v1491_v47, %v1463_v58 }
 0x100   : > { %v2981_v22 = vadd.f32 %v1520_v56, %v1492_v1  ;;  %v1518_v56 = vadd.f32 %v2975_v26, %v1489_v19 }
 0x101   : > { %v1435_v8 = vpop.f32.mrf.mxu1  ;;  %v2983_v40 = vpop.f32.mrf.mxu0 }
 0x102   : > { %v1568_v59 = vpop.f32.mrf.mxu2  ;;  %v1436_v2 = vadd.f32 %v1435_v8, %v1407_v60  ;;  %v1597_v16 = vpop.f32.mrf.mxu3 }
 0x104   : > { %v2985_v11 = vadd.f32 %v1464_v32, %v1436_v2 }
 0x106   : > { %v1494_v26 = vadd.f32 %v2979_v42, %v2985_v11 }
 0x109   : > { %v1534_v14 = vpop.f32.mrf.mxu1  ;;  %v1621_v10 = vpop.f32.mrf.mxu0 }
 0x10a   : > { %v1535_v52 = vadd.f32 %v1534_v14, %v1506_v63  ;;  %v1570_v46 = vpop.f32.mrf.mxu2  ;;  %v1599_v28 = vpop.f32.mrf.mxu3 }
 0x10c   : > { %v1564_v62 = vadd.f32 %v1563_v9, %v1535_v52 }
 0x10e   : > { %v1593_v33 = vadd.f32 %v1592_v7, %v1564_v62 }
 0x110   : > { %v1622_v5 = vadd.f32 %v1621_v10, %v1593_v33 }
 0x111   : > { %v1536_v39 = vpop.f32.mrf.mxu1  ;;  %v1623_v21 = vpop.f32.mrf.mxu0 }
 0x112   : > { %v1537_v55 = vadd.f32 %v1536_v39, %v1508_v0  ;;  %v1573_v53 = vpop.f32.mrf.mxu2  ;;  %v1641_v44 = vmax.f32 %v1622_v5, 0.0  ;;  %v1602_v54 = vpop.f32.mrf.mxu3  ;;  %v1523_v0 = vadd.f32 %v2983_v40, %v1494_v26 }
 0x114   : > { %v1566_v6 = vadd.f32 %v1565_v43, %v1537_v55 }
 0x116   : > { %v1595_v15 = vadd.f32 %v1594_v37, %v1566_v6 }
 0x118   : > { %v1624_v17 = vadd.f32 %v1623_v21, %v1595_v15 }
 0x119   : > { %v1539_v12 = vpop.f32.mrf.mxu1  ;;  %v1626_v41 = vpop.f32.mrf.mxu0 }
 0x11a   : > { %v1642_v63 = vmax.f32 %v1624_v17, 0.0  ;;  %v1540_v61 = vadd.f32 %v1539_v12, %v1511_v49  ;;  %v1575_v38 = vpop.f32.mrf.mxu2  ;;  %v1604_v35 = vpop.f32.mrf.mxu3 }
 0x11c   : > { %v2194_v34 = vpack.c.bf16 %v1642_v63, %v1641_v44  ;;  %v1569_v13 = vadd.f32 %v1568_v59, %v1540_v61 }
 0x11e   : > { %2195 = vst [vmem:[%s2992_s8] sm:$0xff] %v2194_v34   ;;  %v1598_v18 = vadd.f32 %v1597_v16, %v1569_v13 }
 0x120   : > { %v1627_v47 = vadd.f32 %v1626_v41, %v1598_v18 }
 0x121   : > { %v1541_v32 = vpop.f32.mrf.mxu1  ;;  %v1628_v45 = vpop.f32.mrf.mxu0 }
 0x122   : > { %v1542_v49 = vadd.f32 %v1541_v32, %v1513_v20  ;;  %v1578_v9 = vpop.f32.mrf.mxu2  ;;  %v1643_v23 = vmax.f32 %v1627_v47, 0.0  ;;  %v1607_v25 = vpop.f32.mrf.mxu3 }
 0x124   : > { %v1571_v57 = vadd.f32 %v1570_v46, %v1542_v49 }
 0x126   : > { %v1600_v27 = vadd.f32 %v1599_v28, %v1571_v57 }
 0x128   : > { %v1629_v4 = vadd.f32 %v1628_v45, %v1600_v27 }
 0x129   : > { %v1544_v48 = vpop.f32.mrf.mxu1  ;;  %v1631_v50 = vpop.f32.mrf.mxu0 }
 0x12a   : > { %v1644_v30 = vmax.f32 %v1629_v4, 0.0  ;;  %v1545_v24 = vadd.f32 %v1544_v48, %v2973_v51  ;;  %v1580_v60 = vpop.f32.mrf.mxu2  ;;  %v1609_v16 = vpop.f32.mrf.mxu3 }
 0x12c   : > { %v2199_v43 = vpack.c.bf16 %v1644_v30, %v1643_v23  ;;  %v1574_v29 = vadd.f32 %v1573_v53, %v1545_v24 }
 0x12e   : > { %2211 = vst [vmem:[%s2992_s8 + $0x8] sm:$0xff] %v2199_v43   ;;  %v1603_v1 = vadd.f32 %v1602_v54, %v1574_v29 }
 0x130   : > { %v1632_v2 = vadd.f32 %v1631_v50, %v1603_v1 }
 0x131   : > { %v1546_v58 = vpop.f32.mrf.mxu1  ;;  %v1633_v8 = vpop.f32.mrf.mxu0 }
 0x132   : > { %v1547_v7 = vadd.f32 %v1546_v58, %v1518_v56  ;;  %v1645_v10 = vmax.f32 %v1632_v2, 0.0  ;;  %v1636_v36 = vpop.f32.mrf.mxu2 }
 0x134   : > { %v1576_v59 = vadd.f32 %v1575_v38, %v1547_v7 }
 0x136   : > { %v1605_v37 = vadd.f32 %v1604_v35, %v1576_v59 }
 0x138   : > { %v1634_v51 = vadd.f32 %v1633_v8, %v1605_v37 }
 0x139   : > { %v1549_v14 = vpop.f32.mrf.mxu1 }
 0x13a   : > { %v1646_v52 = vmax.f32 %v1634_v51, 0.0  ;;  %v1550_v31 = vadd.f32 %v1549_v14, %v2981_v22  ;;  %v1638_v5 = vpop.f32.mrf.mxu2 }
 0x13c   : > { %v2204_v46 = vpack.c.bf16 %v1646_v52, %v1645_v10  ;;  %v1579_v62 = vadd.f32 %v1578_v9, %v1550_v31 }
 0x13e   : > { %2212 = vst [vmem:[%s2992_s8 + $0x10] sm:$0xff] %v2204_v46   ;;  %v1608_v21 = vadd.f32 %v1607_v25, %v1579_v62 }
 0x140   : > { %v1637_v6 = vadd.f32 %v1636_v36, %v1608_v21 }
 0x141   : > { %v1551_v39 = vpop.f32.mrf.mxu1 }
 0x142   : > { %v1552_v33 = vadd.f32 %v1551_v39, %v1523_v0  ;;  %v1647_v15 = vmax.f32 %v1637_v6, 0.0 }
 0x144   : > { %v1581_v55 = vadd.f32 %v1580_v60, %v1552_v33 }
 0x146   : > { %v1610_v53 = vadd.f32 %v1609_v16, %v1581_v55 }
 0x148   : > { %v1639_v22 = vadd.f32 %v1638_v5, %v1610_v53 }
 0x14a   : > { %v1648_v17 = vmax.f32 %v1639_v22, 0.0 }
 0x14c   : > { %v2209_v12 = vpack.c.bf16 %v1648_v17, %v1647_v15 }
 0x14e   : > { %2213 = vst [vmem:[%s2992_s8 + $0x18] sm:$0xff] %v2209_v12  }
 0x14f PF: > { %s13_s14 = sadd.s32 1, %s2278_s14   ;;  %s3021_s12 = smov %s2274_s13 }
 0x150   : > { %p10_p5 = scmp.ge.s32.totalorder %s13_s14, 4   ;;  %s3022_s13 = smov %s3024_s15 }
 0x152   :  { %12 = sbr.rel (!%p10_p5) target bundleno = 2 (0x2), region = 70 }

// kernel: pspnet_forward.11
= control target key start
LH: loop header
LB: loop body
LE: loop exit
PB: predicated region body
PF: predicated region fallthrough
CT: control target
= control target key end

     0   :  { %s439_s1 = inlined_call_operand.vmem [shape: bf16[128,128], index: 1, kind: input, shape index: {}]   ;;  %s440_s2 = inlined_call_operand.vmem [shape: f32[1,128], index: 2, kind: input, shape index: {}]   ;;  %s441_s0 = inlined_call_operand.vmem [shape: bf16[128,128], index: 0, kind: input, shape index: {}]   ;;  %s442_s3 = inlined_call_operand.vmem [shape: f32[128,128], index: 3, kind: output, shape index: {}]  }
   0x1   :  { %v294_v0 = vld [vmem:[%s439_s1 + $0x38] sm:$0xff]  ;;  %v293_v1 = vld [vmem:[%s439_s1 + $0x30] sm:$0xff]  ;;  %v292_v2 = vld [vmem:[%s439_s1 + $0x28] sm:$0xff] }
   0x2   :  { %146 = vmatpush.bf16.msra.mxu0 %v294_v0  ;;  %295 = vmatpush.bf16.msra.mxu1 %v294_v0  ;;  %v291_v3 = vld [vmem:[%s439_s1 + $0x20] sm:$0xff]  ;;  %v290_v4 = vld [vmem:[%s439_s1 + $0x18] sm:$0xff]  ;;  %v289_v5 = vld [vmem:[%s439_s1 + $0x10] sm:$0xff] }
   0x3   :  { %296 = vmatpush.bf16.msra.mxu2 %v294_v0  ;;  %297 = vmatpush.bf16.msra.mxu3 %v294_v0  ;;  %v288_v6 = vld [vmem:[%s439_s1 + $0x8] sm:$0xff]  ;;  %v287_v7 = vld [vmem:[%s439_s1] sm:$0xff]  ;;  %v281_v9 = vld [vmem:[%s441_s0 + $0x10] sm:$0xff] }
   0x4   :  { %v279_v8 = vld [vmem:[%s441_s0] sm:$0xff]  ;;  %v285_v11 = vld [vmem:[%s441_s0 + $0x30] sm:$0xff]  ;;  %v280_v12 = vld [vmem:[%s441_s0 + $0x8] sm:$0xff] }
   0x5   :  { %v283_v10 = vld [vmem:[%s441_s0 + $0x20] sm:$0xff]  ;;  %v282_v13 = vld [vmem:[%s441_s0 + $0x18] sm:$0xff]  ;;  %v284_v14 = vld [vmem:[%s441_s0 + $0x28] sm:$0xff] }
   0x6   :  { %147 = vmatpush.bf16.msra.mxu0 %v293_v1  ;;  %298 = vmatpush.bf16.msra.mxu1 %v293_v1  ;;  %v286_v15 = vld [vmem:[%s441_s0 + $0x38] sm:$0xff]  ;;  %v319_v16 = vld [vmem:[%s440_s2] ss:$0 sm:$0xff] }
   0x7   :  { %299 = vmatpush.bf16.msra.mxu2 %v293_v1  ;;  %300 = vmatpush.bf16.msra.mxu3 %v293_v1 }
   0xa   :  { %148 = vmatpush.bf16.msra.mxu0 %v292_v2  ;;  %301 = vmatpush.bf16.msra.mxu1 %v292_v2 }
   0xb   :  { %302 = vmatpush.bf16.msra.mxu2 %v292_v2  ;;  %303 = vmatpush.bf16.msra.mxu3 %v292_v2 }
   0xe   :  { %149 = vmatpush.bf16.msra.mxu0 %v291_v3  ;;  %304 = vmatpush.bf16.msra.mxu1 %v291_v3 }
   0xf   :  { %305 = vmatpush.bf16.msra.mxu2 %v291_v3  ;;  %306 = vmatpush.bf16.msra.mxu3 %v291_v3 }
  0x12   :  { %150 = vmatpush.bf16.msra.mxu0 %v290_v4  ;;  %307 = vmatpush.bf16.msra.mxu1 %v290_v4 }
  0x13   :  { %308 = vmatpush.bf16.msra.mxu2 %v290_v4  ;;  %309 = vmatpush.bf16.msra.mxu3 %v290_v4 }
  0x16   :  { %151 = vmatpush.bf16.msra.mxu0 %v289_v5  ;;  %310 = vmatpush.bf16.msra.mxu1 %v289_v5 }
  0x17   :  { %311 = vmatpush.bf16.msra.mxu2 %v289_v5  ;;  %312 = vmatpush.bf16.msra.mxu3 %v289_v5 }
  0x1a   :  { %152 = vmatpush.bf16.msra.mxu0 %v288_v6  ;;  %313 = vmatpush.bf16.msra.mxu1 %v288_v6 }
  0x1b   :  { %314 = vmatpush.bf16.msra.mxu2 %v288_v6  ;;  %315 = vmatpush.bf16.msra.mxu3 %v288_v6 }
  0x1e   :  { %153 = vmatpush.bf16.msra.mxu0 %v287_v7  ;;  %316 = vmatpush.bf16.msra.mxu1 %v287_v7 }
  0x1f   :  { %317 = vmatpush.bf16.msra.mxu2 %v287_v7  ;;  %318 = vmatpush.bf16.msra.mxu3 %v287_v7 }
  0x21   :  { %154 = vmatmul.bf16.vlgmr.msra.gmra.mxu0 %v279_v8  ;;  %164 = vmatmul.bf16.vlgmr.msra.gmra.mxu1 %v281_v9 }
  0x22   :  { %174 = vmatmul.bf16.vlgmr.msra.gmra.mxu2 %v283_v10  ;;  %184 = vmatmul.bf16.vlgmr.msra.gmra.mxu3 %v285_v11 }
  0x31   :  { %159 = vmatmul.bf16.gmra.mxu0 %v280_v12  ;;  %169 = vmatmul.bf16.gmra.mxu1 %v282_v13 }
  0x32   :  { %179 = vmatmul.bf16.gmra.mxu2 %v284_v14  ;;  %189 = vmatmul.bf16.gmra.mxu3 %v286_v15 }
  0x9e   :  { %v155_v17 = vpop.f32.mrf.mxu0  ;;  %v165_v18 = vpop.f32.mrf.mxu1 }
  0x9f   :  { %v156_v19 = vadd.f32 %v319_v16, %v155_v17  ;;  %v166_v20 = vadd.f32 %v319_v16, %v165_v18 }
  0xa1   :  { %195 = vst [vmem:[%s442_s3] sm:$0xff] %v156_v19 }
  0xa2   :  { %199 = vst [vmem:[%s442_s3 + $0x20] sm:$0xff] %v166_v20 }
  0xa5   :  { %v175_v21 = vpop.f32.mrf.mxu2  ;;  %v185_v22 = vpop.f32.mrf.mxu3 }
  0xa6   :  { %v176_v23 = vadd.f32 %v319_v16, %v175_v21  ;;  %v186_v24 = vadd.f32 %v319_v16, %v185_v22  ;;  %v157_v25 = vpop.f32.mrf.mxu0  ;;  %v167_v26 = vpop.f32.mrf.mxu1 }
  0xa7   :  { %v158_v27 = vadd.f32 %v319_v16, %v157_v25  ;;  %v168_v28 = vadd.f32 %v319_v16, %v167_v26 }
  0xa8   :  { %203 = vst [vmem:[%s442_s3 + $0x40] sm:$0xff] %v176_v23 }
  0xa9   :  { %207 = vst [vmem:[%s442_s3 + $0x60] sm:$0xff] %v186_v24 }
  0xaa   :  { %196 = vst [vmem:[%s442_s3 + $0x8] sm:$0xff] %v158_v27 }
  0xab   :  { %200 = vst [vmem:[%s442_s3 + $0x28] sm:$0xff] %v168_v28 }
  0xad   :  { %v177_v29 = vpop.f32.mrf.mxu2  ;;  %v187_v30 = vpop.f32.mrf.mxu3 }
  0xae   :  { %v178_v31 = vadd.f32 %v319_v16, %v177_v29  ;;  %v188_v32 = vadd.f32 %v319_v16, %v187_v30  ;;  %v160_v33 = vpop.f32.mrf.mxu0  ;;  %v170_v34 = vpop.f32.mrf.mxu1 }
  0xaf   :  { %v161_v35 = vadd.f32 %v319_v16, %v160_v33  ;;  %v171_v36 = vadd.f32 %v319_v16, %v170_v34 }
  0xb0   :  { %204 = vst [vmem:[%s442_s3 + $0x48] sm:$0xff] %v178_v31 }
  0xb1   :  { %208 = vst [vmem:[%s442_s3 + $0x68] sm:$0xff] %v188_v32 }
  0xb2   :  { %197 = vst [vmem:[%s442_s3 + $0x10] sm:$0xff] %v161_v35 }
  0xb3   :  { %201 = vst [vmem:[%s442_s3 + $0x30] sm:$0xff] %v171_v36 }
  0xb5   :  { %v180_v37 = vpop.f32.mrf.mxu2  ;;  %v190_v38 = vpop.f32.mrf.mxu3 }
  0xb6   :  { %v181_v39 = vadd.f32 %v319_v16, %v180_v37  ;;  %v191_v40 = vadd.f32 %v319_v16, %v190_v38  ;;  %v162_v41 = vpop.f32.mrf.mxu0  ;;  %v172_v42 = vpop.f32.mrf.mxu1 }
  0xb7   :  { %v163_v43 = vadd.f32 %v319_v16, %v162_v41  ;;  %v173_v44 = vadd.f32 %v319_v16, %v172_v42 }
  0xb8   :  { %205 = vst [vmem:[%s442_s3 + $0x50] sm:$0xff] %v181_v39 }
  0xb9   :  { %209 = vst [vmem:[%s442_s3 + $0x70] sm:$0xff] %v191_v40 }
  0xba   :  { %198 = vst [vmem:[%s442_s3 + $0x18] sm:$0xff] %v163_v43 }
  0xbb   :  { %202 = vst [vmem:[%s442_s3 + $0x38] sm:$0xff] %v173_v44 }
  0xbd   :  { %v182_v45 = vpop.f32.mrf.mxu2  ;;  %v192_v46 = vpop.f32.mrf.mxu3 }
  0xbe   :  { %v183_v47 = vadd.f32 %v319_v16, %v182_v45  ;;  %v193_v48 = vadd.f32 %v319_v16, %v192_v46 }
  0xc0   :  { %206 = vst [vmem:[%s442_s3 + $0x58] sm:$0xff] %v183_v47 }
  0xc1   :  { %210 = vst [vmem:[%s442_s3 + $0x78] sm:$0xff] %v193_v48 }

// kernel: pspnet_forward.10
= control target key start
LH: loop header
LB: loop body
LE: loop exit
PB: predicated region body
PF: predicated region fallthrough
CT: control target
= control target key end

     0   :  { %s3929_s12 = smov 0   ;;  %s3931_s13 = smov 0   ;;  %s5132_s0 = inlined_call_operand.vmem [shape: bf16[2,10,10,256], index: 0, kind: input, shape index: {}]   ;;  %s5133_s1 = inlined_call_operand.vmem [shape: bf16[2304,128], index: 1, kind: input, shape index: {}]   ;;  %s5134_s2 = inlined_call_operand.vmem [shape: f32[1,128], index: 2, kind: input, shape index: {}]   ;;  %s5135_s3 = inlined_call_operand.vmem [shape: bf16[2,64,128], index: 3, kind: output, shape index: {}]  }
   0x1   :  { %s3933_s14 = smov 0  }
   0x2 LB: > { %s25_s15 = sadd.s32 1, %s3903_s13  ;;  %p3045_p0 = scmp.ge.s32.totalorder %s3907_s14, 1  ;;  %s3907_s14 = sphi %s3933_s14, %s13_s14   ;;  %s3903_s13 = sphi %s3931_s13, %s5137_s13   ;;  %s3899_s12 = sphi %s3929_s12, %s5136_s12  }
   0x3   : > { %p27_p1 = scmp.ge.s32.totalorder %s25_s15, 2  ;;  %p168_p2 = scmp.lt.s32.totalorder %s3907_s14, 3 }
   0x5   : > { %s5139_s15 = smov (%p27_p1, %s25_s15), 0  ;;  %p169_p3 = pnand %p3045_p0, %p168_p2 }
   0x6   : > { %p202_p4 = scmp.lt.s32.totalorder (!%p169_p3), %s3899_s12, 1 }
   0x7   : > { %172 = sbr.rel (%p169_p3) target bundleno = 469 (0x1d5), region = 32 }
   0xc   : > { %v3683_v0 = vld [vmem:[%s5133_s1 + $0x38] sm:$0xff]  ;;  %v3682_v2 = vld [vmem:[%s5133_s1 + $0x30] sm:$0xff]  ;;  %v3681_v4 = vld [vmem:[%s5133_s1 + $0x28] sm:$0xff]  ;;  %s5141_s12 = smov (!%p202_p4, %s3899_s12), 1 }
   0xd   : > { %v3691_v1 = vld [vmem:[%s5133_s1 + $0x78] sm:$0xff]  ;;  %3843 = vmatpush.bf16.msra.mxu2 %v3683_v0  ;;  %v3690_v3 = vld [vmem:[%s5133_s1 + $0x70] sm:$0xff]  ;;  %2388 = vmatpush.bf16.msra.mxu0 %v3683_v0  ;;  %v3689_v5 = vld [vmem:[%s5133_s1 + $0x68] sm:$0xff]  ;;  %s3859_s9 = smul.u32 160, %s5141_s12 }
   0xe   : > { %3851 = vmatpush.bf16.msra.mxu3 %v3691_v1  ;;  %2417 = vmatpush.bf16.msra.mxu1 %v3691_v1  ;;  %v3680_v6 = vld [vmem:[%s5133_s1 + $0x20] sm:$0xff]  ;;  %v3679_v8 = vld [vmem:[%s5133_s1 + $0x18] sm:$0xff]  ;;  %v3678_v10 = vld [vmem:[%s5133_s1 + $0x10] sm:$0xff] }
   0xf   : > { %v3688_v7 = vld [vmem:[%s5133_s1 + $0x60] sm:$0xff]  ;;  %v3687_v9 = vld [vmem:[%s5133_s1 + $0x58] sm:$0xff]  ;;  %v3686_v11 = vld [vmem:[%s5133_s1 + $0x50] sm:$0xff]  ;;  %s3993_s20 = scalar_lea.vmem %s5132_s0, %s3859_s9 }
  0x10   : > { %v3677_v12 = vld [vmem:[%s5133_s1 + $0x8] sm:$0xff]  ;;  %v4002_v14 = vld [vmem:[%s3993_s20 + $0x40] sm:$0xff]  ;;  %v4005_v15 = vld [vmem:[%s3993_s20 + $0x50] sm:$0xff] }
  0x11   : > { %3844 = vmatpush.bf16.msra.mxu2 %v3682_v2  ;;  %2389 = vmatpush.bf16.msra.mxu0 %v3682_v2  ;;  %v3685_v13 = vld [vmem:[%s5133_s1 + $0x48] sm:$0xff]  ;;  %v4008_v16 = vld [vmem:[%s3993_s20] sm:$0xff]  ;;  %v223_v17 = vld [vmem:[%s3993_s20 + $0x10] sm:$0xff]  ;;  %v312_v18 = vunpack.c.l.b16 %v4002_v14  ;;  %v314_v19 = vunpack.c.l.b16 %v4005_v15  ;;  %v313_v20 = vunpack.c.h.b16 %v4002_v14  ;;  %v315_v21 = vunpack.c.h.b16 %v4005_v15 }
  0x12   : > { %3852 = vmatpush.bf16.msra.mxu3 %v3690_v3  ;;  %2418 = vmatpush.bf16.msra.mxu1 %v3690_v3  ;;  %v3676_v22 = vld [vmem:[%s5133_s1] sm:$0xff]  ;;  %v304_v24 = vunpack.c.l.b16 %v4008_v16  ;;  %v4022_v25 = vunpack.c.l.b16 %v223_v17  ;;  %v3699_v26 = vld [vmem:[%s5133_s1 + $0xb8] sm:$0xff]  ;;  %v305_v27 = vunpack.c.h.b16 %v4008_v16  ;;  %v4028_v28 = vunpack.c.h.b16 %v223_v17  ;;  %v3698_v36 = vld [vmem:[%s5133_s1 + $0xb0] sm:$0xff] }
  0x13   : > { %v3684_v23 = vld [vmem:[%s5133_s1 + $0x40] sm:$0xff]  ;;  %v3707_v29 = vld [vmem:[%s5133_s1 + $0xf8] sm:$0xff]  ;;  %v1416_v30 = vpack.c.b16 %v314_v19, %v312_v18  ;;  %v1417_v31 = vpack.c.b16 %v315_v21, %v313_v20  ;;  %v3706_v37 = vld [vmem:[%s5133_s1 + $0xf0] sm:$0xff] }
  0x14   : > { %v1380_v32 = vpack.c.b16 %v4022_v25, %v304_v24  ;;  %v3723_v33 = vld [vmem:[%s5133_s1 + $0x178] sm:$0xff]  ;;  %v1381_v35 = vpack.c.b16 %v4028_v28, %v305_v27  ;;  %v4056_v38 = vld [vmem:[%s3993_s20 + $0x8] sm:$0x11]  ;;  %v3722_v40 = vld [vmem:[%s5133_s1 + $0x170] sm:$0xff] }
  0x15   : > { %3845 = vmatpush.bf16.msra.mxu2 %v3681_v4  ;;  %2390 = vmatpush.bf16.msra.mxu0 %v3681_v4  ;;  %v3715_v34 = vld [vmem:[%s5133_s1 + $0x138] sm:$0xff]  ;;  %v3714_v41 = vld [vmem:[%s5133_s1 + $0x130] sm:$0xff]  ;;  %v328_v42 = vunpack.c.l.b16 %v4056_v38  ;;  %v3697_v44 = vld [vmem:[%s5133_s1 + $0xa8] sm:$0xff]  ;;  %v329_v46 = vunpack.c.h.b16 %v4056_v38 }
  0x16   : > { %3853 = vmatpush.bf16.msra.mxu3 %v3689_v5  ;;  %2419 = vmatpush.bf16.msra.mxu1 %v3689_v5  ;;  %v4059_v39 = vld [vmem:[%s3993_s20 + $0x18] sm:$0x11]  ;;  %v3705_v45 = vld [vmem:[%s5133_s1 + $0xe8] sm:$0xff]  ;;  %v4078_v48 = vld [vmem:[%s3993_s20 + $0x60] sm:$0xff] }
  0x17   : > { %v330_v43 = vunpack.c.l.b16 %v4059_v39  ;;  %v331_v47 = vunpack.c.h.b16 %v4059_v39  ;;  %v4081_v49 = vld [vmem:[%s3993_s20 + $0x70] sm:$0xff]  ;;  %v3721_v50 = vld [vmem:[%s5133_s1 + $0x168] sm:$0xff]  ;;  %v224_v52 = vld [vmem:[%s3993_s20 + $0x20] sm:$0xff]  ;;  %v4093_v54 = vpack.c.b16 %v328_v42, %v304_v24  ;;  %v316_v58 = vunpack.c.l.b16 %v4078_v48 }
  0x18   : > { %v3713_v51 = vld [vmem:[%s5133_s1 + $0x128] sm:$0xff]  ;;  %v225_v53 = vld [vmem:[%s3993_s20 + $0x30] sm:$0xff]  ;;  %v3696_v56 = vld [vmem:[%s5133_s1 + $0xa0] sm:$0xff]  ;;  %v318_v59 = vunpack.c.l.b16 %v4081_v49  ;;  %v4110_v60 = vpack.c.b16 %v329_v46, %v305_v27  ;;  %v317_v62 = vunpack.c.h.b16 %v4078_v48  ;;  %v319_v63 = vunpack.c.h.b16 %v4081_v49 }
  0x19   : > { %3846 = vmatpush.bf16.msra.mxu2 %v3680_v6  ;;  %2391 = vmatpush.bf16.msra.mxu0 %v3680_v6  ;;  %v4098_v55 = vpack.c.b16 %v330_v43, %v4022_v25  ;;  %v3704_v57 = vld [vmem:[%s5133_s1 + $0xe0] sm:$0xff]  ;;  %v4115_v61 = vpack.c.b16 %v331_v47, %v4028_v28  ;;  %v4122_v1 = vunpack.c.l.b16 %v224_v52  ;;  %v4124_v2 = vunpack.c.l.b16 %v225_v53  ;;  %v3719_v24 = vld [vmem:[%s5133_s1 + $0x158] sm:$0xff]  ;;  %v3701_v38 = vld [vmem:[%s5133_s1 + $0xc8] sm:$0xff] }
  0x1a   : > { %3854 = vmatpush.bf16.msra.mxu3 %v3688_v7  ;;  %2420 = vmatpush.bf16.msra.mxu1 %v3688_v7  ;;  %v3720_v0 = vld [vmem:[%s5133_s1 + $0x160] sm:$0xff]  ;;  %v4129_v4 = vunpack.c.h.b16 %v224_v52  ;;  %v4131_v5 = vunpack.c.h.b16 %v225_v53  ;;  %v239_v7 = vld [vmem:[%s3993_s20 + $0x10] sm:$0xee]  ;;  %v1434_v16 = vpack.c.b16 %v318_v59, %v316_v58  ;;  %v1435_v17 = vpack.c.b16 %v319_v63, %v317_v62 }
  0x1b   : > { %v3712_v3 = vld [vmem:[%s5133_s1 + $0x120] sm:$0xff]  ;;  %v482_v27 = vunpack.c.l.b16 %v239_v7  ;;  %v3718_v52 = vld [vmem:[%s5133_s1 + $0x150] sm:$0xff] }
  0x1c   : > { %v238_v6 = vld [vmem:[%s3993_s20] sm:$0xee]  ;;  %v245_v49 = vld [vmem:[%s3993_s20 + $0x70] sm:$0xee] }
  0x1d   : > { %3847 = vmatpush.bf16.msra.mxu2 %v3679_v8  ;;  %2392 = vmatpush.bf16.msra.mxu0 %v3679_v8  ;;  %v363_v8 = vshll.u32 %v4093_v54, 16  ;;  %v3752_v14 = vld [vmem:[%s5133_s1 + $0x260] sm:$0xff] }
  0x1e   : > { %3855 = vmatpush.bf16.msra.mxu3 %v3687_v9  ;;  %2421 = vmatpush.bf16.msra.mxu1 %v3687_v9  ;;  %v377_v9 = vshll.u32 %v4098_v55, 16 }
  0x21   : > { %3848 = vmatpush.bf16.msra.mxu2 %v3678_v10  ;;  %2393 = vmatpush.bf16.msra.mxu0 %v3678_v10  ;;  %v3695_v10 = vld [vmem:[%s5133_s1 + $0x98] sm:$0xff] }
  0x22   : > { %3856 = vmatpush.bf16.msra.mxu3 %v3686_v11  ;;  %2422 = vmatpush.bf16.msra.mxu1 %v3686_v11  ;;  %v3703_v11 = vld [vmem:[%s5133_s1 + $0xd8] sm:$0xff] }
  0x25   : > { %3849 = vmatpush.bf16.msra.mxu2 %v3677_v12  ;;  %2394 = vmatpush.bf16.msra.mxu0 %v3677_v12  ;;  %v370_v12 = vshll.u32 %v4110_v60, 16 }
  0x26   : > { %3857 = vmatpush.bf16.msra.mxu3 %v3685_v13  ;;  %2423 = vmatpush.bf16.msra.mxu1 %v3685_v13  ;;  %v384_v13 = vshll.u32 %v4115_v61, 16 }
  0x29   : > { %3850 = vmatpush.bf16.msra.mxu2 %v3676_v22  ;;  %2395 = vmatpush.bf16.msra.mxu0 %v3676_v22  ;;  %v361_v22 = vshrl.u32 %v4093_v54, 16  ;;  %v498_v54 = vpack.c.b16 %v330_v43, %v482_v27 }
  0x2a   : > { %3858 = vmatpush.bf16.msra.mxu3 %v3684_v23  ;;  %2424 = vmatpush.bf16.msra.mxu1 %v3684_v23  ;;  %v1398_v23 = vpack.c.b16 %v4124_v2, %v4122_v1 }
  0x2c   : > { %2406 = vmatmul.bf16.vlgmr.msra.gmra.mxu2 %v1416_v30  ;;  %2396 = vmatmul.bf16.vlgmr.msra.gmra.mxu0 %v1380_v32  ;;  %v3711_v30 = vld [vmem:[%s5133_s1 + $0x118] sm:$0xff]  ;;  %v481_v32 = vunpack.c.h.b16 %v238_v6 }
  0x2d   : > { %2446 = vmatpush.bf16.msrb.mxu2 %v3699_v26  ;;  %2435 = vmatmul.bf16.vlgmr.msra.gmra.mxu3 %v1417_v31  ;;  %v480_v26 = vunpack.c.l.b16 %v238_v6  ;;  %v1399_v31 = vpack.c.b16 %v4131_v5, %v4129_v4  ;;  %v3717_v6 = vld [vmem:[%s5133_s1 + $0x148] sm:$0xff] }
  0x2e   : > { %2475 = vmatpush.bf16.msrb.mxu3 %v3707_v29  ;;  %2533 = vmatpush.bf16.msrb.mxu1 %v3723_v33  ;;  %v375_v29 = vshrl.u32 %v4098_v55, 16  ;;  %v483_v33 = vunpack.c.h.b16 %v239_v7 }
  0x2f   : > { %2504 = vmatpush.bf16.msrb.mxu0 %v3715_v34  ;;  %2425 = vmatmul.bf16.vlgmr.msra.gmra.mxu1 %v1381_v35  ;;  %v365_v34 = vrot.slane %v363_v8, 1  ;;  %v368_v35 = vshrl.u32 %v4110_v60, 16  ;;  %v496_v53 = vpack.c.b16 %v328_v42, %v480_v26  ;;  %v514_v8 = vrot.slane %v498_v54, 1 }
  0x30   : > { %v499_v60 = vpack.c.b16 %v331_v47, %v483_v33  ;;  %v3716_v33 = vld [vmem:[%s5133_s1 + $0x140] sm:$0xff] }
  0x31   : > { %2447 = vmatpush.bf16.msrb.mxu2 %v3698_v36  ;;  %v4167_v36 = vld [vmem:[%s3993_s20 + $0x28] sm:$0x11]  ;;  %v512_v7 = vrot.slane %v496_v53, 1 }
  0x32   : > { %2476 = vmatpush.bf16.msrb.mxu3 %v3706_v37  ;;  %2534 = vmatpush.bf16.msrb.mxu1 %v3722_v40  ;;  %v3694_v37 = vld [vmem:[%s5133_s1 + $0x90] sm:$0xff]  ;;  %v332_v55 = vunpack.c.l.b16 %v4167_v36  ;;  %v333_v42 = vunpack.c.h.b16 %v4167_v36  ;;  %v3753_v36 = vld [vmem:[%s5133_s1 + $0x268] sm:$0xff] }
  0x33   : > { %2505 = vmatpush.bf16.msrb.mxu0 %v3714_v41  ;;  %v3702_v40 = vld [vmem:[%s5133_s1 + $0xd0] sm:$0xff]  ;;  %v379_v41 = vrot.slane %v377_v9, 1 }
  0x34   : > { %v4209_v9 = vpack.c.b16 %v332_v55, %v4122_v1 }
  0x35   : > { %2448 = vmatpush.bf16.msrb.mxu2 %v3697_v44  ;;  %v372_v44 = vrot.slane %v370_v12, 1  ;;  %v515_v12 = vrot.slane %v499_v60, 1 }
  0x36   : > { %2477 = vmatpush.bf16.msrb.mxu3 %v3705_v45  ;;  %2535 = vmatpush.bf16.msrb.mxu1 %v3721_v50  ;;  %v382_v45 = vshrl.u32 %v4115_v61, 16  ;;  %v386_v50 = vrot.slane %v384_v13, 1 }
  0x37   : > { %2506 = vmatpush.bf16.msrb.mxu0 %v3713_v51  ;;  %v4177_v51 = vld [vmem:[%s3993_s20 + $0x38] sm:$0x11]  ;;  %v373_v39 = vor.u32 %v372_v44, %v368_v35  ;;  %v1006_v35 = vunpack.c.l.b16 %v514_v8  ;;  %v240_v44 = vld [vmem:[%s3993_s20 + $0x20] sm:$0xee] }
  0x38   : > { %v334_v61 = vunpack.c.l.b16 %v4177_v51  ;;  %v335_v43 = vunpack.c.h.b16 %v4177_v51  ;;  %v387_v47 = vor.u32 %v386_v50, %v382_v45  ;;  %v241_v45 = vld [vmem:[%s3993_s20 + $0x30] sm:$0xee]  ;;  %v3747_v50 = vld [vmem:[%s5133_s1 + $0x238] sm:$0xff] }
  0x39   : > { %2449 = vmatpush.bf16.msrb.mxu2 %v3696_v56  ;;  %v3710_v56 = vld [vmem:[%s5133_s1 + $0x110] sm:$0xff]  ;;  %v993_v27 = vunpack.c.l.b16 %v373_v39  ;;  %v4263_v39 = vld [vmem:[%s3993_s20 + $0x48] sm:$0x11]  ;;  %v487_v8 = vunpack.c.h.b16 %v241_v45 }
  0x3a   : > { %2478 = vmatpush.bf16.msrb.mxu3 %v3704_v57  ;;  %2536 = vmatpush.bf16.msrb.mxu1 %v3720_v0  ;;  %v497_v57 = vpack.c.b16 %v329_v46, %v481_v32  ;;  %v3693_v0 = vld [vmem:[%s5133_s1 + $0x88] sm:$0xff]  ;;  %v366_v46 = vor.u32 %v365_v34, %v361_v22  ;;  %v4217_v13 = vpack.c.b16 %v334_v61, %v4124_v2  ;;  %v3692_v22 = vld [vmem:[%s5133_s1 + $0x80] sm:$0xff]  ;;  %v994_v34 = vunpack.c.l.b16 %v512_v7 }
  0x3b   : > { %2507 = vmatpush.bf16.msrb.mxu0 %v3712_v3  ;;  %v380_v3 = vor.u32 %v379_v41, %v375_v29  ;;  %v1005_v29 = vunpack.c.l.b16 %v387_v47  ;;  %v3708_v32 = vld [vmem:[%s5133_s1 + $0x100] sm:$0xff]  ;;  %v3755_v41 = vld [vmem:[%s5133_s1 + $0x278] sm:$0xff]  ;;  %v485_v7 = vunpack.c.h.b16 %v240_v44 }
  0x3c   : > { %2411 = vmatmul.bf16.gmra.mxu2 %v1434_v16  ;;  %2401 = vmatmul.bf16.gmra.mxu0 %v1398_v23  ;;  %v4222_v16 = vpack.c.b16 %v333_v42, %v4129_v4  ;;  %v3700_v23 = vld [vmem:[%s5133_s1 + $0xc0] sm:$0xff]  ;;  %v405_v53 = vshll.u32 %v4217_v13, 16 }
  0x3d   : > { %2450 = vmatpush.bf16.msrb.mxu2 %v3695_v10  ;;  %2440 = vmatmul.bf16.gmra.mxu3 %v1435_v17  ;;  %v3709_v10 = vld [vmem:[%s5133_s1 + $0x108] sm:$0xff]  ;;  %v4227_v17 = vpack.c.b16 %v335_v43, %v4131_v5  ;;  %v1004_v26 = vunpack.c.l.b16 %v380_v3  ;;  %v486_v3 = vunpack.c.l.b16 %v241_v45  ;;  %v3728_v45 = vld [vmem:[%s5133_s1 + $0x1a0] sm:$0xff] }
  0x3e   : > { %2479 = vmatpush.bf16.msrb.mxu3 %v3703_v11  ;;  %2537 = vmatpush.bf16.msrb.mxu1 %v3719_v24  ;;  %v513_v11 = vrot.slane %v497_v57, 1  ;;  %v992_v24 = vunpack.c.l.b16 %v366_v46  ;;  %v398_v57 = vshll.u32 %v4222_v16, 16  ;;  %v484_v46 = vunpack.c.l.b16 %v240_v44 }
  0x3f   : > { %2508 = vmatpush.bf16.msrb.mxu0 %v3711_v30  ;;  %2430 = vmatmul.bf16.gmra.mxu1 %v1399_v31  ;;  %v3731_v30 = vld [vmem:[%s5133_s1 + $0x1b8] sm:$0xff]  ;;  %v412_v60 = vshll.u32 %v4227_v17, 16 }
  0x40   : > { %v3739_v31 = vld [vmem:[%s5133_s1 + $0x1f8] sm:$0xff]  ;;  %v1382_v54 = vpack.c.b16 %v1004_v26, %v992_v24  ;;  %v3754_v24 = vld [vmem:[%s5133_s1 + $0x270] sm:$0xff] }
  0x41   : > { %2451 = vmatpush.bf16.msrb.mxu2 %v3694_v37  ;;  %v995_v37 = vunpack.c.l.b16 %v513_v11  ;;  %v4277_v26 = vld [vmem:[%s3993_s20 + $0x58] sm:$0x11] }
  0x42   : > { %2480 = vmatpush.bf16.msrb.mxu3 %v3702_v40  ;;  %2538 = vmatpush.bf16.msrb.mxu1 %v3718_v52  ;;  %v1007_v40 = vunpack.c.l.b16 %v515_v12  ;;  %v391_v52 = vshll.u32 %v4209_v9, 16  ;;  %v403_v12 = vshrl.u32 %v4217_v13, 16  ;;  %v3729_v13 = vld [vmem:[%s5133_s1 + $0x1a8] sm:$0xff] }
  0x43   : > { %2509 = vmatpush.bf16.msrb.mxu0 %v3710_v56  ;;  %v1383_v56 = vpack.c.b16 %v1005_v29, %v993_v27  ;;  %v396_v27 = vshrl.u32 %v4222_v16, 16  ;;  %v400_v29 = vrot.slane %v398_v57, 1  ;;  %v3737_v16 = vld [vmem:[%s5133_s1 + $0x1e8] sm:$0xff] }
  0x44   : > { %v1385_v47 = vpack.c.b16 %v1007_v40, %v995_v37  ;;  %v393_v11 = vrot.slane %v391_v52, 1  ;;  %v3745_v37 = vld [vmem:[%s5133_s1 + $0x228] sm:$0xff] }
  0x45   : > { %2452 = vmatpush.bf16.msrb.mxu2 %v3693_v0  ;;  %v1384_v0 = vpack.c.b16 %v1006_v35, %v994_v34  ;;  %v503_v34 = vpack.c.b16 %v335_v43, %v487_v8  ;;  %v338_v35 = vunpack.c.l.b16 %v4277_v26  ;;  %v401_v51 = vor.u32 %v400_v29, %v396_v27  ;;  %v3735_v8 = vld [vmem:[%s5133_s1 + $0x1d8] sm:$0xff] }
  0x46   : > { %2481 = vmatpush.bf16.msrb.mxu3 %v3701_v38  ;;  %2539 = vmatpush.bf16.msrb.mxu1 %v3717_v6  ;;  %v3730_v38 = vld [vmem:[%s5133_s1 + $0x1b0] sm:$0xff] }
  0x47   : > { %2510 = vmatpush.bf16.msrb.mxu0 %v3709_v10  ;;  %v3738_v6 = vld [vmem:[%s5133_s1 + $0x1f0] sm:$0xff]  ;;  %v389_v10 = vshrl.u32 %v4209_v9, 16  ;;  %v410_v9 = vshrl.u32 %v4227_v17, 16  ;;  %v501_v17 = vpack.c.b16 %v333_v42, %v485_v7 }
  0x48   : > { %v243_v7 = vld [vmem:[%s3993_s20 + $0x50] sm:$0xee] }
  0x49   : > { %2453 = vmatpush.bf16.msrb.mxu2 %v3692_v22  ;;  %v407_v22 = vrot.slane %v405_v53, 1  ;;  %v394_v42 = vor.u32 %v393_v11, %v389_v10  ;;  %v517_v52 = vrot.slane %v501_v17, 1  ;;  %v519_v53 = vrot.slane %v503_v34, 1  ;;  %v3734_v34 = vld [vmem:[%s5133_s1 + $0x1d0] sm:$0xff] }
  0x4a   : > { %2482 = vmatpush.bf16.msrb.mxu3 %v3700_v23  ;;  %2540 = vmatpush.bf16.msrb.mxu1 %v3716_v33  ;;  %v3746_v23 = vld [vmem:[%s5133_s1 + $0x230] sm:$0xff]  ;;  %v336_v33 = vunpack.c.l.b16 %v4263_v39  ;;  %v491_v17 = vunpack.c.h.b16 %v243_v7 }
  0x4b   : > { %2511 = vmatpush.bf16.msrb.mxu0 %v3708_v32  ;;  %v502_v32 = vpack.c.b16 %v334_v61, %v486_v3  ;;  %v339_v61 = vunpack.c.h.b16 %v4277_v26  ;;  %v408_v40 = vor.u32 %v407_v22, %v403_v12  ;;  %v1019_v3 = vunpack.c.l.b16 %v517_v52  ;;  %v3743_v12 = vld [vmem:[%s5133_s1 + $0x218] sm:$0xff]  ;;  %v3741_v26 = vld [vmem:[%s5133_s1 + $0x208] sm:$0xff] }
  0x4c   : > { %2454 = vmatmul.bf16.vlgmr.msrb.gmra.mxu2 %v1382_v54  ;;  %v3736_v54 = vld [vmem:[%s5133_s1 + $0x1e0] sm:$0xff]  ;;  %v3751_v22 = vld [vmem:[%s5133_s1 + $0x258] sm:$0xff] }
  0x4d   : > { %2562 = vmatpush.bf16.msra.mxu2 %v3731_v30  ;;  %2483 = vmatmul.bf16.vlgmr.msrb.gmra.mxu3 %v1383_v56  ;;  %v414_v30 = vrot.slane %v412_v60, 1  ;;  %v518_v44 = vrot.slane %v502_v32, 1  ;;  %v4321_v56 = vpack.c.b16 %v338_v35, %v314_v19  ;;  %v3744_v19 = vld [vmem:[%s5133_s1 + $0x220] sm:$0xff]  ;;  %v1028_v60 = vunpack.c.l.b16 %v408_v40 }
  0x4e   : > { %2591 = vmatpush.bf16.msra.mxu3 %v3739_v31  ;;  %2649 = vmatpush.bf16.msra.mxu1 %v3755_v41  ;;  %v500_v31 = vpack.c.b16 %v332_v55, %v484_v46  ;;  %v337_v55 = vunpack.c.h.b16 %v4263_v39 }
  0x4f   : > { %2620 = vmatpush.bf16.msra.mxu0 %v3747_v50  ;;  %2541 = vmatmul.bf16.vlgmr.msrb.gmra.mxu1 %v1385_v47  ;;  %v415_v43 = vor.u32 %v414_v30, %v410_v9  ;;  %v4312_v50 = vpack.c.b16 %v336_v33, %v312_v18  ;;  %v4333_v18 = vpack.c.b16 %v339_v61, %v315_v21  ;;  %v1030_v46 = vunpack.c.l.b16 %v518_v44  ;;  %v3727_v21 = vld [vmem:[%s5133_s1 + $0x198] sm:$0xff] }
  0x50   : > { %2512 = vmatmul.bf16.vlgmr.msrb.gmra.mxu0 %v1384_v0  ;;  %v516_v41 = vrot.slane %v500_v31, 1  ;;  %v4327_v57 = vpack.c.b16 %v337_v55, %v313_v20  ;;  %v1016_v20 = vunpack.c.l.b16 %v394_v42  ;;  %v1017_v0 = vunpack.c.l.b16 %v401_v51  ;;  %v3726_v31 = vld [vmem:[%s5133_s1 + $0x190] sm:$0xff] }
  0x51   : > { %2563 = vmatpush.bf16.msra.mxu2 %v3730_v38  ;;  %v1029_v15 = vunpack.c.l.b16 %v415_v43  ;;  %v1031_v47 = vunpack.c.l.b16 %v519_v53  ;;  %v419_v10 = vshll.u32 %v4312_v50, 16  ;;  %v433_v11 = vshll.u32 %v4321_v56, 16  ;;  %v4371_v43 = vld [vmem:[%s3993_s20 + $0x78] sm:$0x11] }
  0x52   : > { %2592 = vmatpush.bf16.msra.mxu3 %v3738_v6  ;;  %2650 = vmatpush.bf16.msra.mxu1 %v3754_v24  ;;  %v1018_v38 = vunpack.c.l.b16 %v516_v41  ;;  %v242_v6 = vld [vmem:[%s3993_s20 + $0x40] sm:$0xee]  ;;  %v426_v27 = vshll.u32 %v4327_v57, 16  ;;  %v440_v29 = vshll.u32 %v4333_v18, 16  ;;  %v431_v40 = vshrl.u32 %v4321_v56, 16  ;;  %v3742_v56 = vld [vmem:[%s5133_s1 + $0x210] sm:$0xff] }
  0x53   : > { %2621 = vmatpush.bf16.msra.mxu0 %v3746_v23  ;;  %v1400_v23 = vpack.c.b16 %v1028_v60, %v1016_v20  ;;  %v1401_v24 = vpack.c.b16 %v1029_v15, %v1017_v0  ;;  %v488_v30 = vunpack.c.l.b16 %v242_v6  ;;  %v1403_v32 = vpack.c.b16 %v1031_v47, %v1019_v3  ;;  %v3749_v15 = vld [vmem:[%s5133_s1 + $0x248] sm:$0xff] }
  0x54   : > { %v1402_v9 = vpack.c.b16 %v1030_v46, %v1018_v38  ;;  %v421_v42 = vrot.slane %v419_v10, 1  ;;  %v435_v51 = vrot.slane %v433_v11, 1  ;;  %v424_v41 = vshrl.u32 %v4327_v57, 16 }
  0x55   : > { %2564 = vmatpush.bf16.msra.mxu2 %v3729_v13  ;;  %v490_v13 = vunpack.c.l.b16 %v243_v7  ;;  %v428_v44 = vrot.slane %v426_v27, 1  ;;  %v442_v52 = vrot.slane %v440_v29, 1  ;;  %v343_v39 = vunpack.c.h.b16 %v4371_v43  ;;  %v244_v29 = vld [vmem:[%s3993_s20 + $0x60] sm:$0xee] }
  0x56   : > { %2593 = vmatpush.bf16.msra.mxu3 %v3737_v16  ;;  %2651 = vmatpush.bf16.msra.mxu1 %v3753_v36  ;;  %v489_v16 = vunpack.c.h.b16 %v242_v6  ;;  %v417_v36 = vshrl.u32 %v4312_v50, 16  ;;  %v504_v50 = vpack.c.b16 %v336_v33, %v488_v30  ;;  %v3733_v33 = vld [vmem:[%s5133_s1 + $0x1c8] sm:$0xff]  ;;  %v3732_v6 = vld [vmem:[%s5133_s1 + $0x1c0] sm:$0xff] }
  0x57   : > { %2622 = vmatpush.bf16.msra.mxu0 %v3745_v37  ;;  %v4366_v37 = vld [vmem:[%s3993_s20 + $0x68] sm:$0x11]  ;;  %v506_v53 = vpack.c.b16 %v338_v35, %v490_v13  ;;  %v3750_v35 = vld [vmem:[%s5133_s1 + $0x250] sm:$0xff]  ;;  %v429_v60 = vor.u32 %v428_v44, %v424_v41  ;;  %v359_v11 = vpack.c.b16 %v343_v39, %v319_v63 }
  0x58   : > { %v505_v57 = vpack.c.b16 %v337_v55, %v489_v16  ;;  %v341_v20 = vunpack.c.h.b16 %v4366_v37  ;;  %v422_v55 = vor.u32 %v421_v42, %v417_v36  ;;  %v520_v38 = vrot.slane %v504_v50, 1 }
  0x59   : > { %2565 = vmatpush.bf16.msra.mxu2 %v3728_v45  ;;  %v438_v45 = vshrl.u32 %v4333_v18, 16  ;;  %v507_v18 = vpack.c.b16 %v339_v61, %v491_v17  ;;  %v436_v61 = vor.u32 %v435_v51, %v431_v40  ;;  %v522_v46 = vrot.slane %v506_v53, 1 }
  0x5a   : > { %2594 = vmatpush.bf16.msra.mxu3 %v3736_v54  ;;  %2652 = vmatpush.bf16.msra.mxu1 %v3752_v14  ;;  %v3725_v54 = vld [vmem:[%s5133_s1 + $0x188] sm:$0xff]  ;;  %v342_v14 = vunpack.c.l.b16 %v4371_v43  ;;  %v521_v3 = vrot.slane %v505_v57, 1  ;;  %v357_v10 = vpack.c.b16 %v341_v20, %v317_v62  ;;  %v1042_v48 = vunpack.c.l.b16 %v520_v38  ;;  %v3763_v57 = vld [vmem:[%s5133_s1 + $0x2b8] sm:$0xff] }
  0x5b   : > { %2623 = vmatpush.bf16.msra.mxu0 %v3744_v19  ;;  %v340_v19 = vunpack.c.l.b16 %v4366_v37  ;;  %v443_v0 = vor.u32 %v442_v52, %v438_v45  ;;  %v523_v47 = vrot.slane %v507_v18, 1  ;;  %v492_v17 = vunpack.c.l.b16 %v244_v29  ;;  %v3748_v52 = vld [vmem:[%s5133_s1 + $0x240] sm:$0xff]  ;;  %v3770_v37 = vld [vmem:[%s5133_s1 + $0x2f0] sm:$0xff]  ;;  %v3787_v43 = vld [vmem:[%s5133_s1 + $0x378] sm:$0xff] }
  0x5c   : > { %2459 = vmatmul.bf16.gmra.mxu2 %v1400_v23  ;;  %v1041_v23 = vunpack.c.l.b16 %v429_v60  ;;  %v1043_v27 = vunpack.c.l.b16 %v521_v3  ;;  %v493_v42 = vunpack.c.h.b16 %v244_v29  ;;  %v495_v40 = vunpack.c.h.b16 %v245_v49 }
  0x5d   : > { %2566 = vmatpush.bf16.msra.mxu2 %v3727_v21  ;;  %2488 = vmatmul.bf16.gmra.mxu3 %v1401_v24  ;;  %v3724_v21 = vld [vmem:[%s5133_s1 + $0x180] sm:$0xff]  ;;  %v356_v7 = vpack.c.b16 %v340_v19, %v316_v58  ;;  %v1054_v24 = vunpack.c.l.b16 %v522_v46  ;;  %v1055_v62 = vunpack.c.l.b16 %v523_v47  ;;  %v452_v50 = vshrl.u32 %v357_v10, 16 }
  0x5e   : > { %2595 = vmatpush.bf16.msra.mxu3 %v3735_v8  ;;  %2653 = vmatpush.bf16.msra.mxu1 %v3751_v22  ;;  %v358_v8 = vpack.c.b16 %v342_v14, %v318_v59  ;;  %v3740_v58 = vld [vmem:[%s5133_s1 + $0x200] sm:$0xff]  ;;  %v1052_v22 = vunpack.c.l.b16 %v436_v61  ;;  %v1053_v59 = vunpack.c.l.b16 %v443_v0  ;;  %v508_v18 = vpack.c.b16 %v340_v19, %v492_v17  ;;  %v3762_v19 = vld [vmem:[%s5133_s1 + $0x2b0] sm:$0xff] }
  0x5f   : > { %2624 = vmatpush.bf16.msra.mxu0 %v3743_v12  ;;  %2546 = vmatmul.bf16.gmra.mxu1 %v1403_v32  ;;  %v1040_v12 = vunpack.c.l.b16 %v422_v55  ;;  %v468_v32 = vshll.u32 %v359_v11, 16  ;;  %v1420_v16 = vpack.c.b16 %v1054_v24, %v1042_v48  ;;  %v1421_v36 = vpack.c.b16 %v1055_v62, %v1043_v27  ;;  %v3771_v55 = vld [vmem:[%s5133_s1 + $0x2f8] sm:$0xff] }
  0x60   : > { %2517 = vmatmul.bf16.gmra.mxu0 %v1402_v9  ;;  %v447_v9 = vshll.u32 %v356_v7, 16  ;;  %v461_v63 = vshll.u32 %v358_v8, 16  ;;  %v1419_v13 = vpack.c.b16 %v1053_v59, %v1041_v23  ;;  %v445_v51 = vshrl.u32 %v356_v7, 16 }
  0x61   : > { %2567 = vmatpush.bf16.msra.mxu2 %v3726_v31  ;;  %v1418_v30 = vpack.c.b16 %v1052_v22, %v1040_v12  ;;  %v454_v31 = vshll.u32 %v357_v10, 16  ;;  %v459_v44 = vshrl.u32 %v358_v8, 16  ;;  %v509_v61 = vpack.c.b16 %v341_v20, %v493_v42 }
  0x62   : > { %2596 = vmatpush.bf16.msra.mxu3 %v3734_v34  ;;  %2654 = vmatpush.bf16.msra.mxu1 %v3750_v35  ;;  %v494_v34 = vunpack.c.l.b16 %v245_v49  ;;  %v449_v41 = vrot.slane %v447_v9, 1  ;;  %v463_v45 = vrot.slane %v461_v63, 1  ;;  %v4443_v35 = vld [vmem:[%s3993_s20 + $0x18] sm:$0x11]  ;;  %v511_v60 = vpack.c.b16 %v343_v39, %v495_v40  ;;  %v3052_v40 = vld [vmem:[%s3993_s20 + $0x40] sm:$0xff] }
  0x63   : > { %2625 = vmatpush.bf16.msra.mxu0 %v3742_v56  ;;  %v456_v53 = vrot.slane %v454_v31, 1  ;;  %v470_v56 = vrot.slane %v468_v32, 1  ;;  %v560_v38 = vunpack.c.l.b16 %v4443_v35  ;;  %v561_v47 = vunpack.c.h.b16 %v4443_v35  ;;  %v3801_v35 = vld [vmem:[%s5133_s1 + $0x3e8] sm:$0xff] }
  0x64   : > { %v450_v0 = vor.u32 %v449_v41, %v445_v51  ;;  %v527_v7 = vrot.slane %v511_v60, 1  ;;  %v3761_v51 = vld [vmem:[%s5133_s1 + $0x2a8] sm:$0xff] }
  0x65   : > { %2568 = vmatpush.bf16.msra.mxu2 %v3725_v54  ;;  %v466_v54 = vshrl.u32 %v359_v11, 16  ;;  %v457_v20 = vor.u32 %v456_v53, %v452_v50  ;;  %v576_v22 = vpack.c.b16 %v560_v38, %v4022_v25  ;;  %v577_v24 = vpack.c.b16 %v561_v47, %v4028_v28  ;;  %v3778_v50 = vld [vmem:[%s5133_s1 + $0x330] sm:$0xff] }
  0x66   : > { %2597 = vmatpush.bf16.msra.mxu3 %v3733_v33  ;;  %2655 = vmatpush.bf16.msra.mxu1 %v3749_v15  ;;  %v510_v33 = vpack.c.b16 %v342_v14, %v494_v34  ;;  %v3779_v14 = vld [vmem:[%s5133_s1 + $0x338] sm:$0xff]  ;;  %v464_v15 = vor.u32 %v463_v45, %v459_v44  ;;  %v1064_v10 = vunpack.c.l.b16 %v450_v0  ;;  %v1079_v62 = vunpack.c.l.b16 %v527_v7 }
  0x67   : > { %2626 = vmatpush.bf16.msra.mxu0 %v3741_v26  ;;  %v4446_v26 = vld [vmem:[%s3993_s20 + $0x28] sm:$0x11]  ;;  %v471_v39 = vor.u32 %v470_v56, %v466_v54  ;;  %v595_v63 = vshll.u32 %v576_v22, 16  ;;  %v602_v31 = vshll.u32 %v577_v24, 16  ;;  %v593_v17 = vshrl.u32 %v576_v22, 16 }
  0x68   : > { %v562_v46 = vunpack.c.l.b16 %v4446_v26  ;;  %v526_v3 = vrot.slane %v510_v33, 1  ;;  %v563_v8 = vunpack.c.h.b16 %v4446_v26  ;;  %v1076_v11 = vunpack.c.l.b16 %v464_v15  ;;  %v4488_v45 = vld [vmem:[%s3993_s20 + $0x38] sm:$0x11]  ;;  %v4497_v56 = vld [vmem:[%s3993_s20 + $0x48] sm:$0x11]  ;;  %v3768_v33 = vld [vmem:[%s5133_s1 + $0x2e0] sm:$0xff] }
  0x69   : > { %2569 = vmatpush.bf16.msra.mxu2 %v3724_v21  ;;  %v524_v21 = vrot.slane %v508_v18, 1  ;;  %v1077_v12 = vunpack.c.l.b16 %v471_v39  ;;  %v597_v34 = vrot.slane %v595_v63, 1  ;;  %v600_v41 = vshrl.u32 %v577_v24, 16  ;;  %v3760_v18 = vld [vmem:[%s5133_s1 + $0x2a0] sm:$0xff]  ;;  %v3810_v26 = vld [vmem:[%s5133_s1 + $0x430] sm:$0xff] }
  0x6a   : > { %2598 = vmatpush.bf16.msra.mxu3 %v3732_v6  ;;  %2656 = vmatpush.bf16.msra.mxu1 %v3748_v52  ;;  %v525_v6 = vrot.slane %v509_v61, 1  ;;  %v578_v23 = vpack.c.b16 %v562_v46, %v4122_v1  ;;  %v1078_v48 = vunpack.c.l.b16 %v526_v3  ;;  %v579_v29 = vpack.c.b16 %v563_v8, %v4129_v4  ;;  %v3769_v52 = vld [vmem:[%s5133_s1 + $0x2e8] sm:$0xff]  ;;  %v3054_v63 = vld [vmem:[%s3993_s20 + $0x60] sm:$0xff] }
  0x6b   : > { %2627 = vmatpush.bf16.msra.mxu0 %v3740_v58  ;;  %v1065_v58 = vunpack.c.l.b16 %v457_v20  ;;  %v1066_v59 = vunpack.c.l.b16 %v524_v21  ;;  %v1436_v49 = vpack.c.b16 %v1076_v11, %v1064_v10  ;;  %v604_v44 = vrot.slane %v602_v31, 1 }
  0x6c   : > { %2464 = vmatmul.bf16.gmra.mxu2 %v1418_v30  ;;  %v1067_v27 = vunpack.c.l.b16 %v525_v6  ;;  %v609_v30 = vshll.u32 %v578_v23, 16  ;;  %v614_v53 = vshrl.u32 %v579_v29, 16  ;;  %v598_v61 = vor.u32 %v597_v34, %v593_v17 }
  0x6d   : > { %2493 = vmatmul.bf16.gmra.mxu3 %v1419_v13  ;;  %2678 = vmatpush.bf16.msrb.mxu2 %v3763_v57  ;;  %v1437_v9 = vpack.c.b16 %v1077_v12, %v1065_v58  ;;  %v1438_v13 = vpack.c.b16 %v1078_v48, %v1066_v59  ;;  %v3786_v57 = vld [vmem:[%s5133_s1 + $0x370] sm:$0xff]  ;;  %v4514_v0 = vunpack.c.l.b16 %v3052_v40  ;;  %v564_v15 = vunpack.c.l.b16 %v4488_v45 }
  0x6e   : > { %2707 = vmatpush.bf16.msrb.mxu3 %v3771_v55  ;;  %2765 = vmatpush.bf16.msrb.mxu1 %v3787_v43  ;;  %v1439_v32 = vpack.c.b16 %v1079_v62, %v1067_v27  ;;  %v611_v42 = vrot.slane %v609_v30, 1  ;;  %v3777_v55 = vld [vmem:[%s5133_s1 + $0x328] sm:$0xff]  ;;  %v4518_v20 = vunpack.c.h.b16 %v3052_v40  ;;  %v565_v39 = vunpack.c.h.b16 %v4488_v45  ;;  %v4541_v30 = vld [vmem:[%s3993_s20 + $0x58] sm:$0x11]  ;;  %v3808_v45 = vld [vmem:[%s5133_s1 + $0x420] sm:$0xff] }
  0x6f   : > { %2551 = vmatmul.bf16.gmra.mxu1 %v1421_v36  ;;  %2736 = vmatpush.bf16.msrb.mxu0 %v3779_v14  ;;  %v607_v36 = vshrl.u32 %v578_v23, 16  ;;  %v605_v14 = vor.u32 %v604_v44, %v600_v41  ;;  %v567_v21 = vunpack.c.h.b16 %v4497_v56  ;;  %v996_v3 = vunpack.c.l.b16 %v598_v61  ;;  %v3784_v61 = vld [vmem:[%s5133_s1 + $0x360] sm:$0xff] }
  0x70   : > { %2522 = vmatmul.bf16.gmra.mxu0 %v1420_v16  ;;  %v616_v16 = vshll.u32 %v579_v29, 16  ;;  %v580_v7 = vpack.c.b16 %v564_v15, %v4124_v2  ;;  %v581_v12 = vpack.c.b16 %v565_v39, %v4131_v5  ;;  %v1386_v23 = vpack.c.b16 %v4122_v1, %v4022_v25  ;;  %v3759_v25 = vld [vmem:[%s5133_s1 + $0x298] sm:$0xff] }
  0x71   : > { %2679 = vmatpush.bf16.msrb.mxu2 %v3762_v19  ;;  %v612_v60 = vor.u32 %v611_v42, %v607_v36  ;;  %v3785_v19 = vld [vmem:[%s5133_s1 + $0x368] sm:$0xff]  ;;  %v997_v11 = vunpack.c.l.b16 %v605_v14  ;;  %v583_v22 = vpack.c.b16 %v567_v21, %v4518_v20  ;;  %v1387_v59 = vpack.c.b16 %v4129_v4, %v4028_v28  ;;  %v3758_v14 = vld [vmem:[%s5133_s1 + $0x290] sm:$0xff] }
  0x72   : > { %2708 = vmatpush.bf16.msrb.mxu3 %v3770_v37  ;;  %v618_v54 = vrot.slane %v616_v16, 1  ;;  %2766 = vmatpush.bf16.msrb.mxu1 %v3786_v57  ;;  %v566_v37 = vunpack.c.l.b16 %v4497_v56  ;;  %v623_v24 = vshll.u32 %v580_v7, 16  ;;  %v630_v29 = vshll.u32 %v581_v12, 16  ;;  %v3776_v16 = vld [vmem:[%s5133_s1 + $0x320] sm:$0xff] }
  0x73   : > { %2737 = vmatpush.bf16.msrb.mxu0 %v3778_v50  ;;  %v1008_v6 = vunpack.c.l.b16 %v612_v60  ;;  %v621_v28 = vshrl.u32 %v580_v7, 16  ;;  %v628_v17 = vshrl.u32 %v581_v12, 16  ;;  %v642_v36 = vshrl.u32 %v583_v22, 16 }
  0x74   : > { %v619_v43 = vor.u32 %v618_v54, %v614_v53  ;;  %v582_v10 = vpack.c.b16 %v566_v37, %v4514_v0  ;;  %v625_v1 = vrot.slane %v623_v24, 1  ;;  %v632_v34 = vrot.slane %v630_v29, 1 }
  0x75   : > { %2680 = vmatpush.bf16.msrb.mxu2 %v3761_v51  ;;  %v1388_v48 = vpack.c.b16 %v1008_v6, %v996_v3  ;;  %v4557_v51 = vunpack.c.l.b16 %v3054_v63  ;;  %v568_v41 = vunpack.c.l.b16 %v4541_v30  ;;  %v4563_v50 = vunpack.c.h.b16 %v3054_v63 }
  0x76   : > { %2709 = vmatpush.bf16.msrb.mxu3 %v3769_v52  ;;  %2767 = vmatpush.bf16.msrb.mxu1 %v3785_v19  ;;  %v1009_v58 = vunpack.c.l.b16 %v619_v43  ;;  %v637_v27 = vshll.u32 %v582_v10, 16  ;;  %v635_v4 = vshrl.u32 %v582_v10, 16  ;;  %v569_v53 = vunpack.c.h.b16 %v4541_v30  ;;  %v3766_v10 = vld [vmem:[%s5133_s1 + $0x2d0] sm:$0xff] }
  0x77   : > { %2738 = vmatpush.bf16.msrb.mxu0 %v3777_v55  ;;  %v626_v57 = vor.u32 %v625_v1, %v621_v28  ;;  %v3806_v30 = vld [vmem:[%s5133_s1 + $0x410] sm:$0xff] }
  0x78   : > { %v1389_v62 = vpack.c.b16 %v1009_v58, %v997_v11  ;;  %v639_v31 = vrot.slane %v637_v27, 1  ;;  %v3775_v11 = vld [vmem:[%s5133_s1 + $0x318] sm:$0xff] }
  0x79   : > { %2681 = vmatpush.bf16.msrb.mxu2 %v3760_v18  ;;  %v1020_v6 = vunpack.c.l.b16 %v626_v57 }
  0x7a   : > { %2710 = vmatpush.bf16.msrb.mxu3 %v3768_v33  ;;  %v640_v18 = vor.u32 %v639_v31, %v635_v4  ;;  %v633_v33 = vor.u32 %v632_v34, %v628_v17  ;;  %2768 = vmatpush.bf16.msrb.mxu1 %v3784_v61  ;;  %v3055_v31 = vld [vmem:[%s3993_s20 + $0x70] sm:$0xff]  ;;  %v3765_v17 = vld [vmem:[%s5133_s1 + $0x2c8] sm:$0xff] }
  0x7b   : > { %2739 = vmatpush.bf16.msrb.mxu0 %v3776_v16  ;;  %v3056_v16 = vld [vmem:[%s3993_s20 + $0x80] sm:$0xff]  ;;  %v3774_v34 = vld [vmem:[%s5133_s1 + $0x310] sm:$0xff]  ;;  %v4615_v61 = vunpack.c.l.b16 %v3055_v31 }
  0x7c   : > { %2469 = vmatmul.bf16.gmra.mxu2 %v1436_v49  ;;  %v644_v49 = vshll.u32 %v583_v22, 16  ;;  %v1032_v7 = vunpack.c.l.b16 %v640_v18  ;;  %v1021_v58 = vunpack.c.l.b16 %v633_v33 }
  0x7d   : > { %2498 = vmatmul.bf16.gmra.mxu3 %v1437_v9  ;;  %v3053_v9 = vld [vmem:[%s3993_s20 + $0x50] sm:$0xff]  ;;  %2682 = vmatpush.bf16.msrb.mxu2 %v3759_v25 }
  0x7e   : > { %v646_v42 = vrot.slane %v644_v49, 1  ;;  %v4555_v40 = vunpack.c.l.b16 %v3053_v9  ;;  %v4561_v52 = vunpack.c.h.b16 %v3053_v9  ;;  %v3783_v49 = vld [vmem:[%s5133_s1 + $0x358] sm:$0xff] }
  0x7f   : > { %2556 = vmatmul.bf16.gmra.mxu1 %v1439_v32  ;;  %v3767_v32 = vld [vmem:[%s5133_s1 + $0x2d8] sm:$0xff]  ;;  %2740 = vmatpush.bf16.msrb.mxu0 %v3775_v11 }
  0x80   : > { %2527 = vmatmul.bf16.gmra.mxu0 %v1438_v13  ;;  %v4544_v13 = vld [vmem:[%s3993_s20 + $0x68] sm:$0x11]  ;;  %2711 = vmatpush.bf16.msrb.mxu3 %v3767_v32  ;;  %v647_v55 = vor.u32 %v646_v42, %v642_v36  ;;  %v584_v60 = vpack.c.b16 %v568_v41, %v4555_v40  ;;  %v585_v43 = vpack.c.b16 %v569_v53, %v4561_v52  ;;  %v4610_v36 = vld [vmem:[%s3993_s20 + $0x78] sm:$0x11] }
  0x81   : > { %v570_v44 = vunpack.c.l.b16 %v4544_v13  ;;  %v571_v54 = vunpack.c.h.b16 %v4544_v13  ;;  %2683 = vmatpush.bf16.msrb.mxu2 %v3758_v14  ;;  %v3757_v32 = vld [vmem:[%s5133_s1 + $0x288] sm:$0xff]  ;;  %2769 = vmatpush.bf16.msrb.mxu1 %v3783_v49 }
  0x82   : > { %v1033_v12 = vunpack.c.l.b16 %v647_v55  ;;  %v651_v22 = vshll.u32 %v584_v60, 16  ;;  %v658_v24 = vshll.u32 %v585_v43, 16  ;;  %v649_v9 = vshrl.u32 %v584_v60, 16  ;;  %v4613_v42 = vld [vmem:[%s3993_s20 + $0x88] sm:$0x11] }
  0x83   : > { %v586_v19 = vpack.c.b16 %v570_v44, %v4557_v51  ;;  %v587_v3 = vpack.c.b16 %v571_v54, %v4563_v50  ;;  %2741 = vmatpush.bf16.msrb.mxu0 %v3774_v34  ;;  %v4617_v60 = vunpack.c.l.b16 %v3056_v16  ;;  %v574_v14 = vunpack.c.l.b16 %v4613_v42 }
  0x84   : > { %2712 = vmatpush.bf16.msrb.mxu3 %v3766_v10  ;;  %v1407_v29 = vpack.c.b16 %v1033_v12, %v1021_v58  ;;  %v653_v63 = vrot.slane %v651_v22, 1  ;;  %v573_v10 = vunpack.c.h.b16 %v4610_v36  ;;  %v575_v11 = vunpack.c.h.b16 %v4613_v42  ;;  %v3782_v58 = vld [vmem:[%s5133_s1 + $0x350] sm:$0xff] }
  0x85   : > { %v672_v27 = vshll.u32 %v587_v3, 16  ;;  %v663_v25 = vshrl.u32 %v586_v19, 16  ;;  %v670_v1 = vshrl.u32 %v587_v3, 16  ;;  %2684 = vmatpush.bf16.msrb.mxu2 %v3757_v32  ;;  %v4623_v3 = vunpack.c.h.b16 %v3056_v16  ;;  %2770 = vmatpush.bf16.msrb.mxu1 %v3782_v58  ;;  %v4677_v16 = vld [vmem:[%s5134_s2] ss:$0 sm:$0xff] }
  0x86   : > { %v654_v57 = vor.u32 %v653_v63, %v649_v9  ;;  %v590_v9 = vpack.c.b16 %v574_v14, %v4617_v60  ;;  %v3764_v63 = vld [vmem:[%s5133_s1 + $0x2c0] sm:$0xff] }
  0x87   : > { %v674_v4 = vrot.slane %v672_v27, 1 }
  0x88   : > { %2713 = vmatpush.bf16.msrb.mxu3 %v3765_v17 }
  0x89   : > { %v675_v55 = vor.u32 %v674_v4, %v670_v1  ;;  %v1422_v1 = vpack.c.b16 %v4557_v51, %v4555_v40  ;;  %v1423_v4 = vpack.c.b16 %v4563_v50, %v4561_v52 }
  0x8c   : > { %2570 = vmatmul.bf16.vlgmr.msra.gmra.mxu2 %v1386_v23  ;;  %v665_v23 = vshll.u32 %v586_v19, 16  ;;  %v572_v19 = vunpack.c.l.b16 %v4610_v36  ;;  %2714 = vmatpush.bf16.msrb.mxu3 %v3764_v63  ;;  %v691_v63 = vshrl.u32 %v590_v9, 16 }
  0x8d   : > { %2599 = vmatmul.bf16.vlgmr.msra.gmra.mxu3 %v1387_v59  ;;  %v1404_v59 = vpack.c.b16 %v4514_v0, %v4124_v2  ;;  %v656_v2 = vshrl.u32 %v585_v43, 16  ;;  %v4621_v43 = vunpack.c.h.b16 %v3055_v31 }
  0x8e   : > { %v667_v28 = vrot.slane %v665_v23, 1  ;;  %v3756_v23 = vld [vmem:[%s5133_s1 + $0x280] sm:$0xff]  ;;  %v588_v49 = vpack.c.b16 %v572_v19, %v4615_v61 }
  0x8f   : > { %2657 = vmatmul.bf16.vlgmr.msra.gmra.mxu1 %v1389_v62  ;;  %v1406_v62 = vpack.c.b16 %v1032_v7, %v1020_v6  ;;  %v4626_v6 = vld [vmem:[%s3993_s20 + $0x10] sm:$0xee]  ;;  %v4629_v7 = vld [vmem:[%s3993_s20 + $0x20] sm:$0xee]  ;;  %2685 = vmatpush.bf16.msrb.mxu2 %v3756_v23 }
  0x90   : > { %2628 = vmatmul.bf16.vlgmr.msra.gmra.mxu0 %v1388_v48  ;;  %v1405_v48 = vpack.c.b16 %v4518_v20, %v4131_v5  ;;  %v660_v5 = vrot.slane %v658_v24, 1  ;;  %v668_v18 = vor.u32 %v667_v28, %v663_v25  ;;  %v713_v12 = vunpack.c.h.b16 %v4626_v6 }
  0x91   : > { %v715_v22 = vunpack.c.h.b16 %v4629_v7  ;;  %v591_v25 = vpack.c.b16 %v575_v11, %v4623_v3  ;;  %v679_v34 = vshll.u32 %v588_v49, 16 }
  0x92   : > { %v661_v33 = vor.u32 %v660_v5, %v656_v2  ;;  %v729_v24 = vpack.c.b16 %v561_v47, %v713_v12  ;;  %v3773_v47 = vld [vmem:[%s5133_s1 + $0x308] sm:$0xff] }
  0x93   : > { %v731_v27 = vpack.c.b16 %v563_v8, %v715_v22  ;;  %v589_v8 = vpack.c.b16 %v573_v10, %v4621_v43  ;;  %2742 = vmatpush.bf16.msrb.mxu0 %v3773_v47  ;;  %v3781_v5 = vld [vmem:[%s5133_s1 + $0x348] sm:$0xff]  ;;  %v700_v12 = vshll.u32 %v591_v25, 16 }
  0x94   : > { %v745_v28 = vrot.slane %v729_v24, 1  ;;  %2771 = vmatpush.bf16.msrb.mxu1 %v3781_v5 }
  0x95   : > { %v747_v2 = vrot.slane %v731_v27, 1  ;;  %v686_v58 = vshll.u32 %v589_v8, 16  ;;  %v3795_v27 = vld [vmem:[%s5133_s1 + $0x3b8] sm:$0xff] }
  0x96   : > { %v4670_v31 = vunpack.c.l.b16 %v745_v28  ;;  %v3803_v28 = vld [vmem:[%s5133_s1 + $0x3f8] sm:$0xff]  ;;  %2794 = vmatpush.bf16.msra.mxu2 %v3795_v27 }
  0x97   : > { %v4672_v32 = vunpack.c.l.b16 %v747_v2  ;;  %v684_v2 = vshrl.u32 %v589_v8, 16  ;;  %v688_v5 = vrot.slane %v686_v58, 1  ;;  %2823 = vmatpush.bf16.msra.mxu3 %v3803_v28  ;;  %v3794_v8 = vld [vmem:[%s5133_s1 + $0x3b0] sm:$0xff]  ;;  %v3811_v58 = vld [vmem:[%s5133_s1 + $0x438] sm:$0xff] }
  0x99   : > { %v1391_v22 = vpack.c.b16 %v4672_v32, %v4670_v31 }
  0x9a   : > { %2795 = vmatpush.bf16.msra.mxu2 %v3794_v8 }
  0x9c   : > { %2575 = vmatmul.bf16.gmra.mxu2 %v1404_v59  ;;  %v1044_v59 = vunpack.c.l.b16 %v654_v57  ;;  %v693_v57 = vshll.u32 %v590_v9, 16 }
  0x9d   : > { %2604 = vmatmul.bf16.gmra.mxu3 %v1405_v48  ;;  %v1056_v48 = vunpack.c.l.b16 %v668_v18  ;;  %v3772_v18 = vld [vmem:[%s5133_s1 + $0x300] sm:$0xff] }
  0x9e   : > { %2743 = vmatpush.bf16.msrb.mxu0 %v3772_v18  ;;  %v695_v47 = vrot.slane %v693_v57, 1 }
  0x9f   : > { %2662 = vmatmul.bf16.gmra.mxu1 %v1407_v29  ;;  %v1057_v29 = vunpack.c.l.b16 %v675_v55  ;;  %v1424_v17 = vpack.c.b16 %v1056_v48, %v1044_v59  ;;  %v3780_v59 = vld [vmem:[%s5133_s1 + $0x340] sm:$0xff]  ;;  %v677_v48 = vshrl.u32 %v588_v49, 16  ;;  %v702_v49 = vrot.slane %v700_v12, 1 }
  0xa0   : > { %2633 = vmatmul.bf16.gmra.mxu0 %v1406_v62  ;;  %v1045_v62 = vunpack.c.l.b16 %v661_v33  ;;  %2772 = vmatpush.bf16.msrb.mxu1 %v3780_v59 }
  0xa2   : > { %v1425_v55 = vpack.c.b16 %v1057_v29, %v1045_v62  ;;  %v681_v29 = vrot.slane %v679_v34, 1  ;;  %v696_v34 = vor.u32 %v695_v47, %v691_v63  ;;  %2852 = vmatpush.bf16.msra.mxu0 %v3811_v58 }
  0xa4   : > { %v1080_v27 = vunpack.c.l.b16 %v696_v34 }
  0xa6   : > { %2853 = vmatpush.bf16.msra.mxu0 %v3810_v26 }
  0xa9   : > { %v2397_v33 = vpop.f32.mrf.mxu0 }
  0xaa   : > { %v2398_v23 = vadd.f32 %v4677_v16, %v2397_v33 }
  0xac   : > { %v2426_v24 = vpop.f32.mrf.mxu1  ;;  %2580 = vmatmul.bf16.gmra.mxu2 %v1422_v1  ;;  %v698_v1 = vshrl.u32 %v591_v25, 16  ;;  %v3802_v25 = vld [vmem:[%s5133_s1 + $0x3f0] sm:$0xff] }
  0xad   : > { %2609 = vmatmul.bf16.gmra.mxu3 %v1423_v4  ;;  %v4691_v62 = vadd.f32 %v2426_v24, %v2398_v23  ;;  %v689_v23 = vor.u32 %v688_v5, %v684_v2  ;;  %v1440_v2 = vpack.c.b16 %v4617_v60, %v4615_v61 }
  0xae   : > { %v703_v24 = vor.u32 %v702_v49, %v698_v1  ;;  %2824 = vmatpush.bf16.msra.mxu3 %v3802_v25  ;;  %v1441_v1 = vpack.c.b16 %v4623_v3, %v4621_v43  ;;  %v712_v49 = vunpack.c.l.b16 %v4626_v6  ;;  %v3819_v6 = vld [vmem:[%s5133_s1 + $0x478] sm:$0xff] }
  0xaf   : > { %2667 = vmatmul.bf16.gmra.mxu1 %v1425_v55  ;;  %v2407_v4 = vpop.f32.mrf.mxu2 }
  0xb0   : > { %2638 = vmatmul.bf16.gmra.mxu0 %v1424_v17  ;;  %v2436_v18 = vpop.f32.mrf.mxu3  ;;  %v2408_v33 = vadd.f32 %v4677_v16, %v2407_v4  ;;  %v682_v17 = vor.u32 %v681_v29, %v677_v48  ;;  %v1069_v29 = vunpack.c.l.b16 %v689_v23  ;;  %v1081_v63 = vunpack.c.l.b16 %v703_v24  ;;  %2881 = vmatpush.bf16.msra.mxu1 %v3819_v6 }
  0xb1   : > { %v2399_v57 = vpop.f32.mrf.mxu0  ;;  %v714_v4 = vunpack.c.l.b16 %v4629_v7  ;;  %v728_v24 = vpack.c.b16 %v560_v38, %v712_v49  ;;  %v3793_v7 = vld [vmem:[%s5133_s1 + $0x3a8] sm:$0xff] }
  0xb2   : > { %v4697_v9 = vadd.f32 %v2436_v18, %v2408_v33  ;;  %v2400_v59 = vadd.f32 %v4677_v16, %v2399_v57  ;;  %v1068_v48 = vunpack.c.l.b16 %v682_v17  ;;  %v1443_v34 = vpack.c.b16 %v1081_v63, %v1069_v29  ;;  %2796 = vmatpush.bf16.msra.mxu2 %v3793_v7  ;;  %2825 = vmatpush.bf16.msra.mxu3 %v3801_v35  ;;  %v4743_v29 = vld [vmem:[%s3993_s20 + $0x20] sm:$0xff]  ;;  %v4746_v63 = vld [vmem:[%s3993_s20 + $0x30] sm:$0xff] }
  0xb3   : > { %v744_v25 = vrot.slane %v728_v24, 1  ;;  %v3809_v24 = vld [vmem:[%s5133_s1 + $0x428] sm:$0xff]  ;;  %v771_v6 = vunpack.c.h.b16 %v4746_v63 }
  0xb4   : > { %v2428_v55 = vpop.f32.mrf.mxu1  ;;  %v1442_v18 = vpack.c.b16 %v1080_v27, %v1068_v48  ;;  %2854 = vmatpush.bf16.msra.mxu0 %v3809_v24 }
  0xb5   : > { %v4709_v12 = vadd.f32 %v2428_v55, %v2400_v59  ;;  %v730_v59 = vpack.c.b16 %v562_v46, %v714_v4  ;;  %v3818_v4 = vld [vmem:[%s5133_s1 + $0x470] sm:$0xff] }
  0xb6   : > { %2882 = vmatpush.bf16.msra.mxu1 %v3818_v4 }
  0xb7   : > { %v2409_v47 = vpop.f32.mrf.mxu2  ;;  %v746_v58 = vrot.slane %v730_v59, 1  ;;  %v769_v59 = vunpack.c.h.b16 %v4743_v29 }
  0xb8   : > { %v2438_v28 = vpop.f32.mrf.mxu3  ;;  %v2410_v5 = vadd.f32 %v4677_v16, %v2409_v47  ;;  %2855 = vmatpush.bf16.msra.mxu0 %v3808_v45 }
  0xb9   : > { %v2402_v17 = vpop.f32.mrf.mxu0  ;;  %v1010_v49 = vunpack.c.l.b16 %v746_v58  ;;  %v1393_v4 = vpack.c.b16 %v771_v6, %v769_v59 }
  0xba   : > { %v4718_v33 = vadd.f32 %v2438_v28, %v2410_v5  ;;  %v2403_v57 = vadd.f32 %v4677_v16, %v2402_v17  ;;  %v3068_v5 = vld [vmem:[%s3993_s20 + $0x40] sm:$0xee] }
  0xbb   : > { %v3800_v17 = vld [vmem:[%s5133_s1 + $0x3e0] sm:$0xff]  ;;  %v719_v58 = vunpack.c.h.b16 %v3068_v5 }
  0xbc   : > { %v2431_v23 = vpop.f32.mrf.mxu1  ;;  %2585 = vmatmul.bf16.gmra.mxu2 %v1440_v2  ;;  %v3067_v2 = vld [vmem:[%s3993_s20 + $0x30] sm:$0xee]  ;;  %2826 = vmatpush.bf16.msra.mxu3 %v3800_v17 }
  0xbd   : > { %2614 = vmatmul.bf16.gmra.mxu3 %v1441_v1  ;;  %v4731_v55 = vadd.f32 %v2431_v23, %v2403_v57  ;;  %v998_v1 = vunpack.c.l.b16 %v744_v25  ;;  %v768_v57 = vunpack.c.l.b16 %v4743_v29  ;;  %v770_v23 = vunpack.c.l.b16 %v4746_v63  ;;  %v3090_v29 = vld [vmem:[%s3993_s20 + $0x30] sm:$0xee] }
  0xbe   : > { %v716_v26 = vunpack.c.l.b16 %v3067_v2  ;;  %v717_v25 = vunpack.c.h.b16 %v3067_v2 }
  0xbf   : > { %2672 = vmatmul.bf16.gmra.mxu1 %v1443_v34  ;;  %v2412_v38 = vpop.f32.mrf.mxu2 }
  0xc0   : > { %2643 = vmatmul.bf16.gmra.mxu0 %v1442_v18  ;;  %v2441_v46 = vpop.f32.mrf.mxu3  ;;  %v2413_v8 = vadd.f32 %v4677_v16, %v2412_v38  ;;  %v3792_v18 = vld [vmem:[%s5133_s1 + $0x3a0] sm:$0xff]  ;;  %v718_v38 = vunpack.c.l.b16 %v3068_v5  ;;  %v733_v5 = vpack.c.b16 %v565_v39, %v717_v25 }
  0xc1   : > { %v2404_v27 = vpop.f32.mrf.mxu0  ;;  %2797 = vmatpush.bf16.msra.mxu2 %v3792_v18 }
  0xc2   : > { %v4740_v48 = vadd.f32 %v2441_v46, %v2413_v8  ;;  %v2405_v47 = vadd.f32 %v4677_v16, %v2404_v27  ;;  %v1390_v8 = vpack.c.b16 %v1010_v49, %v998_v1  ;;  %v1392_v27 = vpack.c.b16 %v770_v23, %v768_v57  ;;  %v3817_v49 = vld [vmem:[%s5133_s1 + $0x468] sm:$0xff] }
  0xc3   : > { %v734_v2 = vpack.c.b16 %v566_v37, %v718_v38  ;;  %v735_v1 = vpack.c.b16 %v567_v21, %v719_v58  ;;  %v3799_v37 = vld [vmem:[%s5133_s1 + $0x3d8] sm:$0xff]  ;;  %2883 = vmatpush.bf16.msra.mxu1 %v3817_v49 }
  0xc4   : > { %v2433_v28 = vpop.f32.mrf.mxu1  ;;  %2827 = vmatpush.bf16.msra.mxu3 %v3799_v37 }
  0xc5   : > { %v4760_v34 = vadd.f32 %v2433_v28, %v2405_v47  ;;  %v750_v31 = vrot.slane %v734_v2, 1  ;;  %v751_v17 = vrot.slane %v735_v1, 1  ;;  %v3807_v2 = vld [vmem:[%s5133_s1 + $0x418] sm:$0xff] }
  0xc6   : > { %2856 = vmatpush.bf16.msra.mxu0 %v3807_v2 }
  0xc7   : > { %v2414_v7 = vpop.f32.mrf.mxu2  ;;  %v1034_v38 = vunpack.c.l.b16 %v750_v31  ;;  %v1410_v31 = vpack.c.b16 %v4555_v40, %v4514_v0 }
  0xc8   : > { %v2443_v35 = vpop.f32.mrf.mxu3  ;;  %v2415_v46 = vadd.f32 %v4677_v16, %v2414_v7  ;;  %v732_v16 = vpack.c.b16 %v564_v15, %v716_v26  ;;  %v3791_v15 = vld [vmem:[%s5133_s1 + $0x398] sm:$0xff] }
  0xc9   : > { %2798 = vmatpush.bf16.msra.mxu2 %v3791_v15 }
  0xca   : > { %v4774_v47 = vadd.f32 %v2443_v35, %v2415_v46  ;;  %v748_v21 = vrot.slane %v732_v16, 1  ;;  %v3069_v46 = vld [vmem:[%s3993_s20 + $0x50] sm:$0xee]  ;;  %2857 = vmatpush.bf16.msra.mxu0 %v3806_v30 }
  0xcb   : > { %v3798_v16 = vld [vmem:[%s5133_s1 + $0x3d0] sm:$0xff]  ;;  %v720_v15 = vunpack.c.l.b16 %v3069_v46 }
  0xcc   : > { %v2542_v18 = vpop.f32.mrf.mxu1  ;;  %2686 = vmatmul.bf16.vlgmr.msrb.gmra.mxu2 %v1390_v8  ;;  %v1022_v26 = vunpack.c.l.b16 %v748_v21  ;;  %v3070_v8 = vld [vmem:[%s3993_s20 + $0x60] sm:$0xee]  ;;  %2828 = vmatpush.bf16.msra.mxu3 %v3798_v16 }
  0xcd   : > { %v2513_v28 = vpop.f32.mrf.mxu0  ;;  %2715 = vmatmul.bf16.vlgmr.msrb.gmra.mxu3 %v1391_v22  ;;  %v749_v22 = vrot.slane %v733_v5, 1  ;;  %v722_v37 = vunpack.c.l.b16 %v3070_v8  ;;  %v723_v21 = vunpack.c.h.b16 %v3070_v8  ;;  %v3815_v8 = vld [vmem:[%s5133_s1 + $0x458] sm:$0xff] }
  0xce   : > { %v1408_v49 = vpack.c.b16 %v1034_v38, %v1022_v26 }
  0xcf   : > { %2773 = vmatmul.bf16.vlgmr.msrb.gmra.mxu1 %v1393_v4  ;;  %v2455_v56 = vpop.f32.mrf.mxu2  ;;  %v1023_v58 = vunpack.c.l.b16 %v749_v22  ;;  %v3816_v4 = vld [vmem:[%s5133_s1 + $0x460] sm:$0xff]  ;;  %v738_v26 = vpack.c.b16 %v570_v44, %v722_v37  ;;  %v3797_v44 = vld [vmem:[%s5133_s1 + $0x3c8] sm:$0xff] }
  0xd0   : > { %2744 = vmatmul.bf16.vlgmr.msrb.gmra.mxu0 %v1392_v27  ;;  %v2484_v39 = vpop.f32.mrf.mxu3  ;;  %v2456_v32 = vadd.f32 %v2455_v56, %v4691_v62  ;;  %v1035_v27 = vunpack.c.l.b16 %v751_v17  ;;  %v3790_v62 = vld [vmem:[%s5133_s1 + $0x390] sm:$0xff]  ;;  %2884 = vmatpush.bf16.msra.mxu1 %v3816_v4 }
  0xd1   : > { %2799 = vmatpush.bf16.msra.mxu2 %v3790_v62  ;;  %2829 = vmatpush.bf16.msra.mxu3 %v3797_v44  ;;  %v3804_v44 = vld [vmem:[%s5133_s1 + $0x400] sm:$0xff] }
  0xd2   : > { %v2485_v24 = vadd.f32 %v2484_v39, %v2456_v32  ;;  %v1409_v56 = vpack.c.b16 %v1035_v27, %v1023_v58  ;;  %v721_v39 = vunpack.c.h.b16 %v3069_v46  ;;  %v739_v46 = vpack.c.b16 %v571_v54, %v723_v21  ;;  %v3805_v21 = vld [vmem:[%s5133_s1 + $0x408] sm:$0xff] }
  0xd3   : > { %2858 = vmatpush.bf16.msra.mxu0 %v3805_v21 }
  0xd4   : > { %v2544_v35 = vpop.f32.mrf.mxu1  ;;  %v2514_v25 = vadd.f32 %v2513_v28, %v2485_v24  ;;  %v736_v24 = vpack.c.b16 %v568_v41, %v720_v15  ;;  %v737_v38 = vpack.c.b16 %v569_v53, %v721_v39  ;;  %v3789_v41 = vld [vmem:[%s5133_s1 + $0x388] sm:$0xff]  ;;  %2885 = vmatpush.bf16.msra.mxu1 %v3815_v8  ;;  %v755_v4 = vrot.slane %v739_v46, 1  ;;  %v3814_v15 = vld [vmem:[%s5133_s1 + $0x450] sm:$0xff]  ;;  %v3796_v39 = vld [vmem:[%s5133_s1 + $0x3c0] sm:$0xff] }
  0xd5   : > { %v2515_v7 = vpop.f32.mrf.mxu0  ;;  %2800 = vmatpush.bf16.msra.mxu2 %v3789_v41  ;;  %2830 = vmatpush.bf16.msra.mxu3 %v3796_v39  ;;  %v1428_v41 = vpack.c.b16 %v4615_v61, %v4557_v51  ;;  %v4909_v39 = vld [vmem:[%s3993_s20 + $0x90] sm:$0xff] }
  0xd6   : > { %v4818_v28 = vadd.f32 %v2542_v18, %v2514_v25  ;;  %v1411_v18 = vpack.c.b16 %v4561_v52, %v4518_v20  ;;  %v754_v25 = vrot.slane %v738_v26, 1  ;;  %v753_v27 = vrot.slane %v737_v38, 1  ;;  %v3813_v26 = vld [vmem:[%s5133_s1 + $0x448] sm:$0xff] }
  0xd7   : > { %v2457_v5 = vpop.f32.mrf.mxu2  ;;  %2859 = vmatpush.bf16.msra.mxu0 %v3804_v44 }
  0xd8   : > { %v2486_v1 = vpop.f32.mrf.mxu3  ;;  %v2458_v45 = vadd.f32 %v2457_v5, %v4709_v12  ;;  %2886 = vmatpush.bf16.msra.mxu1 %v3814_v15 }
  0xda   : > { %v2487_v32 = vadd.f32 %v2486_v1, %v2458_v45  ;;  %v1058_v1 = vunpack.c.l.b16 %v754_v25  ;;  %v1047_v45 = vunpack.c.l.b16 %v753_v27  ;;  %v3812_v27 = vld [vmem:[%s5133_s1 + $0x440] sm:$0xff] }
  0xdc   : > { %v4825_v17 = vpop.f32.mrf.mxu1  ;;  %v2516_v12 = vadd.f32 %v2515_v7, %v2487_v32  ;;  %2691 = vmatmul.bf16.gmra.mxu2 %v1408_v49  ;;  %v752_v7 = vrot.slane %v736_v24, 1  ;;  %v3072_v49 = vld [vmem:[%s3993_s20 + $0x80] sm:$0xee]  ;;  %2887 = vmatpush.bf16.msra.mxu1 %v3813_v26 }
  0xdd   : > { %v2518_v22 = vpop.f32.mrf.mxu0  ;;  %2720 = vmatmul.bf16.gmra.mxu3 %v1409_v56  ;;  %v1059_v56 = vunpack.c.l.b16 %v755_v4  ;;  %v726_v24 = vunpack.c.l.b16 %v3072_v49  ;;  %v727_v8 = vunpack.c.h.b16 %v3072_v49 }
  0xde   : > { %v4847_v13 = vadd.f32 %v2544_v35, %v2516_v12  ;;  %v1046_v5 = vunpack.c.l.b16 %v752_v7  ;;  %v3071_v35 = vld [vmem:[%s3993_s20 + $0x70] sm:$0xee]  ;;  %v4876_v7 = vld [vmem:[%s3993_s20 + $0x28] sm:$0x11] }
  0xdf   : > { %2778 = vmatmul.bf16.gmra.mxu1 %v1411_v18  ;;  %v2460_v53 = vpop.f32.mrf.mxu2  ;;  %v724_v18 = vunpack.c.l.b16 %v3071_v35  ;;  %v1427_v38 = vpack.c.b16 %v1059_v56, %v1047_v45  ;;  %v725_v46 = vunpack.c.h.b16 %v3071_v35 }
  0xe0   : > { %2749 = vmatmul.bf16.gmra.mxu0 %v1410_v31  ;;  %v2489_v54 = vpop.f32.mrf.mxu3  ;;  %v2461_v58 = vadd.f32 %v2460_v53, %v4731_v55  ;;  %v3788_v55 = vld [vmem:[%s5133_s1 + $0x380] sm:$0xff]  ;;  %2888 = vmatpush.bf16.msra.mxu1 %v3812_v27 }
  0xe1   : > { %2801 = vmatpush.bf16.msra.mxu2 %v3788_v55  ;;  %v740_v25 = vpack.c.b16 %v572_v19, %v724_v18  ;;  %v743_v19 = vpack.c.b16 %v575_v11, %v727_v8 }
  0xe2   : > { %v2490_v62 = vadd.f32 %v2489_v54, %v2461_v58  ;;  %v1429_v54 = vpack.c.b16 %v4621_v43, %v4563_v50  ;;  %v742_v58 = vpack.c.b16 %v574_v14, %v726_v24  ;;  %v792_v14 = vunpack.c.l.b16 %v4876_v7 }
  0xe3   : > { %v759_v45 = vrot.slane %v743_v19, 1  ;;  %v4939_v19 = vld [vmem:[%s3993_s20 + $0x58] sm:$0x11] }
  0xe4   : > { %v2549_v2 = vpop.f32.mrf.mxu1  ;;  %v2519_v37 = vadd.f32 %v2518_v22, %v2490_v62  ;;  %v1426_v22 = vpack.c.b16 %v1058_v1, %v1046_v5  ;;  %v4889_v62 = vld [vmem:[%s3993_s20 + $0x38] sm:$0x11]  ;;  %v741_v1 = vpack.c.b16 %v573_v10, %v725_v46  ;;  %v756_v10 = vrot.slane %v740_v25, 1 }
  0xe5   : > { %v2520_v16 = vpop.f32.mrf.mxu0  ;;  %v795_v49 = vunpack.c.h.b16 %v4889_v62  ;;  %v758_v11 = vrot.slane %v742_v58, 1  ;;  %v1083_v26 = vunpack.c.l.b16 %v759_v45 }
  0xe6   : > { %v4886_v4 = vadd.f32 %v4825_v17, %v2519_v37  ;;  %v794_v17 = vunpack.c.l.b16 %v4889_v62  ;;  %v757_v37 = vrot.slane %v741_v1, 1  ;;  %v4936_v1 = vld [vmem:[%s3993_s20 + $0x48] sm:$0x11] }
  0xe7   : > { %v2462_v31 = vpop.f32.mrf.mxu2  ;;  %v1082_v18 = vunpack.c.l.b16 %v758_v11 }
  0xe8   : > { %v2491_v32 = vpop.f32.mrf.mxu3  ;;  %v2463_v12 = vadd.f32 %v2462_v31, %v4760_v34  ;;  %v1071_v24 = vunpack.c.l.b16 %v757_v37 }
  0xea   : > { %v2492_v30 = vadd.f32 %v2491_v32, %v2463_v12  ;;  %v1070_v32 = vunpack.c.l.b16 %v756_v10  ;;  %v782_v12 = vunpack.c.l.b16 %v4909_v39  ;;  %v947_v10 = vunpack.c.h.b16 %v3090_v29 }
  0xec   : > { %v2552_v34 = vpop.f32.mrf.mxu1  ;;  %v2521_v5 = vadd.f32 %v2520_v16, %v2492_v30  ;;  %2696 = vmatmul.bf16.gmra.mxu2 %v1426_v22  ;;  %v793_v16 = vunpack.c.h.b16 %v4876_v7  ;;  %v1446_v58 = vpack.c.b16 %v782_v12, %v4617_v60 }
  0xed   : > { %v2523_v53 = vpop.f32.mrf.mxu0  ;;  %2725 = vmatmul.bf16.gmra.mxu3 %v1427_v38  ;;  %v3089_v38 = vld [vmem:[%s3993_s20 + $0x20] sm:$0xee] }
  0xee   : > { %v4896_v35 = vadd.f32 %v2549_v2, %v2521_v5  ;;  %v4906_v2 = vpack.c.b16 %v792_v14, %v768_v57  ;;  %v809_v21 = vpack.c.b16 %v793_v16, %v769_v59  ;;  %v811_v57 = vpack.c.b16 %v795_v49, %v771_v6 }
  0xef   : > { %2783 = vmatmul.bf16.gmra.mxu1 %v1429_v54  ;;  %v2465_v15 = vpop.f32.mrf.mxu2  ;;  %v1445_v54 = vpack.c.b16 %v1083_v26, %v1071_v24  ;;  %v944_v27 = vunpack.c.l.b16 %v3089_v38  ;;  %v946_v5 = vunpack.c.l.b16 %v3090_v29  ;;  %v796_v24 = vunpack.c.l.b16 %v4936_v1 }
  0xf0   : > { %2754 = vmatmul.bf16.gmra.mxu0 %v1428_v41  ;;  %v2494_v36 = vpop.f32.mrf.mxu3  ;;  %v2466_v42 = vadd.f32 %v2465_v15, %v4697_v9  ;;  %v810_v9 = vpack.c.b16 %v794_v17, %v770_v23  ;;  %v783_v23 = vunpack.c.h.b16 %v4909_v39  ;;  %v827_v59 = vshll.u32 %v4906_v2, 16 }
  0xf1   : > { %v834_v46 = vshll.u32 %v809_v21, 16  ;;  %v848_v44 = vshll.u32 %v811_v57, 16  ;;  %v825_v25 = vshrl.u32 %v4906_v2, 16  ;;  %v832_v45 = vshrl.u32 %v809_v21, 16 }
  0xf2   : > { %v2495_v56 = vadd.f32 %v2494_v36, %v2466_v42  ;;  %v841_v63 = vshll.u32 %v810_v9, 16  ;;  %v945_v36 = vunpack.c.h.b16 %v3089_v38  ;;  %v829_v42 = vrot.slane %v827_v59, 1 }
  0xf3   : > { %v839_v11 = vshrl.u32 %v810_v9, 16  ;;  %v798_v26 = vunpack.c.l.b16 %v4939_v19  ;;  %v960_v38 = vpack.c.b16 %v792_v14, %v944_v27  ;;  %v962_v9 = vpack.c.b16 %v794_v17, %v946_v5 }
  0xf4   : > { %v2554_v31 = vpop.f32.mrf.mxu1  ;;  %v2524_v22 = vadd.f32 %v2523_v53, %v2495_v56  ;;  %v1444_v53 = vpack.c.b16 %v1082_v18, %v1070_v32  ;;  %v843_v37 = vrot.slane %v841_v63, 1  ;;  %v836_v56 = vrot.slane %v834_v46, 1 }
  0xf5   : > { %v2525_v55 = vpop.f32.mrf.mxu0  ;;  %v846_v32 = vshrl.u32 %v811_v57, 16  ;;  %v961_v21 = vpack.c.b16 %v793_v16, %v945_v36  ;;  %v797_v29 = vunpack.c.h.b16 %v4936_v1  ;;  %v799_v59 = vunpack.c.h.b16 %v4939_v19 }
  0xf6   : > { %v4928_v41 = vadd.f32 %v2552_v34, %v2524_v22  ;;  %v850_v22 = vrot.slane %v848_v44, 1  ;;  %v844_v14 = vor.u32 %v843_v37, %v839_v11  ;;  %v837_v17 = vor.u32 %v836_v56, %v832_v45  ;;  %v3091_v11 = vld [vmem:[%s3993_s20 + $0x40] sm:$0xee]  ;;  %v3092_v37 = vld [vmem:[%s3993_s20 + $0x50] sm:$0xee] }
  0xf7   : > { %v2467_v8 = vpop.f32.mrf.mxu2  ;;  %v812_v7 = vpack.c.b16 %v796_v24, %v4514_v0  ;;  %v4965_v62 = vpack.c.b16 %v798_v26, %v4555_v40  ;;  %v976_v16 = vrot.slane %v960_v38, 1  ;;  %v815_v0 = vpack.c.b16 %v799_v59, %v4561_v52 }
  0xf8   : > { %v2496_v6 = vpop.f32.mrf.mxu3  ;;  %v2468_v30 = vadd.f32 %v2467_v8, %v4718_v33  ;;  %v1447_v33 = vpack.c.b16 %v783_v23, %v4623_v3  ;;  %v830_v8 = vor.u32 %v829_v42, %v825_v25  ;;  %v851_v44 = vor.u32 %v850_v22, %v846_v32 }
  0xf9   : > { %v1012_v40 = vunpack.c.l.b16 %v844_v14  ;;  %v1001_v5 = vunpack.c.l.b16 %v837_v17  ;;  %v869_v36 = vshll.u32 %v4965_v62, 16  ;;  %v853_v52 = vshrl.u32 %v812_v7, 16  ;;  %v4981_v17 = vld [vmem:[%s3993_s20 + $0x68] sm:$0x11] }
  0xfa   : > { %v2497_v15 = vadd.f32 %v2496_v6, %v2468_v30  ;;  %v876_v22 = vshll.u32 %v815_v0, 16 }
  0xfb   : > { %v871_v14 = vrot.slane %v869_v36, 1 }
  0xfc   : > { %v2557_v2 = vpop.f32.mrf.mxu1  ;;  %v2526_v18 = vadd.f32 %v2525_v55, %v2497_v15  ;;  %2701 = vmatmul.bf16.gmra.mxu2 %v1444_v53  ;;  %v963_v55 = vpack.c.b16 %v795_v49, %v947_v10  ;;  %v978_v49 = vrot.slane %v962_v9, 1  ;;  %v977_v53 = vrot.slane %v961_v21, 1 }
  0xfd   : > { %v2528_v34 = vpop.f32.mrf.mxu0  ;;  %2730 = vmatmul.bf16.gmra.mxu3 %v1445_v54  ;;  %v1013_v15 = vunpack.c.l.b16 %v851_v44  ;;  %v1002_v10 = vunpack.c.l.b16 %v976_v16 }
  0xfe   : > { %v4954_v57 = vadd.f32 %v2554_v31, %v2526_v18  ;;  %v979_v54 = vrot.slane %v963_v55, 1  ;;  %v1014_v42 = vunpack.c.l.b16 %v978_v49  ;;  %v1003_v45 = vunpack.c.l.b16 %v977_v53 }
  0xff   : > { %2788 = vmatmul.bf16.gmra.mxu1 %v1447_v33  ;;  %v2470_v63 = vpop.f32.mrf.mxu2  ;;  %v855_v33 = vshll.u32 %v812_v7, 16  ;;  %v1395_v21 = vpack.c.b16 %v1013_v15, %v1001_v5  ;;  %v948_v55 = vunpack.c.l.b16 %v3091_v11  ;;  %v949_v49 = vunpack.c.h.b16 %v3091_v11 }
 0x100   : > { %2759 = vmatmul.bf16.gmra.mxu0 %v1446_v58  ;;  %v2499_v46 = vpop.f32.mrf.mxu3  ;;  %v2471_v6 = vadd.f32 %v2470_v63, %v4740_v48  ;;  %v813_v48 = vpack.c.b16 %v797_v29, %v4518_v20  ;;  %v1000_v58 = vunpack.c.l.b16 %v830_v8  ;;  %v1015_v56 = vunpack.c.l.b16 %v979_v54 }
 0x101   : > { %v950_v63 = vunpack.c.l.b16 %v3092_v37  ;;  %v867_v8 = vshrl.u32 %v4965_v62, 16  ;;  %v964_v62 = vpack.c.b16 %v796_v24, %v948_v55  ;;  %v800_v15 = vunpack.c.l.b16 %v4981_v17 }
 0x102   : > { %v2500_v31 = vadd.f32 %v2499_v46, %v2471_v6  ;;  %v862_v32 = vshll.u32 %v813_v48, 16  ;;  %v1394_v38 = vpack.c.b16 %v1012_v40, %v1000_v58  ;;  %v857_v46 = vrot.slane %v855_v33, 1 }
 0x103   : > { %v1396_v6 = vpack.c.b16 %v1014_v42, %v1002_v10  ;;  %v1397_v16 = vpack.c.b16 %v1015_v56, %v1003_v45  ;;  %v860_v53 = vshrl.u32 %v813_v48, 16  ;;  %v878_v58 = vrot.slane %v876_v22, 1 }
 0x104   : > { %v2559_v25 = vpop.f32.mrf.mxu1  ;;  %v2529_v27 = vadd.f32 %v2528_v34, %v2500_v31  ;;  %v951_v31 = vunpack.c.h.b16 %v3092_v37  ;;  %v864_v54 = vrot.slane %v862_v32, 1  ;;  %v966_v5 = vpack.c.b16 %v798_v26, %v950_v63 }
 0x105   : > { %v2530_v30 = vpop.f32.mrf.mxu0  ;;  %v801_v48 = vunpack.c.h.b16 %v4981_v17  ;;  %v872_v42 = vor.u32 %v871_v14, %v867_v8  ;;  %v980_v32 = vrot.slane %v964_v62, 1  ;;  %v5004_v1 = vpack.c.b16 %v800_v15, %v4557_v51  ;;  %v3094_v14 = vld [vmem:[%s3993_s20 + $0x70] sm:$0xee] }
 0x106   : > { %v4976_v20 = vadd.f32 %v2557_v2, %v2529_v27  ;;  %v4984_v2 = vld [vmem:[%s3993_s20 + $0x78] sm:$0x11]  ;;  %v967_v36 = vpack.c.b16 %v799_v59, %v951_v31  ;;  %v865_v11 = vor.u32 %v864_v54, %v860_v53  ;;  %v982_v22 = vrot.slane %v966_v5, 1 }
 0x107   : > { %v2472_v18 = vpop.f32.mrf.mxu2  ;;  %v802_v33 = vunpack.c.l.b16 %v4984_v2  ;;  %v803_v45 = vunpack.c.h.b16 %v4984_v2  ;;  %v1036_v51 = vunpack.c.l.b16 %v872_v42  ;;  %v1026_v55 = vunpack.c.l.b16 %v980_v32  ;;  %v5030_v42 = vld [vmem:[%s3993_s20 + $0x98] sm:$0x11] }
 0x108   : > { %v2501_v34 = vpop.f32.mrf.mxu3  ;;  %v2473_v9 = vadd.f32 %v2472_v18, %v4774_v47  ;;  %v874_v47 = vshrl.u32 %v815_v0, 16  ;;  %v858_v0 = vor.u32 %v857_v46, %v853_v52  ;;  %v983_v52 = vrot.slane %v967_v36, 1 }
 0x109   : > { %v5009_v19 = vpack.c.b16 %v802_v33, %v4615_v61  ;;  %v1038_v63 = vunpack.c.l.b16 %v982_v22  ;;  %v883_v53 = vshll.u32 %v5004_v1, 16  ;;  %v954_v62 = vunpack.c.l.b16 %v3094_v14 }
 0x10a   : > { %v2502_v44 = vadd.f32 %v2501_v34, %v2473_v9  ;;  %v879_v26 = vor.u32 %v878_v58, %v874_v47  ;;  %v1024_v34 = vunpack.c.l.b16 %v858_v0  ;;  %v1039_v8 = vunpack.c.l.b16 %v983_v52  ;;  %v5026_v0 = vld [vmem:[%s3993_s20 + $0x88] sm:$0x11] }
 0x10b   : > { %v897_v54 = vshll.u32 %v5009_v19, 16  ;;  %v807_v2 = vunpack.c.h.b16 %v5030_v42 }
 0x10c   : > { %v2658_v40 = vpop.f32.mrf.mxu1  ;;  %v2531_v27 = vadd.f32 %v2530_v30, %v2502_v44  ;;  %2802 = vmatmul.bf16.vlgmr.msra.gmra.mxu2 %v1394_v38  ;;  %v965_v30 = vpack.c.b16 %v797_v29, %v949_v49  ;;  %v5014_v29 = vpack.c.b16 %v801_v48, %v4563_v50  ;;  %v1025_v38 = vunpack.c.l.b16 %v865_v11  ;;  %v3093_v50 = vld [vmem:[%s3993_s20 + $0x60] sm:$0xee] }
 0x10d   : > { %v2629_v7 = vpop.f32.mrf.mxu0  ;;  %2831 = vmatmul.bf16.vlgmr.msra.gmra.mxu3 %v1395_v21  ;;  %v1037_v9 = vunpack.c.l.b16 %v879_v26  ;;  %v819_v21 = vpack.c.b16 %v803_v45, %v4621_v43  ;;  %v1412_v49 = vpack.c.b16 %v1036_v51, %v1024_v34  ;;  %v953_v5 = vunpack.c.h.b16 %v3093_v50 }
 0x10e   : > { %v4997_v37 = vadd.f32 %v2559_v25, %v2531_v27  ;;  %v981_v25 = vrot.slane %v965_v30, 1  ;;  %v890_v47 = vshll.u32 %v5014_v29, 16  ;;  %v952_v27 = vunpack.c.l.b16 %v3093_v50 }
 0x10f   : > { %2889 = vmatmul.bf16.vlgmr.msra.gmra.mxu1 %v1397_v16  ;;  %v2571_v10 = vpop.f32.mrf.mxu2  ;;  %v1413_v31 = vpack.c.b16 %v1037_v9, %v1025_v38  ;;  %v904_v58 = vshll.u32 %v819_v21, 16  ;;  %v885_v26 = vrot.slane %v883_v53, 1  ;;  %v888_v32 = vshrl.u32 %v5014_v29, 16 }
 0x110   : > { %2860 = vmatmul.bf16.vlgmr.msra.gmra.mxu0 %v1396_v6  ;;  %v2600_v24 = vpop.f32.mrf.mxu3  ;;  %v2572_v56 = vadd.f32 %v2571_v10, %v4818_v28  ;;  %v1027_v46 = vunpack.c.l.b16 %v981_v25  ;;  %v902_v25 = vshrl.u32 %v819_v21, 16  ;;  %v968_v34 = vpack.c.b16 %v800_v15, %v952_v27 }
 0x111   : > { %v906_v52 = vrot.slane %v904_v58, 1  ;;  %v969_v51 = vpack.c.b16 %v801_v48, %v953_v5  ;;  %v804_v38 = vunpack.c.l.b16 %v5026_v0  ;;  %v806_v29 = vunpack.c.l.b16 %v5030_v42  ;;  %v3096_v5 = vld [vmem:[%s3993_s20 + $0x90] sm:$0xee] }
 0x112   : > { %v2601_v59 = vadd.f32 %v2600_v24, %v2572_v56  ;;  %v1415_v10 = vpack.c.b16 %v1039_v8, %v1027_v46  ;;  %v881_v24 = vshrl.u32 %v5004_v1, 16  ;;  %v899_v56 = vrot.slane %v897_v54, 1 }
 0x113   : > { %v970_v1 = vpack.c.b16 %v802_v33, %v954_v62  ;;  %v907_v33 = vor.u32 %v906_v52, %v902_v25  ;;  %v984_v48 = vrot.slane %v968_v34, 1  ;;  %v985_v46 = vrot.slane %v969_v51, 1  ;;  %v3095_v62 = vld [vmem:[%s3993_s20 + $0x80] sm:$0xee]  ;;  %s3675_s20 = sshll.u32 %s5141_s12, 5 }
 0x114   : > { %v2660_v18 = vpop.f32.mrf.mxu1  ;;  %v2630_v61 = vadd.f32 %v2629_v7, %v2601_v59  ;;  %v1414_v7 = vpack.c.b16 %v1038_v63, %v1026_v55  ;;  %v892_v59 = vrot.slane %v890_v47, 1  ;;  %v820_v50 = vpack.c.b16 %v804_v38, %v4617_v60  ;;  %s5106_s25 = scalar_lea.vmem %s5135_s3, %s3675_s20 }
 0x115   : > { %v2631_v28 = vpop.f32.mrf.mxu0  ;;  %v823_v53 = vpack.c.b16 %v807_v2, %v783_v23  ;;  %v1051_v58 = vunpack.c.l.b16 %v985_v46  ;;  %v957_v34 = vunpack.c.h.b16 %v3095_v62 }
 0x116   : > { %v5019_v6 = vadd.f32 %v2658_v40, %v2630_v61  ;;  %v955_v40 = vunpack.c.h.b16 %v3094_v14  ;;  %v886_v61 = vor.u32 %v885_v26, %v881_v24  ;;  %v893_v17 = vor.u32 %v892_v59, %v888_v32 }
 0x117   : > { %v2573_v44 = vpop.f32.mrf.mxu2  ;;  %v956_v32 = vunpack.c.l.b16 %v3095_v62  ;;  %v909_v52 = vshrl.u32 %v820_v50, 16 }
 0x118   : > { %v2602_v16 = vpop.f32.mrf.mxu3  ;;  %v2574_v43 = vadd.f32 %v2573_v44, %v4847_v13  ;;  %v895_v13 = vshrl.u32 %v5009_v19, 16  ;;  %v971_v19 = vpack.c.b16 %v803_v45, %v955_v40  ;;  %v986_v45 = vrot.slane %v970_v1, 1 }
 0x119   : > { %v1049_v54 = vunpack.c.l.b16 %v893_v17  ;;  %v972_v17 = vpack.c.b16 %v804_v38, %v956_v32 }
 0x11a   : > { %v2603_v30 = vadd.f32 %v2602_v16, %v2574_v43  ;;  %v900_v55 = vor.u32 %v899_v56, %v895_v13  ;;  %v987_v8 = vrot.slane %v971_v19, 1  ;;  %v1061_v43 = vunpack.c.l.b16 %v907_v33 }
 0x11b   : > { %v1062_v47 = vunpack.c.l.b16 %v986_v45 }
 0x11c   : > { %v2663_v11 = vpop.f32.mrf.mxu1  ;;  %v2632_v22 = vadd.f32 %v2631_v28, %v2603_v30  ;;  %2807 = vmatmul.bf16.gmra.mxu2 %v1412_v49  ;;  %v805_v28 = vunpack.c.h.b16 %v5026_v0  ;;  %v1048_v49 = vunpack.c.l.b16 %v886_v61  ;;  %v1063_v27 = vunpack.c.l.b16 %v987_v8 }
 0x11d   : > { %v2634_v36 = vpop.f32.mrf.mxu0  ;;  %2836 = vmatmul.bf16.gmra.mxu3 %v1413_v31  ;;  %v1060_v31 = vunpack.c.l.b16 %v900_v55  ;;  %v1431_v39 = vpack.c.b16 %v1061_v43, %v1049_v54  ;;  %v930_v55 = vshrl.u32 %v823_v53, 16 }
 0x11e   : > { %v5043_v63 = vadd.f32 %v2660_v18, %v2632_v22  ;;  %v822_v18 = vpack.c.b16 %v806_v29, %v782_v12  ;;  %v1433_v56 = vpack.c.b16 %v1063_v27, %v1051_v58  ;;  %v958_v22 = vunpack.c.l.b16 %v3096_v5 }
 0x11f   : > { %2894 = vmatmul.bf16.gmra.mxu1 %v1415_v10  ;;  %v2576_v9 = vpop.f32.mrf.mxu2  ;;  %v911_v10 = vshll.u32 %v820_v50, 16 }
 0x120   : > { %2865 = vmatmul.bf16.gmra.mxu0 %v1414_v7  ;;  %v2605_v21 = vpop.f32.mrf.mxu3  ;;  %v2577_v15 = vadd.f32 %v2576_v9, %v4886_v4  ;;  %v821_v4 = vpack.c.b16 %v805_v28, %v4623_v3  ;;  %v1050_v7 = vunpack.c.l.b16 %v984_v48  ;;  %v1430_v3 = vpack.c.b16 %v1060_v31, %v1048_v49 }
 0x121   : > { %v925_v24 = vshll.u32 %v822_v18, 16  ;;  %v913_v51 = vrot.slane %v911_v10, 1  ;;  %v923_v19 = vshrl.u32 %v822_v18, 16  ;;  %v974_v33 = vpack.c.b16 %v806_v29, %v958_v22 }
 0x122   : > { %v2606_v14 = vadd.f32 %v2605_v21, %v2577_v15  ;;  %v918_v23 = vshll.u32 %v821_v4, 16  ;;  %v1432_v13 = vpack.c.b16 %v1062_v47, %v1050_v7  ;;  %v916_v21 = vshrl.u32 %v821_v4, 16 }
 0x123   : > { %v927_v9 = vrot.slane %v925_v24, 1  ;;  %v973_v48 = vpack.c.b16 %v805_v28, %v957_v34  ;;  %v988_v31 = vrot.slane %v972_v17, 1  ;;  %v990_v38 = vrot.slane %v974_v33, 1 }
 0x124   : > { %v2665_v16 = vpop.f32.mrf.mxu1  ;;  %v2635_v60 = vadd.f32 %v2634_v36, %v2606_v14  ;;  %v932_v36 = vshll.u32 %v823_v53, 16  ;;  %v914_v14 = vor.u32 %v913_v51, %v909_v52 }
 0x125   : > { %v2636_v44 = vpop.f32.mrf.mxu0  ;;  %v928_v18 = vor.u32 %v927_v9, %v923_v19  ;;  %v989_v29 = vrot.slane %v973_v48, 1  ;;  %v1074_v7 = vunpack.c.l.b16 %v988_v31  ;;  %v1086_v47 = vunpack.c.l.b16 %v990_v38 }
 0x126   : > { %v5061_v12 = vadd.f32 %v2663_v11, %v2635_v60  ;;  %v959_v11 = vunpack.c.h.b16 %v3096_v5  ;;  %v934_v15 = vrot.slane %v932_v36, 1  ;;  %v1072_v0 = vunpack.c.l.b16 %v914_v14 }
 0x127   : > { %v2578_v40 = vpop.f32.mrf.mxu2  ;;  %v1075_v58 = vunpack.c.l.b16 %v989_v29  ;;  %v1450_v10 = vpack.c.b16 %v1086_v47, %v1074_v7 }
 0x128   : > { %v2607_v30 = vpop.f32.mrf.mxu3  ;;  %v2579_v26 = vadd.f32 %v2578_v40, %v4896_v35  ;;  %v920_v35 = vrot.slane %v918_v23, 1  ;;  %v975_v45 = vpack.c.b16 %v807_v2, %v959_v11  ;;  %v935_v49 = vor.u32 %v934_v15, %v930_v55 }
 0x129   : > { %v1084_v2 = vunpack.c.l.b16 %v928_v18 }
 0x12a   : > { %v2608_v59 = vadd.f32 %v2607_v30, %v2579_v26  ;;  %v921_v4 = vor.u32 %v920_v35, %v916_v21  ;;  %v991_v60 = vrot.slane %v975_v45, 1  ;;  %v1085_v43 = vunpack.c.l.b16 %v935_v49 }
 0x12b   : > { %v1448_v30 = vpack.c.b16 %v1084_v2, %v1072_v0 }
 0x12c   : > { %v2668_v1 = vpop.f32.mrf.mxu1  ;;  %v2637_v61 = vadd.f32 %v2636_v44, %v2608_v59  ;;  %2812 = vmatmul.bf16.gmra.mxu2 %v1430_v3  ;;  %v1087_v27 = vunpack.c.l.b16 %v991_v60 }
 0x12d   : > { %v2639_v25 = vpop.f32.mrf.mxu0  ;;  %2841 = vmatmul.bf16.gmra.mxu3 %v1431_v39 }
 0x12e   : > { %v5070_v46 = vadd.f32 %v2665_v16, %v2637_v61  ;;  %v1073_v16 = vunpack.c.l.b16 %v921_v4  ;;  %v1451_v39 = vpack.c.b16 %v1087_v27, %v1075_v58 }
 0x12f   : > { %2899 = vmatmul.bf16.gmra.mxu1 %v1433_v56  ;;  %v2581_v8 = vpop.f32.mrf.mxu2 }
 0x130   : > { %2870 = vmatmul.bf16.gmra.mxu0 %v1432_v13  ;;  %v2610_v50 = vpop.f32.mrf.mxu3  ;;  %v2582_v44 = vadd.f32 %v2581_v8, %v4928_v41  ;;  %v1449_v3 = vpack.c.b16 %v1085_v43, %v1073_v16 }
 0x132   : > { %v2611_v53 = vadd.f32 %v2610_v50, %v2582_v44 }
 0x134   : > { %v2670_v54 = vpop.f32.mrf.mxu1  ;;  %v2640_v28 = vadd.f32 %v2639_v25, %v2611_v53 }
 0x135   : > { %v2641_v42 = vpop.f32.mrf.mxu0 }
 0x136   : > { %v2669_v41 = vadd.f32 %v2668_v1, %v2640_v28 }
 0x137   : > { %v2583_v62 = vpop.f32.mrf.mxu2 }
 0x138   : > { %v2612_v5 = vpop.f32.mrf.mxu3  ;;  %v2584_v40 = vadd.f32 %v2583_v62, %v4954_v57 }
 0x13a   : > { %v2613_v24 = vadd.f32 %v2612_v5, %v2584_v40 }
 0x13c   : > { %v2673_v23 = vpop.f32.mrf.mxu1  ;;  %v2642_v36 = vadd.f32 %v2641_v42, %v2613_v24  ;;  %2817 = vmatmul.bf16.gmra.mxu2 %v1448_v30 }
 0x13d   : > { %v2644_v26 = vpop.f32.mrf.mxu0  ;;  %2846 = vmatmul.bf16.gmra.mxu3 %v1449_v3 }
 0x13e   : > { %v5074_v13 = vadd.f32 %v2670_v54, %v2642_v36 }
 0x13f   : > { %2904 = vmatmul.bf16.gmra.mxu1 %v1451_v39  ;;  %v2586_v56 = vpop.f32.mrf.mxu2 }
 0x140   : > { %2875 = vmatmul.bf16.gmra.mxu0 %v1450_v10  ;;  %v2615_v32 = vpop.f32.mrf.mxu3  ;;  %v2587_v22 = vadd.f32 %v2586_v56, %v4976_v20 }
 0x142   : > { %v2616_v59 = vadd.f32 %v2615_v32, %v2587_v22 }
 0x144   : > { %v2675_v25 = vpop.f32.mrf.mxu1  ;;  %v2645_v52 = vadd.f32 %v2644_v26, %v2616_v59 }
 0x145   : > { %v2646_v57 = vpop.f32.mrf.mxu0 }
 0x146   : > { %v2674_v34 = vadd.f32 %v2673_v23, %v2645_v52 }
 0x147   : > { %v2588_v11 = vpop.f32.mrf.mxu2 }
 0x148   : > { %v2617_v1 = vpop.f32.mrf.mxu3  ;;  %v2589_v51 = vadd.f32 %v2588_v11, %v4997_v37 }
 0x14a   : > { %v2618_v19 = vadd.f32 %v2617_v1, %v2589_v51 }
 0x14c   : > { %v2774_v21 = vpop.f32.mrf.mxu1  ;;  %v2647_v61 = vadd.f32 %v2646_v57, %v2618_v19 }
 0x14d   : > { %v2745_v9 = vpop.f32.mrf.mxu0 }
 0x14e   : > { %v5078_v35 = vadd.f32 %v2675_v25, %v2647_v61 }
 0x14f   : > { %v2687_v55 = vpop.f32.mrf.mxu2 }
 0x150   : > { %v2716_v15 = vpop.f32.mrf.mxu3  ;;  %v2688_v17 = vadd.f32 %v2687_v55, %v5019_v6 }
 0x152   : > { %v2717_v20 = vadd.f32 %v2716_v15, %v2688_v17 }
 0x154   : > { %v2776_v48 = vpop.f32.mrf.mxu1  ;;  %v2746_v45 = vadd.f32 %v2745_v9, %v2717_v20 }
 0x155   : > { %v2747_v33 = vpop.f32.mrf.mxu0 }
 0x156   : > { %v2775_v8 = vadd.f32 %v2774_v21, %v2746_v45 }
 0x157   : > { %v2689_v50 = vpop.f32.mrf.mxu2 }
 0x158   : > { %v2718_v14 = vpop.f32.mrf.mxu3  ;;  %v2690_v32 = vadd.f32 %v2689_v50, %v5043_v63 }
 0x15a   : > { %v2719_v57 = vadd.f32 %v2718_v14, %v2690_v32 }
 0x15c   : > { %v2779_v18 = vpop.f32.mrf.mxu1  ;;  %v2748_v11 = vadd.f32 %v2747_v33, %v2719_v57 }
 0x15d   : > { %v2750_v44 = vpop.f32.mrf.mxu0 }
 0x15e   : > { %v2777_v9 = vadd.f32 %v2776_v48, %v2748_v11 }
 0x15f   : > { %v2692_v37 = vpop.f32.mrf.mxu2 }
 0x160   : > { %v2721_v4 = vpop.f32.mrf.mxu3  ;;  %v2693_v49 = vadd.f32 %v2692_v37, %v5061_v12 }
 0x162   : > { %v2722_v31 = vadd.f32 %v2721_v4, %v2693_v49 }
 0x164   : > { %v5082_v53 = vpop.f32.mrf.mxu1  ;;  %v2751_v42 = vadd.f32 %v2750_v44, %v2722_v31 }
 0x165   : > { %v2752_v38 = vpop.f32.mrf.mxu0 }
 0x166   : > { %v2780_v29 = vadd.f32 %v2779_v18, %v2751_v42 }
 0x167   : > { %v2694_v6 = vpop.f32.mrf.mxu2 }
 0x168   : > { %v2723_v60 = vpop.f32.mrf.mxu3  ;;  %v2695_v17 = vadd.f32 %v2694_v6, %v5070_v46 }
 0x16a   : > { %v2724_v44 = vadd.f32 %v2723_v60, %v2695_v17 }
 0x16c   : > { %v2784_v0 = vpop.f32.mrf.mxu1  ;;  %v2753_v46 = vadd.f32 %v2752_v38, %v2724_v44 }
 0x16d   : > { %v2755_v54 = vpop.f32.mrf.mxu0 }
 0x16e   : > { %v2782_v60 = vadd.f32 %v5082_v53, %v2753_v46 }
 0x16f   : > { %v2697_v28 = vpop.f32.mrf.mxu2 }
 0x170   : > { %v2726_v2 = vpop.f32.mrf.mxu3  ;;  %v2698_v16 = vadd.f32 %v2697_v28, %v2669_v41 }
 0x172   : > { %v2727_v43 = vadd.f32 %v2726_v2, %v2698_v16 }
 0x174   : > { %v5086_v47 = vpop.f32.mrf.mxu1  ;;  %v2756_v58 = vadd.f32 %v2755_v54, %v2727_v43 }
 0x175   : > { %v5084_v7 = vpop.f32.mrf.mxu0 }
 0x176   : > { %v5088_v12 = vadd.f32 %v2784_v0, %v2756_v58 }
 0x177   : > { %v2699_v27 = vpop.f32.mrf.mxu2 }
 0x178   : > { %v2728_v62 = vpop.f32.mrf.mxu3 }
 0x17c   : > { %v2789_v40 = vpop.f32.mrf.mxu1 }
 0x17d   : > { %v2760_v5 = vpop.f32.mrf.mxu0 }
 0x17f   : > { %v2702_v30 = vpop.f32.mrf.mxu2 }
 0x180   : > { %v2731_v3 = vpop.f32.mrf.mxu3  ;;  %v2703_v10 = vadd.f32 %v2702_v30, %v2674_v34 }
 0x182   : > { %v2732_v24 = vadd.f32 %v2731_v3, %v2703_v10 }
 0x184   : > { %v5092_v39 = vpop.f32.mrf.mxu1  ;;  %v2761_v41 = vadd.f32 %v2760_v5, %v2732_v24 }
 0x185   : > { %v5090_v26 = vpop.f32.mrf.mxu0 }
 0x186   : > { %v5094_v23 = vadd.f32 %v2789_v40, %v2761_v41 }
 0x187   : > { %v5096_v36 = vpop.f32.mrf.mxu2 }
 0x188   : > { %v5098_v56 = vpop.f32.mrf.mxu3  ;;  %v2705_v11 = vadd.f32 %v5096_v36, %v5078_v35 }
 0x18c   : > { %v2890_v59 = vpop.f32.mrf.mxu1 }
 0x18d   : > { %v2861_v22 = vpop.f32.mrf.mxu0 }
 0x18f   : > { %v2803_v25 = vpop.f32.mrf.mxu2 }
 0x190   : > { %v2832_v52 = vpop.f32.mrf.mxu3  ;;  %v2804_v34 = vadd.f32 %v2803_v25, %v2775_v8 }
 0x192   : > { %v2833_v19 = vadd.f32 %v2832_v52, %v2804_v34 }
 0x194   : > { %v2892_v51 = vpop.f32.mrf.mxu1  ;;  %v2862_v55 = vadd.f32 %v2861_v22, %v2833_v19 }
 0x195   : > { %v2863_v1 = vpop.f32.mrf.mxu0 }
 0x196   : > { %v2891_v50 = vadd.f32 %v2890_v59, %v2862_v55 }
 0x197   : > { %v2805_v21 = vpop.f32.mrf.mxu2 }
 0x198   : > { %v2834_v61 = vpop.f32.mrf.mxu3  ;;  %v2806_v15 = vadd.f32 %v2805_v21, %v2777_v9  ;;  %v2910_v37 = vmax.f32 %v2891_v50, 0.0 }
 0x19a   : > { %v2835_v20 = vadd.f32 %v2834_v61, %v2806_v15 }
 0x19c   : > { %v2895_v45 = vpop.f32.mrf.mxu1  ;;  %v2864_v14 = vadd.f32 %v2863_v1, %v2835_v20 }
 0x19d   : > { %v2866_v63 = vpop.f32.mrf.mxu0 }
 0x19e   : > { %v2893_v8 = vadd.f32 %v2892_v51, %v2864_v14 }
 0x19f   : > { %v2808_v33 = vpop.f32.mrf.mxu2 }
 0x1a0   : > { %v2837_v18 = vpop.f32.mrf.mxu3  ;;  %v2911_v4 = vmax.f32 %v2893_v8, 0.0  ;;  %v2809_v49 = vadd.f32 %v2808_v33, %v2780_v29  ;;  %v2700_v29 = vadd.f32 %v2699_v27, %v5074_v13 }
 0x1a2   : > { %v3823_v48 = vpack.c.bf16 %v2911_v4, %v2910_v37  ;;  %v2838_v42 = vadd.f32 %v2837_v18, %v2809_v49  ;;  %v2729_v40 = vadd.f32 %v2728_v62, %v2700_v29 }
 0x1a4   : > { %3824 = vst [vmem:[%s5106_s25] sm:$0xff] %v3823_v48   ;;  %v2897_v6 = vpop.f32.mrf.mxu1  ;;  %v2867_v28 = vadd.f32 %v2866_v63, %v2838_v42  ;;  %v2758_v32 = vadd.f32 %v5084_v7, %v2729_v40  ;;  %v2734_v7 = vadd.f32 %v5098_v56, %v2705_v11 }
 0x1a5   : > { %v2868_v31 = vpop.f32.mrf.mxu0 }
 0x1a6   : > { %v2896_v43 = vadd.f32 %v2895_v45, %v2867_v28  ;;  %v2787_v13 = vadd.f32 %v5086_v47, %v2758_v32  ;;  %v2763_v17 = vadd.f32 %v5090_v26, %v2734_v7 }
 0x1a7   : > { %v2810_v54 = vpop.f32.mrf.mxu2 }
 0x1a8   : > { %v2839_v0 = vpop.f32.mrf.mxu3  ;;  %v2811_v2 = vadd.f32 %v2810_v54, %v2782_v60  ;;  %v2912_v24 = vmax.f32 %v2896_v43, 0.0  ;;  %v2792_v36 = vadd.f32 %v5092_v39, %v2763_v17 }
 0x1aa   : > { %v2840_v16 = vadd.f32 %v2839_v0, %v2811_v2 }
 0x1ac   : > { %v2869_v58 = vadd.f32 %v2868_v31, %v2840_v16  ;;  %v2900_v30 = vpop.f32.mrf.mxu1 }
 0x1ad   : > { %v2871_v5 = vpop.f32.mrf.mxu0 }
 0x1ae   : > { %v2898_v38 = vadd.f32 %v2897_v6, %v2869_v58 }
 0x1af   : > { %v2813_v3 = vpop.f32.mrf.mxu2 }
 0x1b0   : > { %v2842_v10 = vpop.f32.mrf.mxu3  ;;  %v2913_v41 = vmax.f32 %v2898_v38, 0.0  ;;  %v2814_v53 = vadd.f32 %v2813_v3, %v5088_v12 }
 0x1b2   : > { %v3828_v22 = vpack.c.bf16 %v2913_v41, %v2912_v24  ;;  %v2843_v59 = vadd.f32 %v2842_v10, %v2814_v53 }
 0x1b4   : > { %3840 = vst [vmem:[%s5106_s25 + $0x8] sm:$0xff] %v3828_v22   ;;  %v2872_v52 = vadd.f32 %v2871_v5, %v2843_v59  ;;  %v2902_v34 = vpop.f32.mrf.mxu1 }
 0x1b5   : > { %v2873_v57 = vpop.f32.mrf.mxu0 }
 0x1b6   : > { %v2901_v51 = vadd.f32 %v2900_v30, %v2872_v52 }
 0x1b7   : > { %v2815_v27 = vpop.f32.mrf.mxu2 }
 0x1b8   : > { %v2844_v25 = vpop.f32.mrf.mxu3  ;;  %v2816_v62 = vadd.f32 %v2815_v27, %v2787_v13  ;;  %v2914_v61 = vmax.f32 %v2901_v51, 0.0 }
 0x1ba   : > { %v2845_v1 = vadd.f32 %v2844_v25, %v2816_v62 }
 0x1bc   : > { %v2874_v12 = vadd.f32 %v2873_v57, %v2845_v1  ;;  %v2905_v63 = vpop.f32.mrf.mxu1 }
 0x1bd   : > { %v2876_v15 = vpop.f32.mrf.mxu0 }
 0x1be   : > { %v2903_v19 = vadd.f32 %v2902_v34, %v2874_v12 }
 0x1bf   : > { %v2818_v9 = vpop.f32.mrf.mxu2 }
 0x1c0   : > { %v2847_v21 = vpop.f32.mrf.mxu3  ;;  %v2915_v55 = vmax.f32 %v2903_v19, 0.0  ;;  %v2819_v47 = vadd.f32 %v2818_v9, %v5094_v23 }
 0x1c2   : > { %v3833_v20 = vpack.c.bf16 %v2915_v55, %v2914_v61  ;;  %v2848_v35 = vadd.f32 %v2847_v21, %v2819_v47 }
 0x1c4   : > { %3841 = vst [vmem:[%s5106_s25 + $0x10] sm:$0xff] %v3833_v20   ;;  %v2877_v50 = vadd.f32 %v2876_v15, %v2848_v35  ;;  %v2907_v37 = vpop.f32.mrf.mxu1 }
 0x1c5   : > { %v2878_v8 = vpop.f32.mrf.mxu0 }
 0x1c6   : > { %v2906_v33 = vadd.f32 %v2905_v63, %v2877_v50 }
 0x1c7   : > { %v2820_v45 = vpop.f32.mrf.mxu2 }
 0x1c8   : > { %v2821_v56 = vadd.f32 %v2820_v45, %v2792_v36  ;;  %v2849_v14 = vpop.f32.mrf.mxu3  ;;  %v2916_v4 = vmax.f32 %v2906_v33, 0.0 }
 0x1ca   : > { %v2850_v44 = vadd.f32 %v2849_v14, %v2821_v56 }
 0x1cc   : > { %v2879_v18 = vadd.f32 %v2878_v8, %v2850_v44 }
 0x1ce   : > { %v2908_v23 = vadd.f32 %v2907_v37, %v2879_v18 }
 0x1d0   : > { %v2917_v49 = vmax.f32 %v2908_v23, 0.0 }
 0x1d2   : > { %v3838_v26 = vpack.c.bf16 %v2917_v49, %v2916_v4 }
 0x1d4   : > { %3842 = vst [vmem:[%s5106_s25 + $0x18] sm:$0xff] %v3838_v26  }
 0x1d5 PF: > { %s13_s14 = sadd.s32 1, %s3907_s14   ;;  %s5136_s12 = smov %s3903_s13 }
 0x1d6   : > { %p10_p5 = scmp.ge.s32.totalorder %s13_s14, 4   ;;  %s5137_s13 = smov %s5139_s15 }
 0x1d8   :  { %12 = sbr.rel (!%p10_p5) target bundleno = 2 (0x2), region = 70 }

</bundles_post_ra>
